<compile_context>
chip_gen: v7x
topology: tpu7x:2x2x1
jax: 0.10.0
libtpu: 0.0.40
codegen_flags: <defaults>
</compile_context>

<pallas_src>
import functools

import jax
import jax.numpy as jnp
from jax import lax
from jax.experimental import pallas as pl
from jax.experimental.pallas import tpu as pltpu


# ------------------------------- helpers ------------------------------------ #

def _round_up(x, m):
    return (x + m - 1) // m * m


def _row_tile(m):
    """Rows per grid step for the M-tiled _pre kernel.

    Big tiles (up to 1024 rows) to approach the HBM roofline, but keep >= 4
    grid steps when M is large so both v7x TensorCores get work and the DMAs
    still double-buffer.  M = N*H*W is small for PAPPM maps, so this is often
    just 1-4 steps.
    """
    m8 = _round_up(max(m, 8), 8)
    t = max(256, min(1024, _round_up((m8 + 3) // 4, 8)))
    t = min(t, m8)
    return t, _round_up(m8, t)


@functools.lru_cache(maxsize=None)
def _vmem_limit_bytes():
    # v5e/v6e have 128 MiB physical VMEM -> allow ~64 MiB scoped so 512-1024 row
    # tiles with large cin fit; v7x has only 64 MiB -> stay at 32 MiB.
    try:
        cap = int(pltpu.get_tpu_info().vmem_capacity_bytes)
        return max(32 * 1024 * 1024, min(96 * 1024 * 1024, cap // 2))
    except Exception:  # query unavailable -> conservative known-good default
        return 32 * 1024 * 1024


def _compiler_params():
    return pltpu.CompilerParams(
        dimension_semantics=("parallel",),
        vmem_limit_bytes=_vmem_limit_bytes(),
    )


# ----------------------------- Pallas kernels ------------------------------- #

def _pre_kernel(x_ref, s_ref,
                s0_ref, b0_ref, w0x4_ref,
                ssp_ref, bsp_ref,
                ssc_ref, bsc_ref, wsc_ref,
                sca_ref, bca_ref, wca_ref,
                act_ref, part_ref):
    """Fused main-resolution pre-process (HBM-bound, M-tiled).

       act  = relu(bn_sp(branches + tile4(scale0(x))))        -> grouped conv
       part = shortcut(x) + compression contribution of x_    -> final add
    """
    bp = wca_ref.shape[0]
    x = x_ref[...]                                          # bf16 (T, cin)

    # scale0: BN0 + ReLU + 1x1 conv; weight pre-tiled to (cin, c4p) so the
    # result is lane-dense and already replicated once per branch group.
    y0 = jnp.maximum(x * s0_ref[...] + b0_ref[...], 0.0).astype(jnp.bfloat16)
    x4 = jnp.dot(y0, w0x4_ref[...], preferred_element_type=jnp.float32)

    # (branch_i + x_) for the four branches, then BN_sp + ReLU (scale_process).
    act = jnp.maximum((s_ref[...] + x4) * ssp_ref[...] + bsp_ref[...], 0.0)
    act_ref[...] = act.astype(act_ref.dtype)

    # shortcut(x) = conv1x1(relu(bn_sc(x)))
    ysc = jnp.maximum(x * ssc_ref[...] + bsc_ref[...], 0.0).astype(jnp.bfloat16)
    part = jnp.dot(ysc, wsc_ref[...], preferred_element_type=jnp.float32)

    # compression contribution of the x_ slice of cat([x_, scale_out]).
    x_ = x4[:, :bp]
    yca = jnp.maximum(x_ * sca_ref[...] + bca_ref[...], 0.0).astype(jnp.bfloat16)
    part = part + jnp.dot(yca, wca_ref[...], preferred_element_type=jnp.float32)
    part_ref[...] = part.astype(part_ref.dtype)


def _post_kernel(act_ref, part_ref, wbd_ref, scb_ref, bcb_ref, wcb_ref, o_ref,
                 pad_ref):
    """Grouped 3x3 conv (block-diag 9-tap GEMM) + compression BN/ReLU/1x1 + part.

    act_ref is the UNPADDED (1, H, W, C4) bf16 activation.  The zero halo is
    built in `pad_ref`, a flat (Hp*Wp, C4) VMEM scratch, so each tap's operand
    is a contiguous row slice of the flattened padded image (no per-tap
    relayouts).  Junk columns (x >= W) of each flattened row are discarded.
    """
    _, h, w, c4 = act_ref.shape
    wp = w + 2
    hw = h * wp
    co = o_ref.shape[-1]

    # Zero the scratch (halo + tail stay zero), then write the interior rows.
    pad_ref[...] = jnp.zeros_like(pad_ref)
    for y in range(h):                    # H is small & static for PAPPM maps
        pad_ref[pl.ds((y + 1) * wp + 1, w), :] = act_ref[0, y]

    # 9 taps: operand for (dy, dx) is rows [dy*wp+dx, dy*wp+dx+hw) of the flat
    # padded image; weights are block-diagonal over the 4 groups.
    acc = jnp.zeros((hw, c4), jnp.float32)
    for dy in range(3):
        for dx in range(3):
            operand = pad_ref[pl.ds(dy * wp + dx, hw), :]
            acc = acc + jnp.dot(operand, wbd_ref[dy * 3 + dx],
                                preferred_element_type=jnp.float32)

    # compression BN + ReLU + 1x1 over the scale_out channels, plus the
    # precomputed partial (shortcut + compression-of-x_); scale_out never
    # touches HBM.
    y2 = jnp.maximum(acc * scb_ref[...] + bcb_ref[...], 0.0).astype(jnp.bfloat16)
    out = jnp.dot(y2, wcb_ref[...], preferred_element_type=jnp.float32)
    out = out.reshape(h, wp, co)[:, :w, :] + part_ref[0].astype(jnp.float32)
    o_ref[...] = out.reshape(1, h, w, co)


# --------------------------- pallas_call wrappers --------------------------- #

def fused_pre(x2d, s_cat, pp):
    """Fused pre-process stage (see _pre_kernel).  x2d / s_cat are bf16."""
    m, cin = x2d.shape
    c4p = s_cat.shape[1]
    bp = pp['w_cmp_a'].shape[0]
    co_p = pp['w_sc'].shape[1]
    t, m_pad = _row_tile(m)
    if m_pad != m:
        x2d = jnp.pad(x2d, ((0, m_pad - m), (0, 0)))
        s_cat = jnp.pad(s_cat, ((0, m_pad - m), (0, 0)))

    def row(c):
        return pl.BlockSpec((t, c), lambda i: (i, 0))

    def const(a, b):
        return pl.BlockSpec((a, b), lambda i: (0, 0))

    act, part = pl.pallas_call(
        _pre_kernel,
        out_shape=(jax.ShapeDtypeStruct((m_pad, c4p), jnp.bfloat16),
                   jax.ShapeDtypeStruct((m_pad, co_p), jnp.bfloat16)),
        grid=(m_pad // t,),
        in_specs=[row(cin), row(c4p),
                  const(1, cin), const(1, cin), const(cin, c4p),
                  const(1, c4p), const(1, c4p),
                  const(1, cin), const(1, cin), const(cin, co_p),
                  const(1, bp), const(1, bp), const(bp, co_p)],
        out_specs=(row(c4p), row(co_p)),
        compiler_params=_compiler_params(),
    )(x2d, s_cat,
      pp['bn0_s'], pp['bn0_b'], pp['w0x4'],
      pp['bnsp_s'], pp['bnsp_b'],
      pp['bnsc_s'], pp['bnsc_b'], pp['w_sc'],
      pp['bncmp_a_s'], pp['bncmp_a_b'], pp['w_cmp_a'])
    return act[:m], part[:m]


def fused_post(act_nhwc, part_nhwc, pp):
    """Fused grouped-3x3-conv + compression + partial add (see _post_kernel)."""
    n, h, w, c4p = act_nhwc.shape
    co_p = part_nhwc.shape[-1]
    hp, wp = h + 2, w + 2
    pad_rows = _round_up(hp * wp + 8, 8)
    # TODO(synk): for very large feature maps, additionally tile this over
    # spatial row blocks (with a 2-row halo) instead of one image per step.
    return pl.pallas_call(
        _post_kernel,
        out_shape=jax.ShapeDtypeStruct((n, h, w, co_p), jnp.float32),
        grid=(n,),
        in_specs=[pl.BlockSpec((1, h, w, c4p), lambda i: (i, 0, 0, 0)),
                  pl.BlockSpec((1, h, w, co_p), lambda i: (i, 0, 0, 0)),
                  pl.BlockSpec((9, c4p, c4p), lambda i: (0, 0, 0)),
                  pl.BlockSpec((1, c4p), lambda i: (0, 0)),
                  pl.BlockSpec((1, c4p), lambda i: (0, 0)),
                  pl.BlockSpec((c4p, co_p), lambda i: (0, 0))],
        out_specs=pl.BlockSpec((1, h, w, co_p), lambda i: (i, 0, 0, 0)),
        scratch_shapes=[pltpu.VMEM((pad_rows, c4p), jnp.bfloat16)],
        compiler_params=_compiler_params(),
    )(act_nhwc, part_nhwc, pp['w_sp_bd'], pp['bncmp_b_s'], pp['bncmp_b_b'],
      pp['w_cmp_b'])


# ------------------------------ JAX glue ops -------------------------------- #

def avg_pool_nhwc(x, k, s, p):
    # TODO(synk): strided AvgPool2d (count_include_pad=True) stays in XLA glue.
    summed = lax.reduce_window(x, 0.0, lax.add,
                               window_dimensions=(1, k, k, 1),
                               window_strides=(1, s, s, 1),
                               padding=((0, 0), (p, p), (p, p), (0, 0)))
    return summed / float(k * k)


def bilinear_resize_nhwc(x, out_h, out_w):
    # TODO(synk): bilinear upsample (gather + lerp, align_corners=False) stays in
    # XLA glue rather than Pallas.
    _, h, w, _ = x.shape

    def axis_idx(in_size, out_size):
        ratio = in_size / out_size
        dst = jnp.arange(out_size, dtype=jnp.float32)
        src = jnp.maximum(ratio * (dst + 0.5) - 0.5, 0.0)
        i0 = jnp.clip(jnp.floor(src).astype(jnp.int32), 0, in_size - 1)
        i1 = jnp.minimum(i0 + 1, in_size - 1)
        l1 = src - i0.astype(jnp.float32)
        return i0, i1, 1.0 - l1, l1

    r0, r1, rl0, rl1 = axis_idx(h, out_h)
    c0, c1, cl0, cl1 = axis_idx(w, out_w)
    xr = x[:, r0] * rl0[None, :, None, None] + x[:, r1] * rl1[None, :, None, None]
    return (xr[:, :, c0] * cl0[None, None, :, None]
            + xr[:, :, c1] * cl1[None, None, :, None])


# ------------------------------ parameters ---------------------------------- #

def init_params(key, inplanes, bp, outplanes):
    keys = iter(jax.random.split(key, 48))

    def bn(c):
        gamma = 1.0 + 0.1 * jax.random.normal(next(keys), (c,), jnp.float32)
        beta = 0.1 * jax.random.normal(next(keys), (c,), jnp.float32)
        mean = 0.1 * jax.random.normal(next(keys), (c,), jnp.float32)
        var = 0.5 + jax.random.uniform(next(keys), (c,), jnp.float32)
        scale = gamma / jnp.sqrt(var + 1e-5)
        shift = beta - mean * scale
        return scale.reshape(1, c), shift.reshape(1, c)

    def conv(cin, cout):
        return 0.1 * jax.random.normal(next(keys), (cin, cout), jnp.float32)

    p = {}
    p['bn0'] = bn(inplanes); p['w0'] = conv(inplanes, bp)
    p['bn1'] = bn(inplanes); p['w1'] = conv(inplanes, bp)
    p['bn2'] = bn(inplanes); p['w2'] = conv(inplanes, bp)
    p['bn3'] = bn(inplanes); p['w3'] = conv(inplanes, bp)
    p['bn4'] = bn(inplanes); p['w4'] = conv(inplanes, bp)
    p['bn_sp'] = bn(4 * bp)
    # grouped 3x3 conv weights: [group, tap(dy*3+dx), cin_per_group, cout_per_group]
    p['w_sp'] = 0.1 * jax.random.normal(next(keys), (4, 9, bp, bp), jnp.float32)
    p['bn_cmp'] = bn(5 * bp); p['w_cmp'] = conv(5 * bp, outplanes)
    p['bn_sc'] = bn(inplanes); p['w_sc'] = conv(inplanes, outplanes)
    return p


def _pad_cols(a, n):
    return jnp.pad(a, ((0, 0), (0, n - a.shape[1])))


def prepare_params(p, bp, outplanes):
    """Fold / split / pre-tile / lane-pad parameters for the kernels.

    Lane padding: 4*bp -> c4p and outplanes -> co_p (multiples of 128) so every
    kernel output tile is stored with full, unmasked 128-lane stores.  The
    padded channels carry zeros end-to-end and are sliced off in the wrapper
    (no-op when channel counts are already 128-multiples).
    """
    c4 = 4 * bp
    c4p = _round_up(c4, 128)
    co_p = _round_up(outplanes, 128)
    f = {}
    f['bn0_s'], f['bn0_b'] = p['bn0']
    # scale0 weight tiled 4x along the output so x_ lands pre-replicated per group.
    f['w0x4'] = _pad_cols(jnp.concatenate([p['w0']] * 4, axis=1),
                          c4p).astype(jnp.bfloat16)
    f['bnsp_s'] = _pad_cols(p['bn_sp'][0], c4p)
    f['bnsp_b'] = _pad_cols(p['bn_sp'][1], c4p)
    f['bnsc_s'], f['bnsc_b'] = p['bn_sc']
    f['w_sc'] = _pad_cols(p['w_sc'], co_p).astype(jnp.bfloat16)

    scmp, bcmp = p['bn_cmp']
    f['bncmp_a_s'], f['bncmp_a_b'] = scmp[:, :bp], bcmp[:, :bp]
    f['bncmp_b_s'] = _pad_cols(scmp[:, bp:], c4p)
    f['bncmp_b_b'] = _pad_cols(bcmp[:, bp:], c4p)
    f['w_cmp_a'] = _pad_cols(p['w_cmp'][:bp], co_p).astype(jnp.bfloat16)
    f['w_cmp_b'] = jnp.pad(_pad_cols(p['w_cmp'][bp:], co_p),
                           ((0, c4p - c4), (0, 0))).astype(jnp.bfloat16)

    # Block-diagonal grouped 3x3 weights, lane-padded: (9, c4p, c4p).
    # TODO(synk): on v5e's 128-wide MXU a per-group (bp x bp) form is ~4x cheaper;
    # block-diag kept since it is neutral on v6e/v7x and keeps act lane-dense.
    wbd = jnp.zeros((9, c4p, c4p), jnp.float32)
    for g in range(4):
        wbd = wbd.at[:, g * bp:(g + 1) * bp, g * bp:(g + 1) * bp].set(p['w_sp'][g])
    f['w_sp_bd'] = wbd.astype(jnp.bfloat16)

    for i in (1, 2, 3, 4):
        f[f'bn{i}_s'], f[f'bn{i}_b'] = p[f'bn{i}']
        f[f'w{i}'] = p[f'w{i}']
    return f


# ------------------------------ forward pass -------------------------------- #

def pappm_forward(x_nchw, params, *, bp, outplanes):
    pp = prepare_params(params, bp, outplanes)
    c4 = 4 * bp
    c4p = pp['w0x4'].shape[1]
    co_p = pp['w_sc'].shape[1]

    x = jnp.transpose(x_nchw, (0, 2, 3, 1)).astype(jnp.float32)    # NCHW -> NHWC
    n, h, w, cin = x.shape
    m = n * h * w

    # Tiny pooled pyramid branches: pool / BN / 1x1 / bilinear in plain XLA
    # (they were pure launch overhead as separate pallas_calls).
    def branch(pooled, s, b, wgt):
        y = jnp.maximum(pooled * s.reshape(1, 1, 1, -1)
                        + b.reshape(1, 1, 1, -1), 0.0)
        y = jnp.einsum('nhwc,cd->nhwd', y, wgt)
        return bilinear_resize_nhwc(y, h, w)

    b1 = branch(avg_pool_nhwc(x, 5, 2, 2), pp['bn1_s'], pp['bn1_b'], pp['w1'])
    b2 = branch(avg_pool_nhwc(x, 9, 4, 4), pp['bn2_s'], pp['bn2_b'], pp['w2'])
    b3 = branch(avg_pool_nhwc(x, 17, 8, 8), pp['bn3_s'], pp['bn3_b'], pp['w3'])

    gp = jnp.mean(x, axis=(1, 2))                                   # global pool
    b4 = jnp.maximum(gp * pp['bn4_s'] + pp['bn4_b'], 0.0) @ pp['w4']   # (N, bp)
    # bilinear upsample of a 1x1 map (align_corners=False) is a pure broadcast
    b4 = jnp.broadcast_to(b4[:, None, None, :], (n, h, w, bp))

    s_cat = jnp.concatenate([b1, b2, b3, b4], axis=-1)              # (n,h,w,4bp)
    s_cat = jnp.pad(s_cat, ((0, 0), (0, 0), (0, 0), (0, c4p - c4)))
    s_cat = s_cat.reshape(m, c4p).astype(jnp.bfloat16)              # bf16 feed
    x2d = x.reshape(m, cin).astype(jnp.bfloat16)                    # bf16 feed

    # fused: scale0 conv + branch add + BN_sp/ReLU -> act (bf16) ;
    #        shortcut + x_'s compression contribution -> part (bf16)
    act2d, part2d = fused_pre(x2d, s_cat, pp)

    # fused: in-kernel halo + grouped 3x3 conv + compression + partial add
    out_nhwc = fused_post(act2d.reshape(n, h, w, c4p),
                          part2d.reshape(n, h, w, co_p), pp)

    out = out_nhwc[..., :outplanes]                                 # drop lane pad
    return jnp.transpose(out, (0, 3, 1, 2))                         # NHWC -> NCHW


# --------------------------------- main ------------------------------------- #

if __name__ == "__main__":
    inplanes, branch_planes, outplanes = 16, 8, 16
    n, h, w = 2, 16, 16

    key = jax.random.PRNGKey(0)
    kx, kp = jax.random.split(key)
    x = jax.random.normal(kx, (n, inplanes, h, w), jnp.float32)     # NCHW input
    params = init_params(kp, inplanes, branch_planes, outplanes)

    fwd = jax.jit(functools.partial(pappm_forward,
                                    bp=branch_planes, outplanes=outplanes))
    out = jax.block_until_ready(fwd(x, params))

    assert out.shape == (n, outplanes, h, w), out.shape
    assert bool(jnp.all(jnp.isfinite(out)))
    print("KERNEL_OK")
</pallas_src>

<mosaic_0001>
module attributes {stable_mosaic.version = 11 : i64} {
  func.func @_pre_kernel(%arg0: i32, %arg1: memref<256x16xbf16, #tpu.memory_space<vmem>>, %arg2: memref<256x128xbf16, #tpu.memory_space<vmem>>, %arg3: memref<1x16xf32, #tpu.memory_space<vmem>>, %arg4: memref<1x16xf32, #tpu.memory_space<vmem>>, %arg5: memref<16x128xbf16, #tpu.memory_space<vmem>>, %arg6: memref<1x128xf32, #tpu.memory_space<vmem>>, %arg7: memref<1x128xf32, #tpu.memory_space<vmem>>, %arg8: memref<1x16xf32, #tpu.memory_space<vmem>>, %arg9: memref<1x16xf32, #tpu.memory_space<vmem>>, %arg10: memref<16x128xbf16, #tpu.memory_space<vmem>>, %arg11: memref<1x8xf32, #tpu.memory_space<vmem>>, %arg12: memref<1x8xf32, #tpu.memory_space<vmem>>, %arg13: memref<8x128xbf16, #tpu.memory_space<vmem>>, %arg14: memref<256x128xbf16, #tpu.memory_space<vmem>>, %arg15: memref<256x128xbf16, #tpu.memory_space<vmem>>) attributes {dimension_semantics = [#tpu.dimension_semantics<parallel>], iteration_bounds = array<i64: 2>, scalar_prefetch = 0 : i64, scratch_operands = 0 : i64, tpu.core_type = #tpu.core_type<tc>, window_params = [{transform_indices = @transform_0, window_bounds = array<i64: 256, 16>}, {transform_indices = @transform_1, window_bounds = array<i64: 256, 128>}, {pipeline_mode = #tpu.pipeline_mode<synchronous>, transform_indices = @transform_2, window_bounds = array<i64: 1, 16>}, {pipeline_mode = #tpu.pipeline_mode<synchronous>, transform_indices = @transform_3, window_bounds = array<i64: 1, 16>}, {pipeline_mode = #tpu.pipeline_mode<synchronous>, transform_indices = @transform_4, window_bounds = array<i64: 16, 128>}, {pipeline_mode = #tpu.pipeline_mode<synchronous>, transform_indices = @transform_5, window_bounds = array<i64: 1, 128>}, {pipeline_mode = #tpu.pipeline_mode<synchronous>, transform_indices = @transform_6, window_bounds = array<i64: 1, 128>}, {pipeline_mode = #tpu.pipeline_mode<synchronous>, transform_indices = @transform_7, window_bounds = array<i64: 1, 16>}, {pipeline_mode = #tpu.pipeline_mode<synchronous>, transform_indices = @transform_8, window_bounds = array<i64: 1, 16>}, {pipeline_mode = #tpu.pipeline_mode<synchronous>, transform_indices = @transform_9, window_bounds = array<i64: 16, 128>}, {pipeline_mode = #tpu.pipeline_mode<synchronous>, transform_indices = @transform_10, window_bounds = array<i64: 1, 8>}, {pipeline_mode = #tpu.pipeline_mode<synchronous>, transform_indices = @transform_11, window_bounds = array<i64: 1, 8>}, {pipeline_mode = #tpu.pipeline_mode<synchronous>, transform_indices = @transform_12, window_bounds = array<i64: 8, 128>}, {transform_indices = @transform_13, window_bounds = array<i64: 256, 128>}, {transform_indices = @transform_14, window_bounds = array<i64: 256, 128>}]} {
    %c0 = arith.constant 0 : index
    %c0_0 = arith.constant 0 : index
    %0 = vector.load %arg1[%c0, %c0_0] : memref<256x16xbf16, #tpu.memory_space<vmem>>, vector<256x16xbf16>
    %c0_1 = arith.constant 0 : index
    %c0_2 = arith.constant 0 : index
    %1 = vector.load %arg3[%c0_1, %c0_2] : memref<1x16xf32, #tpu.memory_space<vmem>>, vector<1x16xf32>
    %2 = arith.extf %0 : vector<256x16xbf16> to vector<256x16xf32>
    %3 = vector.broadcast %1 : vector<1x16xf32> to vector<256x16xf32>
    %4 = arith.mulf %2, %3 : vector<256x16xf32>
    %c0_3 = arith.constant 0 : index
    %c0_4 = arith.constant 0 : index
    %5 = vector.load %arg4[%c0_3, %c0_4] : memref<1x16xf32, #tpu.memory_space<vmem>>, vector<1x16xf32>
    %6 = vector.broadcast %5 : vector<1x16xf32> to vector<256x16xf32>
    %7 = arith.addf %4, %6 : vector<256x16xf32>
    %cst = arith.constant 0.000000e+00 : f32
    %8 = vector.broadcast %cst : f32 to vector<256x16xf32>
    %9 = arith.maximumf %7, %8 : vector<256x16xf32>
    %10 = arith.truncf %9 : vector<256x16xf32> to vector<256x16xbf16>
    %c0_5 = arith.constant 0 : index
    %c0_6 = arith.constant 0 : index
    %11 = vector.load %arg5[%c0_5, %c0_6] : memref<16x128xbf16, #tpu.memory_space<vmem>>, vector<16x128xbf16>
    %cst_7 = arith.constant dense<0.000000e+00> : vector<256x128xf32>
    %12 = tpu.matmul %10, %11, %cst_7 {dimension_numbers = #tpu.dot_dimension_numbers<[1], [0], [0], [1], [0, 0, 1, 1], [], []>} : vector<256x16xbf16>, vector<16x128xbf16>, vector<256x128xf32> -> vector<256x128xf32>
    %c0_8 = arith.constant 0 : index
    %c0_9 = arith.constant 0 : index
    %13 = vector.load %arg2[%c0_8, %c0_9] : memref<256x128xbf16, #tpu.memory_space<vmem>>, vector<256x128xbf16>
    %14 = arith.extf %13 : vector<256x128xbf16> to vector<256x128xf32>
    %15 = arith.addf %14, %12 : vector<256x128xf32>
    %c0_10 = arith.constant 0 : index
    %c0_11 = arith.constant 0 : index
    %16 = vector.load %arg6[%c0_10, %c0_11] : memref<1x128xf32, #tpu.memory_space<vmem>>, vector<1x128xf32>
    %17 = vector.broadcast %16 : vector<1x128xf32> to vector<256x128xf32>
    %18 = arith.mulf %15, %17 : vector<256x128xf32>
    %c0_12 = arith.constant 0 : index
    %c0_13 = arith.constant 0 : index
    %19 = vector.load %arg7[%c0_12, %c0_13] : memref<1x128xf32, #tpu.memory_space<vmem>>, vector<1x128xf32>
    %20 = vector.broadcast %19 : vector<1x128xf32> to vector<256x128xf32>
    %21 = arith.addf %18, %20 : vector<256x128xf32>
    %cst_14 = arith.constant 0.000000e+00 : f32
    %22 = vector.broadcast %cst_14 : f32 to vector<256x128xf32>
    %23 = arith.maximumf %21, %22 : vector<256x128xf32>
    %24 = arith.truncf %23 : vector<256x128xf32> to vector<256x128xbf16>
    %c0_15 = arith.constant 0 : index
    %c0_16 = arith.constant 0 : index
    %25 = vector.load %arg14[%c0_15, %c0_16] : memref<256x128xbf16, #tpu.memory_space<vmem>>, vector<256x128xbf16>
    tpu.vector_store %arg14[%c0_15, %c0_16], %24 {strides = array<i32>} : memref<256x128xbf16, #tpu.memory_space<vmem>>, vector<256x128xbf16>,
    %c0_17 = arith.constant 0 : index
    %c0_18 = arith.constant 0 : index
    %26 = vector.load %arg8[%c0_17, %c0_18] : memref<1x16xf32, #tpu.memory_space<vmem>>, vector<1x16xf32>
    %27 = arith.extf %0 : vector<256x16xbf16> to vector<256x16xf32>
    %28 = vector.broadcast %26 : vector<1x16xf32> to vector<256x16xf32>
    %29 = arith.mulf %27, %28 : vector<256x16xf32>
    %c0_19 = arith.constant 0 : index
    %c0_20 = arith.constant 0 : index
    %30 = vector.load %arg9[%c0_19, %c0_20] : memref<1x16xf32, #tpu.memory_space<vmem>>, vector<1x16xf32>
    %31 = vector.broadcast %30 : vector<1x16xf32> to vector<256x16xf32>
    %32 = arith.addf %29, %31 : vector<256x16xf32>
    %cst_21 = arith.constant 0.000000e+00 : f32
    %33 = vector.broadcast %cst_21 : f32 to vector<256x16xf32>
    %34 = arith.maximumf %32, %33 : vector<256x16xf32>
    %35 = arith.truncf %34 : vector<256x16xf32> to vector<256x16xbf16>
    %c0_22 = arith.constant 0 : index
    %c0_23 = arith.constant 0 : index
    %36 = vector.load %arg10[%c0_22, %c0_23] : memref<16x128xbf16, #tpu.memory_space<vmem>>, vector<16x128xbf16>
    %cst_24 = arith.constant dense<0.000000e+00> : vector<256x128xf32>
    %37 = tpu.matmul %35, %36, %cst_24 {dimension_numbers = #tpu.dot_dimension_numbers<[1], [0], [0], [1], [0, 0, 1, 1], [], []>} : vector<256x16xbf16>, vector<16x128xbf16>, vector<256x128xf32> -> vector<256x128xf32>
    %38 = vector.extract_strided_slice %12 {offsets = [0, 0], sizes = [256, 8], strides = [1, 1]} : vector<256x128xf32> to vector<256x8xf32>
    %c0_25 = arith.constant 0 : index
    %c0_26 = arith.constant 0 : index
    %39 = vector.load %arg11[%c0_25, %c0_26] : memref<1x8xf32, #tpu.memory_space<vmem>>, vector<1x8xf32>
    %40 = vector.broadcast %39 : vector<1x8xf32> to vector<256x8xf32>
    %41 = arith.mulf %38, %40 : vector<256x8xf32>
    %c0_27 = arith.constant 0 : index
    %c0_28 = arith.constant 0 : index
    %42 = vector.load %arg12[%c0_27, %c0_28] : memref<1x8xf32, #tpu.memory_space<vmem>>, vector<1x8xf32>
    %43 = vector.broadcast %42 : vector<1x8xf32> to vector<256x8xf32>
    %44 = arith.addf %41, %43 : vector<256x8xf32>
    %cst_29 = arith.constant 0.000000e+00 : f32
    %45 = vector.broadcast %cst_29 : f32 to vector<256x8xf32>
    %46 = arith.maximumf %44, %45 : vector<256x8xf32>
    %47 = arith.truncf %46 : vector<256x8xf32> to vector<256x8xbf16>
    %c0_30 = arith.constant 0 : index
    %c0_31 = arith.constant 0 : index
    %48 = vector.load %arg13[%c0_30, %c0_31] : memref<8x128xbf16, #tpu.memory_space<vmem>>, vector<8x128xbf16>
    %cst_32 = arith.constant dense<0.000000e+00> : vector<256x128xf32>
    %49 = tpu.matmul %47, %48, %cst_32 {dimension_numbers = #tpu.dot_dimension_numbers<[1], [0], [0], [1], [0, 0, 1, 1], [], []>} : vector<256x8xbf16>, vector<8x128xbf16>, vector<256x128xf32> -> vector<256x128xf32>
    %50 = arith.addf %37, %49 : vector<256x128xf32>
    %51 = arith.truncf %50 : vector<256x128xf32> to vector<256x128xbf16>
    %c0_33 = arith.constant 0 : index
    %c0_34 = arith.constant 0 : index
    %52 = vector.load %arg15[%c0_33, %c0_34] : memref<256x128xbf16, #tpu.memory_space<vmem>>, vector<256x128xbf16>
    tpu.vector_store %arg15[%c0_33, %c0_34], %51 {strides = array<i32>} : memref<256x128xbf16, #tpu.memory_space<vmem>>, vector<256x128xbf16>,
    return
  }
  func.func @transform_0(%arg0: i32) -> (i32, i32) {
    %c0_i32 = arith.constant 0 : i32
    %c0_i32_0 = arith.constant 0 : i32
    return %arg0, %c0_i32 : i32, i32
  }
  func.func @transform_1(%arg0: i32) -> (i32, i32) {
    %c0_i32 = arith.constant 0 : i32
    %c0_i32_0 = arith.constant 0 : i32
    return %arg0, %c0_i32 : i32, i32
  }
  func.func @transform_2(%arg0: i32) -> (i32, i32) {
    %c0_i32 = arith.constant 0 : i32
    %c0_i32_0 = arith.constant 0 : i32
    %c0_i32_1 = arith.constant 0 : i32
    return %c0_i32, %c0_i32_0 : i32, i32
  }
  func.func @transform_3(%arg0: i32) -> (i32, i32) {
    %c0_i32 = arith.constant 0 : i32
    %c0_i32_0 = arith.constant 0 : i32
    %c0_i32_1 = arith.constant 0 : i32
    return %c0_i32, %c0_i32_0 : i32, i32
  }
  func.func @transform_4(%arg0: i32) -> (i32, i32) {
    %c0_i32 = arith.constant 0 : i32
    %c0_i32_0 = arith.constant 0 : i32
    %c0_i32_1 = arith.constant 0 : i32
    return %c0_i32, %c0_i32_0 : i32, i32
  }
  func.func @transform_5(%arg0: i32) -> (i32, i32) {
    %c0_i32 = arith.constant 0 : i32
    %c0_i32_0 = arith.constant 0 : i32
    %c0_i32_1 = arith.constant 0 : i32
    return %c0_i32, %c0_i32_0 : i32, i32
  }
  func.func @transform_6(%arg0: i32) -> (i32, i32) {
    %c0_i32 = arith.constant 0 : i32
    %c0_i32_0 = arith.constant 0 : i32
    %c0_i32_1 = arith.constant 0 : i32
    return %c0_i32, %c0_i32_0 : i32, i32
  }
  func.func @transform_7(%arg0: i32) -> (i32, i32) {
    %c0_i32 = arith.constant 0 : i32
    %c0_i32_0 = arith.constant 0 : i32
    %c0_i32_1 = arith.constant 0 : i32
    return %c0_i32, %c0_i32_0 : i32, i32
  }
  func.func @transform_8(%arg0: i32) -> (i32, i32) {
    %c0_i32 = arith.constant 0 : i32
    %c0_i32_0 = arith.constant 0 : i32
    %c0_i32_1 = arith.constant 0 : i32
    return %c0_i32, %c0_i32_0 : i32, i32
  }
  func.func @transform_9(%arg0: i32) -> (i32, i32) {
    %c0_i32 = arith.constant 0 : i32
    %c0_i32_0 = arith.constant 0 : i32
    %c0_i32_1 = arith.constant 0 : i32
    return %c0_i32, %c0_i32_0 : i32, i32
  }
  func.func @transform_10(%arg0: i32) -> (i32, i32) {
    %c0_i32 = arith.constant 0 : i32
    %c0_i32_0 = arith.constant 0 : i32
    %c0_i32_1 = arith.constant 0 : i32
    return %c0_i32, %c0_i32_0 : i32, i32
  }
  func.func @transform_11(%arg0: i32) -> (i32, i32) {
    %c0_i32 = arith.constant 0 : i32
    %c0_i32_0 = arith.constant 0 : i32
    %c0_i32_1 = arith.constant 0 : i32
    return %c0_i32, %c0_i32_0 : i32, i32
  }
  func.func @transform_12(%arg0: i32) -> (i32, i32) {
    %c0_i32 = arith.constant 0 : i32
    %c0_i32_0 = arith.constant 0 : i32
    %c0_i32_1 = arith.constant 0 : i32
    return %c0_i32, %c0_i32_0 : i32, i32
  }
  func.func @transform_13(%arg0: i32) -> (i32, i32) {
    %c0_i32 = arith.constant 0 : i32
    %c0_i32_0 = arith.constant 0 : i32
    return %arg0, %c0_i32 : i32, i32
  }
  func.func @transform_14(%arg0: i32) -> (i32, i32) {
    %c0_i32 = arith.constant 0 : i32
    %c0_i32_0 = arith.constant 0 : i32
    return %arg0, %c0_i32 : i32, i32
  }
}

module attributes {stable_mosaic.version = 11 : i64} {
  func.func @_post_kernel(%arg0: i32, %arg1: memref<1x16x16x128xbf16, #tpu.memory_space<vmem>>, %arg2: memref<1x16x16x128xbf16, #tpu.memory_space<vmem>>, %arg3: memref<9x128x128xbf16, #tpu.memory_space<vmem>>, %arg4: memref<1x128xf32, #tpu.memory_space<vmem>>, %arg5: memref<1x128xf32, #tpu.memory_space<vmem>>, %arg6: memref<128x128xbf16, #tpu.memory_space<vmem>>, %arg7: memref<1x16x16x128xf32, #tpu.memory_space<vmem>>, %arg8: memref<336x128xbf16, #tpu.memory_space<vmem>>) attributes {dimension_semantics = [#tpu.dimension_semantics<parallel>], iteration_bounds = array<i64: 2>, scalar_prefetch = 0 : i64, scratch_operands = 1 : i64, tpu.core_type = #tpu.core_type<tc>, window_params = [{transform_indices = @transform_0, window_bounds = array<i64: 1, 16, 16, 128>}, {transform_indices = @transform_1, window_bounds = array<i64: 1, 16, 16, 128>}, {pipeline_mode = #tpu.pipeline_mode<synchronous>, transform_indices = @transform_2, window_bounds = array<i64: 9, 128, 128>}, {pipeline_mode = #tpu.pipeline_mode<synchronous>, transform_indices = @transform_3, window_bounds = array<i64: 1, 128>}, {pipeline_mode = #tpu.pipeline_mode<synchronous>, transform_indices = @transform_4, window_bounds = array<i64: 1, 128>}, {pipeline_mode = #tpu.pipeline_mode<synchronous>, transform_indices = @transform_5, window_bounds = array<i64: 128, 128>}, {transform_indices = @transform_6, window_bounds = array<i64: 1, 16, 16, 128>}]} {
    %cst = arith.constant 0.000000e+00 : bf16
    %0 = vector.broadcast %cst : bf16 to vector<336x128xbf16>
    %c0 = arith.constant 0 : index
    %c0_0 = arith.constant 0 : index
    %1 = vector.load %arg8[%c0, %c0_0] : memref<336x128xbf16, #tpu.memory_space<vmem>>, vector<336x128xbf16>
    tpu.vector_store %arg8[%c0, %c0_0], %0 {strides = array<i32>} : memref<336x128xbf16, #tpu.memory_space<vmem>>, vector<336x128xbf16>,
    %c0_1 = arith.constant 0 : index
    %c0_2 = arith.constant 0 : index
    %c0_3 = arith.constant 0 : index
    %c0_4 = arith.constant 0 : index
    %2 = vector.load %arg1[%c0_1, %c0_2, %c0_3, %c0_4] : memref<1x16x16x128xbf16, #tpu.memory_space<vmem>>, vector<1x1x16x128xbf16>
    %3 = vector.shape_cast %2 : vector<1x1x16x128xbf16> to vector<16x128xbf16>
    %c19 = arith.constant 19 : index
    %c0_5 = arith.constant 0 : index
    %4 = vector.load %arg8[%c19, %c0_5] : memref<336x128xbf16, #tpu.memory_space<vmem>>, vector<16x128xbf16>
    tpu.vector_store %arg8[%c19, %c0_5], %3 {strides = array<i32>} : memref<336x128xbf16, #tpu.memory_space<vmem>>, vector<16x128xbf16>,
    %c0_6 = arith.constant 0 : index
    %c1 = arith.constant 1 : index
    %c0_7 = arith.constant 0 : index
    %c0_8 = arith.constant 0 : index
    %5 = vector.load %arg1[%c0_6, %c1, %c0_7, %c0_8] : memref<1x16x16x128xbf16, #tpu.memory_space<vmem>>, vector<1x1x16x128xbf16>
    %6 = vector.shape_cast %5 : vector<1x1x16x128xbf16> to vector<16x128xbf16>
    %c37 = arith.constant 37 : index
    %c0_9 = arith.constant 0 : index
    %7 = vector.load %arg8[%c37, %c0_9] : memref<336x128xbf16, #tpu.memory_space<vmem>>, vector<16x128xbf16>
    tpu.vector_store %arg8[%c37, %c0_9], %6 {strides = array<i32>} : memref<336x128xbf16, #tpu.memory_space<vmem>>, vector<16x128xbf16>,
    %c0_10 = arith.constant 0 : index
    %c2 = arith.constant 2 : index
    %c0_11 = arith.constant 0 : index
    %c0_12 = arith.constant 0 : index
    %8 = vector.load %arg1[%c0_10, %c2, %c0_11, %c0_12] : memref<1x16x16x128xbf16, #tpu.memory_space<vmem>>, vector<1x1x16x128xbf16>
    %9 = vector.shape_cast %8 : vector<1x1x16x128xbf16> to vector<16x128xbf16>
    %c55 = arith.constant 55 : index
    %c0_13 = arith.constant 0 : index
    %10 = vector.load %arg8[%c55, %c0_13] : memref<336x128xbf16, #tpu.memory_space<vmem>>, vector<16x128xbf16>
    tpu.vector_store %arg8[%c55, %c0_13], %9 {strides = array<i32>} : memref<336x128xbf16, #tpu.memory_space<vmem>>, vector<16x128xbf16>,
    %c0_14 = arith.constant 0 : index
    %c3 = arith.constant 3 : index
    %c0_15 = arith.constant 0 : index
    %c0_16 = arith.constant 0 : index
    %11 = vector.load %arg1[%c0_14, %c3, %c0_15, %c0_16] : memref<1x16x16x128xbf16, #tpu.memory_space<vmem>>, vector<1x1x16x128xbf16>
    %12 = vector.shape_cast %11 : vector<1x1x16x128xbf16> to vector<16x128xbf16>
    %c73 = arith.constant 73 : index
    %c0_17 = arith.constant 0 : index
    %13 = vector.load %arg8[%c73, %c0_17] : memref<336x128xbf16, #tpu.memory_space<vmem>>, vector<16x128xbf16>
    tpu.vector_store %arg8[%c73, %c0_17], %12 {strides = array<i32>} : memref<336x128xbf16, #tpu.memory_space<vmem>>, vector<16x128xbf16>,
    %c0_18 = arith.constant 0 : index
    %c4 = arith.constant 4 : index
    %c0_19 = arith.constant 0 : index
    %c0_20 = arith.constant 0 : index
    %14 = vector.load %arg1[%c0_18, %c4, %c0_19, %c0_20] : memref<1x16x16x128xbf16, #tpu.memory_space<vmem>>, vector<1x1x16x128xbf16>
    %15 = vector.shape_cast %14 : vector<1x1x16x128xbf16> to vector<16x128xbf16>
    %c91 = arith.constant 91 : index
    %c0_21 = arith.constant 0 : index
    %16 = vector.load %arg8[%c91, %c0_21] : memref<336x128xbf16, #tpu.memory_space<vmem>>, vector<16x128xbf16>
    tpu.vector_store %arg8[%c91, %c0_21], %15 {strides = array<i32>} : memref<336x128xbf16, #tpu.memory_space<vmem>>, vector<16x128xbf16>,
    %c0_22 = arith.constant 0 : index
    %c5 = arith.constant 5 : index
    %c0_23 = arith.constant 0 : index
    %c0_24 = arith.constant 0 : index
    %17 = vector.load %arg1[%c0_22, %c5, %c0_23, %c0_24] : memref<1x16x16x128xbf16, #tpu.memory_space<vmem>>, vector<1x1x16x128xbf16>
    %18 = vector.shape_cast %17 : vector<1x1x16x128xbf16> to vector<16x128xbf16>
    %c109 = arith.constant 109 : index
    %c0_25 = arith.constant 0 : index
    %19 = vector.load %arg8[%c109, %c0_25] : memref<336x128xbf16, #tpu.memory_space<vmem>>, vector<16x128xbf16>
    tpu.vector_store %arg8[%c109, %c0_25], %18 {strides = array<i32>} : memref<336x128xbf16, #tpu.memory_space<vmem>>, vector<16x128xbf16>,
    %c0_26 = arith.constant 0 : index
    %c6 = arith.constant 6 : index
    %c0_27 = arith.constant 0 : index
    %c0_28 = arith.constant 0 : index
    %20 = vector.load %arg1[%c0_26, %c6, %c0_27, %c0_28] : memref<1x16x16x128xbf16, #tpu.memory_space<vmem>>, vector<1x1x16x128xbf16>
    %21 = vector.shape_cast %20 : vector<1x1x16x128xbf16> to vector<16x128xbf16>
    %c127 = arith.constant 127 : index
    %c0_29 = arith.constant 0 : index
    %22 = vector.load %arg8[%c127, %c0_29] : memref<336x128xbf16, #tpu.memory_space<vmem>>, vector<16x128xbf16>
    tpu.vector_store %arg8[%c127, %c0_29], %21 {strides = array<i32>} : memref<336x128xbf16, #tpu.memory_space<vmem>>, vector<16x128xbf16>,
    %c0_30 = arith.constant 0 : index
    %c7 = arith.constant 7 : index
    %c0_31 = arith.constant 0 : index
    %c0_32 = arith.constant 0 : index
    %23 = vector.load %arg1[%c0_30, %c7, %c0_31, %c0_32] : memref<1x16x16x128xbf16, #tpu.memory_space<vmem>>, vector<1x1x16x128xbf16>
    %24 = vector.shape_cast %23 : vector<1x1x16x128xbf16> to vector<16x128xbf16>
    %c145 = arith.constant 145 : index
    %c0_33 = arith.constant 0 : index
    %25 = vector.load %arg8[%c145, %c0_33] : memref<336x128xbf16, #tpu.memory_space<vmem>>, vector<16x128xbf16>
    tpu.vector_store %arg8[%c145, %c0_33], %24 {strides = array<i32>} : memref<336x128xbf16, #tpu.memory_space<vmem>>, vector<16x128xbf16>,
    %c0_34 = arith.constant 0 : index
    %c8 = arith.constant 8 : index
    %c0_35 = arith.constant 0 : index
    %c0_36 = arith.constant 0 : index
    %26 = vector.load %arg1[%c0_34, %c8, %c0_35, %c0_36] : memref<1x16x16x128xbf16, #tpu.memory_space<vmem>>, vector<1x1x16x128xbf16>
    %27 = vector.shape_cast %26 : vector<1x1x16x128xbf16> to vector<16x128xbf16>
    %c163 = arith.constant 163 : index
    %c0_37 = arith.constant 0 : index
    %28 = vector.load %arg8[%c163, %c0_37] : memref<336x128xbf16, #tpu.memory_space<vmem>>, vector<16x128xbf16>
    tpu.vector_store %arg8[%c163, %c0_37], %27 {strides = array<i32>} : memref<336x128xbf16, #tpu.memory_space<vmem>>, vector<16x128xbf16>,
    %c0_38 = arith.constant 0 : index
    %c9 = arith.constant 9 : index
    %c0_39 = arith.constant 0 : index
    %c0_40 = arith.constant 0 : index
    %29 = vector.load %arg1[%c0_38, %c9, %c0_39, %c0_40] : memref<1x16x16x128xbf16, #tpu.memory_space<vmem>>, vector<1x1x16x128xbf16>
    %30 = vector.shape_cast %29 : vector<1x1x16x128xbf16> to vector<16x128xbf16>
    %c181 = arith.constant 181 : index
    %c0_41 = arith.constant 0 : index
    %31 = vector.load %arg8[%c181, %c0_41] : memref<336x128xbf16, #tpu.memory_space<vmem>>, vector<16x128xbf16>
    tpu.vector_store %arg8[%c181, %c0_41], %30 {strides = array<i32>} : memref<336x128xbf16, #tpu.memory_space<vmem>>, vector<16x128xbf16>,
    %c0_42 = arith.constant 0 : index
    %c10 = arith.constant 10 : index
    %c0_43 = arith.constant 0 : index
    %c0_44 = arith.constant 0 : index
    %32 = vector.load %arg1[%c0_42, %c10, %c0_43, %c0_44] : memref<1x16x16x128xbf16, #tpu.memory_space<vmem>>, vector<1x1x16x128xbf16>
    %33 = vector.shape_cast %32 : vector<1x1x16x128xbf16> to vector<16x128xbf16>
    %c199 = arith.constant 199 : index
    %c0_45 = arith.constant 0 : index
    %34 = vector.load %arg8[%c199, %c0_45] : memref<336x128xbf16, #tpu.memory_space<vmem>>, vector<16x128xbf16>
    tpu.vector_store %arg8[%c199, %c0_45], %33 {strides = array<i32>} : memref<336x128xbf16, #tpu.memory_space<vmem>>, vector<16x128xbf16>,
    %c0_46 = arith.constant 0 : index
    %c11 = arith.constant 11 : index
    %c0_47 = arith.constant 0 : index
    %c0_48 = arith.constant 0 : index
    %35 = vector.load %arg1[%c0_46, %c11, %c0_47, %c0_48] : memref<1x16x16x128xbf16, #tpu.memory_space<vmem>>, vector<1x1x16x128xbf16>
    %36 = vector.shape_cast %35 : vector<1x1x16x128xbf16> to vector<16x128xbf16>
    %c217 = arith.constant 217 : index
    %c0_49 = arith.constant 0 : index
    %37 = vector.load %arg8[%c217, %c0_49] : memref<336x128xbf16, #tpu.memory_space<vmem>>, vector<16x128xbf16>
    tpu.vector_store %arg8[%c217, %c0_49], %36 {strides = array<i32>} : memref<336x128xbf16, #tpu.memory_space<vmem>>, vector<16x128xbf16>,
    %c0_50 = arith.constant 0 : index
    %c12 = arith.constant 12 : index
    %c0_51 = arith.constant 0 : index
    %c0_52 = arith.constant 0 : index
    %38 = vector.load %arg1[%c0_50, %c12, %c0_51, %c0_52] : memref<1x16x16x128xbf16, #tpu.memory_space<vmem>>, vector<1x1x16x128xbf16>
    %39 = vector.shape_cast %38 : vector<1x1x16x128xbf16> to vector<16x128xbf16>
    %c235 = arith.constant 235 : index
    %c0_53 = arith.constant 0 : index
    %40 = vector.load %arg8[%c235, %c0_53] : memref<336x128xbf16, #tpu.memory_space<vmem>>, vector<16x128xbf16>
    tpu.vector_store %arg8[%c235, %c0_53], %39 {strides = array<i32>} : memref<336x128xbf16, #tpu.memory_space<vmem>>, vector<16x128xbf16>,
    %c0_54 = arith.constant 0 : index
    %c13 = arith.constant 13 : index
    %c0_55 = arith.constant 0 : index
    %c0_56 = arith.constant 0 : index
    %41 = vector.load %arg1[%c0_54, %c13, %c0_55, %c0_56] : memref<1x16x16x128xbf16, #tpu.memory_space<vmem>>, vector<1x1x16x128xbf16>
    %42 = vector.shape_cast %41 : vector<1x1x16x128xbf16> to vector<16x128xbf16>
    %c253 = arith.constant 253 : index
    %c0_57 = arith.constant 0 : index
    %43 = vector.load %arg8[%c253, %c0_57] : memref<336x128xbf16, #tpu.memory_space<vmem>>, vector<16x128xbf16>
    tpu.vector_store %arg8[%c253, %c0_57], %42 {strides = array<i32>} : memref<336x128xbf16, #tpu.memory_space<vmem>>, vector<16x128xbf16>,
    %c0_58 = arith.constant 0 : index
    %c14 = arith.constant 14 : index
    %c0_59 = arith.constant 0 : index
    %c0_60 = arith.constant 0 : index
    %44 = vector.load %arg1[%c0_58, %c14, %c0_59, %c0_60] : memref<1x16x16x128xbf16, #tpu.memory_space<vmem>>, vector<1x1x16x128xbf16>
    %45 = vector.shape_cast %44 : vector<1x1x16x128xbf16> to vector<16x128xbf16>
    %c271 = arith.constant 271 : index
    %c0_61 = arith.constant 0 : index
    %46 = vector.load %arg8[%c271, %c0_61] : memref<336x128xbf16, #tpu.memory_space<vmem>>, vector<16x128xbf16>
    tpu.vector_store %arg8[%c271, %c0_61], %45 {strides = array<i32>} : memref<336x128xbf16, #tpu.memory_space<vmem>>, vector<16x128xbf16>,
    %c0_62 = arith.constant 0 : index
    %c15 = arith.constant 15 : index
    %c0_63 = arith.constant 0 : index
    %c0_64 = arith.constant 0 : index
    %47 = vector.load %arg1[%c0_62, %c15, %c0_63, %c0_64] : memref<1x16x16x128xbf16, #tpu.memory_space<vmem>>, vector<1x1x16x128xbf16>
    %48 = vector.shape_cast %47 : vector<1x1x16x128xbf16> to vector<16x128xbf16>
    %c289 = arith.constant 289 : index
    %c0_65 = arith.constant 0 : index
    %49 = vector.load %arg8[%c289, %c0_65] : memref<336x128xbf16, #tpu.memory_space<vmem>>, vector<16x128xbf16>
    tpu.vector_store %arg8[%c289, %c0_65], %48 {strides = array<i32>} : memref<336x128xbf16, #tpu.memory_space<vmem>>, vector<16x128xbf16>,
    %cst_66 = arith.constant 0.000000e+00 : f32
    %50 = vector.broadcast %cst_66 : f32 to vector<288x128xf32>
    %c0_67 = arith.constant 0 : index
    %c0_68 = arith.constant 0 : index
    %51 = vector.load %arg8[%c0_67, %c0_68] : memref<336x128xbf16, #tpu.memory_space<vmem>>, vector<288x128xbf16>
    %c0_69 = arith.constant 0 : index
    %c0_70 = arith.constant 0 : index
    %c0_71 = arith.constant 0 : index
    %52 = vector.load %arg3[%c0_69, %c0_70, %c0_71] : memref<9x128x128xbf16, #tpu.memory_space<vmem>>, vector<1x128x128xbf16>
    %53 = vector.shape_cast %52 : vector<1x128x128xbf16> to vector<128x128xbf16>
    %cst_72 = arith.constant dense<0.000000e+00> : vector<288x128xf32>
    %54 = tpu.matmul %51, %53, %cst_72 {dimension_numbers = #tpu.dot_dimension_numbers<[1], [0], [0], [1], [0, 0, 1, 1], [], []>} : vector<288x128xbf16>, vector<128x128xbf16>, vector<288x128xf32> -> vector<288x128xf32>
    %55 = arith.addf %50, %54 : vector<288x128xf32>
    %c1_73 = arith.constant 1 : index
    %c0_74 = arith.constant 0 : index
    %56 = vector.load %arg8[%c1_73, %c0_74] : memref<336x128xbf16, #tpu.memory_space<vmem>>, vector<288x128xbf16>
    %c1_75 = arith.constant 1 : index
    %c0_76 = arith.constant 0 : index
    %c0_77 = arith.constant 0 : index
    %57 = vector.load %arg3[%c1_75, %c0_76, %c0_77] : memref<9x128x128xbf16, #tpu.memory_space<vmem>>, vector<1x128x128xbf16>
    %58 = vector.shape_cast %57 : vector<1x128x128xbf16> to vector<128x128xbf16>
    %cst_78 = arith.constant dense<0.000000e+00> : vector<288x128xf32>
    %59 = tpu.matmul %56, %58, %cst_78 {dimension_numbers = #tpu.dot_dimension_numbers<[1], [0], [0], [1], [0, 0, 1, 1], [], []>} : vector<288x128xbf16>, vector<128x128xbf16>, vector<288x128xf32> -> vector<288x128xf32>
    %60 = arith.addf %55, %59 : vector<288x128xf32>
    %c2_79 = arith.constant 2 : index
    %c0_80 = arith.constant 0 : index
    %61 = vector.load %arg8[%c2_79, %c0_80] : memref<336x128xbf16, #tpu.memory_space<vmem>>, vector<288x128xbf16>
    %c2_81 = arith.constant 2 : index
    %c0_82 = arith.constant 0 : index
    %c0_83 = arith.constant 0 : index
    %62 = vector.load %arg3[%c2_81, %c0_82, %c0_83] : memref<9x128x128xbf16, #tpu.memory_space<vmem>>, vector<1x128x128xbf16>
    %63 = vector.shape_cast %62 : vector<1x128x128xbf16> to vector<128x128xbf16>
    %cst_84 = arith.constant dense<0.000000e+00> : vector<288x128xf32>
    %64 = tpu.matmul %61, %63, %cst_84 {dimension_numbers = #tpu.dot_dimension_numbers<[1], [0], [0], [1], [0, 0, 1, 1], [], []>} : vector<288x128xbf16>, vector<128x128xbf16>, vector<288x128xf32> -> vector<288x128xf32>
    %65 = arith.addf %60, %64 : vector<288x128xf32>
    %c18 = arith.constant 18 : index
    %c0_85 = arith.constant 0 : index
    %66 = vector.load %arg8[%c18, %c0_85] : memref<336x128xbf16, #tpu.memory_space<vmem>>, vector<288x128xbf16>
    %c3_86 = arith.constant 3 : index
    %c0_87 = arith.constant 0 : index
    %c0_88 = arith.constant 0 : index
    %67 = vector.load %arg3[%c3_86, %c0_87, %c0_88] : memref<9x128x128xbf16, #tpu.memory_space<vmem>>, vector<1x128x128xbf16>
    %68 = vector.shape_cast %67 : vector<1x128x128xbf16> to vector<128x128xbf16>
    %cst_89 = arith.constant dense<0.000000e+00> : vector<288x128xf32>
    %69 = tpu.matmul %66, %68, %cst_89 {dimension_numbers = #tpu.dot_dimension_numbers<[1], [0], [0], [1], [0, 0, 1, 1], [], []>} : vector<288x128xbf16>, vector<128x128xbf16>, vector<288x128xf32> -> vector<288x128xf32>
    %70 = arith.addf %65, %69 : vector<288x128xf32>
    %c19_90 = arith.constant 19 : index
    %c0_91 = arith.constant 0 : index
    %71 = vector.load %arg8[%c19_90, %c0_91] : memref<336x128xbf16, #tpu.memory_space<vmem>>, vector<288x128xbf16>
    %c4_92 = arith.constant 4 : index
    %c0_93 = arith.constant 0 : index
    %c0_94 = arith.constant 0 : index
    %72 = vector.load %arg3[%c4_92, %c0_93, %c0_94] : memref<9x128x128xbf16, #tpu.memory_space<vmem>>, vector<1x128x128xbf16>
    %73 = vector.shape_cast %72 : vector<1x128x128xbf16> to vector<128x128xbf16>
    %cst_95 = arith.constant dense<0.000000e+00> : vector<288x128xf32>
    %74 = tpu.matmul %71, %73, %cst_95 {dimension_numbers = #tpu.dot_dimension_numbers<[1], [0], [0], [1], [0, 0, 1, 1], [], []>} : vector<288x128xbf16>, vector<128x128xbf16>, vector<288x128xf32> -> vector<288x128xf32>
    %75 = arith.addf %70, %74 : vector<288x128xf32>
    %c20 = arith.constant 20 : index
    %c0_96 = arith.constant 0 : index
    %76 = vector.load %arg8[%c20, %c0_96] : memref<336x128xbf16, #tpu.memory_space<vmem>>, vector<288x128xbf16>
    %c5_97 = arith.constant 5 : index
    %c0_98 = arith.constant 0 : index
    %c0_99 = arith.constant 0 : index
    %77 = vector.load %arg3[%c5_97, %c0_98, %c0_99] : memref<9x128x128xbf16, #tpu.memory_space<vmem>>, vector<1x128x128xbf16>
    %78 = vector.shape_cast %77 : vector<1x128x128xbf16> to vector<128x128xbf16>
    %cst_100 = arith.constant dense<0.000000e+00> : vector<288x128xf32>
    %79 = tpu.matmul %76, %78, %cst_100 {dimension_numbers = #tpu.dot_dimension_numbers<[1], [0], [0], [1], [0, 0, 1, 1], [], []>} : vector<288x128xbf16>, vector<128x128xbf16>, vector<288x128xf32> -> vector<288x128xf32>
    %80 = arith.addf %75, %79 : vector<288x128xf32>
    %c36 = arith.constant 36 : index
    %c0_101 = arith.constant 0 : index
    %81 = vector.load %arg8[%c36, %c0_101] : memref<336x128xbf16, #tpu.memory_space<vmem>>, vector<288x128xbf16>
    %c6_102 = arith.constant 6 : index
    %c0_103 = arith.constant 0 : index
    %c0_104 = arith.constant 0 : index
    %82 = vector.load %arg3[%c6_102, %c0_103, %c0_104] : memref<9x128x128xbf16, #tpu.memory_space<vmem>>, vector<1x128x128xbf16>
    %83 = vector.shape_cast %82 : vector<1x128x128xbf16> to vector<128x128xbf16>
    %cst_105 = arith.constant dense<0.000000e+00> : vector<288x128xf32>
    %84 = tpu.matmul %81, %83, %cst_105 {dimension_numbers = #tpu.dot_dimension_numbers<[1], [0], [0], [1], [0, 0, 1, 1], [], []>} : vector<288x128xbf16>, vector<128x128xbf16>, vector<288x128xf32> -> vector<288x128xf32>
    %85 = arith.addf %80, %84 : vector<288x128xf32>
    %c37_106 = arith.constant 37 : index
    %c0_107 = arith.constant 0 : index
    %86 = vector.load %arg8[%c37_106, %c0_107] : memref<336x128xbf16, #tpu.memory_space<vmem>>, vector<288x128xbf16>
    %c7_108 = arith.constant 7 : index
    %c0_109 = arith.constant 0 : index
    %c0_110 = arith.constant 0 : index
    %87 = vector.load %arg3[%c7_108, %c0_109, %c0_110] : memref<9x128x128xbf16, #tpu.memory_space<vmem>>, vector<1x128x128xbf16>
    %88 = vector.shape_cast %87 : vector<1x128x128xbf16> to vector<128x128xbf16>
    %cst_111 = arith.constant dense<0.000000e+00> : vector<288x128xf32>
    %89 = tpu.matmul %86, %88, %cst_111 {dimension_numbers = #tpu.dot_dimension_numbers<[1], [0], [0], [1], [0, 0, 1, 1], [], []>} : vector<288x128xbf16>, vector<128x128xbf16>, vector<288x128xf32> -> vector<288x128xf32>
    %90 = arith.addf %85, %89 : vector<288x128xf32>
    %c38 = arith.constant 38 : index
    %c0_112 = arith.constant 0 : index
    %91 = vector.load %arg8[%c38, %c0_112] : memref<336x128xbf16, #tpu.memory_space<vmem>>, vector<288x128xbf16>
    %c8_113 = arith.constant 8 : index
    %c0_114 = arith.constant 0 : index
    %c0_115 = arith.constant 0 : index
    %92 = vector.load %arg3[%c8_113, %c0_114, %c0_115] : memref<9x128x128xbf16, #tpu.memory_space<vmem>>, vector<1x128x128xbf16>
    %93 = vector.shape_cast %92 : vector<1x128x128xbf16> to vector<128x128xbf16>
    %cst_116 = arith.constant dense<0.000000e+00> : vector<288x128xf32>
    %94 = tpu.matmul %91, %93, %cst_116 {dimension_numbers = #tpu.dot_dimension_numbers<[1], [0], [0], [1], [0, 0, 1, 1], [], []>} : vector<288x128xbf16>, vector<128x128xbf16>, vector<288x128xf32> -> vector<288x128xf32>
    %95 = arith.addf %90, %94 : vector<288x128xf32>
    %c0_117 = arith.constant 0 : index
    %c0_118 = arith.constant 0 : index
    %96 = vector.load %arg4[%c0_117, %c0_118] : memref<1x128xf32, #tpu.memory_space<vmem>>, vector<1x128xf32>
    %97 = vector.broadcast %96 : vector<1x128xf32> to vector<288x128xf32>
    %98 = arith.mulf %95, %97 : vector<288x128xf32>
    %c0_119 = arith.constant 0 : index
    %c0_120 = arith.constant 0 : index
    %99 = vector.load %arg5[%c0_119, %c0_120] : memref<1x128xf32, #tpu.memory_space<vmem>>, vector<1x128xf32>
    %100 = vector.broadcast %99 : vector<1x128xf32> to vector<288x128xf32>
    %101 = arith.addf %98, %100 : vector<288x128xf32>
    %cst_121 = arith.constant 0.000000e+00 : f32
    %102 = vector.broadcast %cst_121 : f32 to vector<288x128xf32>
    %103 = arith.maximumf %101, %102 : vector<288x128xf32>
    %104 = arith.truncf %103 : vector<288x128xf32> to vector<288x128xbf16>
    %c0_122 = arith.constant 0 : index
    %c0_123 = arith.constant 0 : index
    %105 = vector.load %arg6[%c0_122, %c0_123] : memref<128x128xbf16, #tpu.memory_space<vmem>>, vector<128x128xbf16>
    %cst_124 = arith.constant dense<0.000000e+00> : vector<288x128xf32>
    %106 = tpu.matmul %104, %105, %cst_124 {dimension_numbers = #tpu.dot_dimension_numbers<[1], [0], [0], [1], [0, 0, 1, 1], [], []>} : vector<288x128xbf16>, vector<128x128xbf16>, vector<288x128xf32> -> vector<288x128xf32>
    %107 = vector.shape_cast %106 : vector<288x128xf32> to vector<16x18x128xf32>
    %108 = vector.extract_strided_slice %107 {offsets = [0, 0, 0], sizes = [16, 16, 128], strides = [1, 1, 1]} : vector<16x18x128xf32> to vector<16x16x128xf32>
    %c0_125 = arith.constant 0 : index
    %c0_126 = arith.constant 0 : index
    %c0_127 = arith.constant 0 : index
    %c0_128 = arith.constant 0 : index
    %109 = vector.load %arg2[%c0_125, %c0_126, %c0_127, %c0_128] : memref<1x16x16x128xbf16, #tpu.memory_space<vmem>>, vector<1x16x16x128xbf16>
    %110 = vector.shape_cast %109 : vector<1x16x16x128xbf16> to vector<16x16x128xbf16>
    %111 = arith.extf %110 : vector<16x16x128xbf16> to vector<16x16x128xf32>
    %112 = arith.addf %108, %111 : vector<16x16x128xf32>
    %113 = vector.shape_cast %112 : vector<16x16x128xf32> to vector<1x16x16x128xf32>
    %c0_129 = arith.constant 0 : index
    %c0_130 = arith.constant 0 : index
    %c0_131 = arith.constant 0 : index
    %c0_132 = arith.constant 0 : index
    %114 = vector.load %arg7[%c0_129, %c0_130, %c0_131, %c0_132] : memref<1x16x16x128xf32, #tpu.memory_space<vmem>>, vector<1x16x16x128xf32>
    tpu.vector_store %arg7[%c0_129, %c0_130, %c0_131, %c0_132], %113 {strides = array<i32>} : memref<1x16x16x128xf32, #tpu.memory_space<vmem>>, vector<1x16x16x128xf32>,
    return
  }
  func.func @transform_0(%arg0: i32) -> (i32, i32, i32, i32) {
    %c0_i32 = arith.constant 0 : i32
    %c0_i32_0 = arith.constant 0 : i32
    %c0_i32_1 = arith.constant 0 : i32
    %c0_i32_2 = arith.constant 0 : i32
    return %arg0, %c0_i32, %c0_i32_0, %c0_i32_1 : i32, i32, i32, i32
  }
  func.func @transform_1(%arg0: i32) -> (i32, i32, i32, i32) {
    %c0_i32 = arith.constant 0 : i32
    %c0_i32_0 = arith.constant 0 : i32
    %c0_i32_1 = arith.constant 0 : i32
    %c0_i32_2 = arith.constant 0 : i32
    return %arg0, %c0_i32, %c0_i32_0, %c0_i32_1 : i32, i32, i32, i32
  }
  func.func @transform_2(%arg0: i32) -> (i32, i32, i32) {
    %c0_i32 = arith.constant 0 : i32
    %c0_i32_0 = arith.constant 0 : i32
    %c0_i32_1 = arith.constant 0 : i32
    %c0_i32_2 = arith.constant 0 : i32
    return %c0_i32, %c0_i32_0, %c0_i32_1 : i32, i32, i32
  }
  func.func @transform_3(%arg0: i32) -> (i32, i32) {
    %c0_i32 = arith.constant 0 : i32
    %c0_i32_0 = arith.constant 0 : i32
    %c0_i32_1 = arith.constant 0 : i32
    return %c0_i32, %c0_i32_0 : i32, i32
  }
  func.func @transform_4(%arg0: i32) -> (i32, i32) {
    %c0_i32 = arith.constant 0 : i32
    %c0_i32_0 = arith.constant 0 : i32
    %c0_i32_1 = arith.constant 0 : i32
    return %c0_i32, %c0_i32_0 : i32, i32
  }
  func.func @transform_5(%arg0: i32) -> (i32, i32) {
    %c0_i32 = arith.constant 0 : i32
    %c0_i32_0 = arith.constant 0 : i32
    %c0_i32_1 = arith.constant 0 : i32
    return %c0_i32, %c0_i32_0 : i32, i32
  }
  func.func @transform_6(%arg0: i32) -> (i32, i32, i32, i32) {
    %c0_i32 = arith.constant 0 : i32
    %c0_i32_0 = arith.constant 0 : i32
    %c0_i32_1 = arith.constant 0 : i32
    %c0_i32_2 = arith.constant 0 : i32
    return %arg0, %c0_i32, %c0_i32_0, %c0_i32_1 : i32, i32, i32, i32
  }
}

</mosaic_0001>

<bundles_post_ra>
// kernel: pappm_forward.2
= control target key start
LH: loop header
LB: loop body
LE: loop exit
PB: predicated region body
PF: predicated region fallthrough
CT: control target
= control target key end

     0   :  { %s3059_s29 = smov 0   ;;  %s3821_s0 = inlined_call_operand.vmem [shape: bf16[512,16], index: 0, kind: input, shape index: {}]   ;;  %s3822_s1 = inlined_call_operand.vmem [shape: bf16[512,128], index: 1, kind: input, shape index: {}]   ;;  %s3823_s2 = inlined_call_operand.vmem [shape: f32[1,16], index: 2, kind: input, shape index: {}]   ;;  %s3824_s3 = inlined_call_operand.vmem [shape: f32[1,16], index: 3, kind: input, shape index: {}]   ;;  %s3825_s4 = inlined_call_operand.vmem [shape: bf16[16,128], index: 4, kind: input, shape index: {}]   ;;  %s3826_s5 = inlined_call_operand.vmem [shape: f32[1,128], index: 5, kind: input, shape index: {}]   ;;  %s3827_s6 = inlined_call_operand.vmem [shape: f32[1,128], index: 6, kind: input, shape index: {}]   ;;  %s3828_s7 = inlined_call_operand.vmem [shape: f32[1,16], index: 7, kind: input, shape index: {}]   ;;  %s3829_s8 = inlined_call_operand.vmem [shape: f32[1,16], index: 8, kind: input, shape index: {}]   ;;  %s3830_s9 = inlined_call_operand.vmem [shape: bf16[16,128], index: 9, kind: input, shape index: {}]   ;;  %s3831_s10 = inlined_call_operand.vmem [shape: f32[1,8], index: 10, kind: input, shape index: {}]   ;;  %s3832_s11 = inlined_call_operand.vmem [shape: f32[1,8], index: 11, kind: input, shape index: {}]   ;;  %s3833_s12 = inlined_call_operand.vmem [shape: bf16[8,128], index: 12, kind: input, shape index: {}]   ;;  %s3834_s13 = inlined_call_operand.vmem [shape: bf16[512,128], index: 13, kind: output, shape index: {0}]   ;;  %s3835_s14 = inlined_call_operand.vmem [shape: bf16[512,128], index: 14, kind: output, shape index: {1}]  }
   0x1 LB: > { %s2228_s30 = sadd.s32 4294967295, %s2982_s29   ;;  %p2232_p0 = scmp.ge.s32.totalorder %s2982_s29, 1  ;;  %s2982_s29 = sphi %s3059_s29, %s25_s29  }
   0x2   : > { %p427_p1 = scmp.lt.s32.totalorder %s2982_s29, 3 }
   0x4   : > { %p428_p2 = pnand %p2232_p0, %p427_p1 }
   0x5   : > { %v2974_v0 = vld [vmem:[%s3825_s4] sm:$0xff] (!%p428_p2)   ;;  %s2233_s17 = sshll.u32 (!%p428_p2), %s2228_s30, 5  ;;  %vm706_vm0 = vcmask (!%p428_p2), 130048   ;;  %vm1586_vm1 = vcmask (!%p428_p2), 1043456   ;;  %vm1537_vm2 = vcmask (!%p428_p2), 64512  }
   0x6   : > { %431 = sbr.rel (%p428_p2) target bundleno = 601 (0x259), region = 72  ;;  %p484_p3 = scmp.lt.s32.totalorder (!%p428_p2), %s2233_s17, 63  ;;  %2828 = vmatprep.subr.bf16.mxu0 (!%p428_p2), %v2974_v0  ;;  %v3081_v1 = vld [vmem:[%s3823_s2] ss:$0 sm:$0xff] (!%p428_p2) }
   0x7   : > { %2829 = vmatpush3.bf16.msra.mxu0 (!%p428_p2), %v2974_v0  ;;  %v3102_v10 = vld [vmem:[%s3824_s3] ss:$0 sm:$0xff] (!%p428_p2) }
   0xd   : > { %s3904_s17 = smov (!%p484_p3, %s2233_s17), 63 }
   0xe   : > { %s3070_s18 = sshll.u32 %s3904_s17, 2 }
   0xf   : > { %s3076_s21 = scalar_lea.vmem %s3821_s0, %s3070_s18  ;;  %s3355_s22 = scalar_lea.vmem %s3822_s1, %s3070_s18 }
  0x10   : > { %v3084_v2 = vld [vmem:[%s3076_s21] sm:$0xff]   ;;  %v3087_v3 = vld [vmem:[%s3076_s21 + $0x8] sm:$0xff]   ;;  %v3090_v4 = vld [vmem:[%s3076_s21 + $0x10] sm:$0xff]   ;;  %s3449_s19 = scalar_lea.vmem %s3834_s13, %s3070_s18 }
  0x11   : > { %v2431_v5 = vunpack.c.l.bf16 %v3084_v2  ;;  %v2432_v6 = vunpack.c.h.bf16 %v3084_v2  ;;  %v2435_v7 = vunpack.c.l.bf16 %v3087_v3  ;;  %v2436_v8 = vunpack.c.h.bf16 %v3087_v3  ;;  %v3097_v9 = vld [vmem:[%s3076_s21 + $0x18] sm:$0xff]   ;;  %v3133_v29 = vld [vmem:[%s3076_s21 + $0x20] sm:$0xff]   ;;  %v3136_v32 = vld [vmem:[%s3076_s21 + $0x28] sm:$0xff]  }
  0x12   : > { %v3863_v11 = vunpack.c.l.bf16 %v3090_v4  ;;  %v3862_v12 = vunpack.c.h.bf16 %v3090_v4  ;;  %v3861_v17 = vunpack.c.l.bf16 %v3097_v9  ;;  %v3860_v24 = vunpack.c.h.bf16 %v3097_v9  ;;  %v3142_v37 = vld [vmem:[%s3076_s21 + $0x30] sm:$0xff]   ;;  %v3171_v54 = vld [vmem:[%s3076_s21 + $0x38] sm:$0xff]   ;;  %v3184_v62 = vld [vmem:[%s3076_s21 + $0x40] sm:$0xff]  }
  0x13   : > { %v579_v13 = vmul.f32 %v2431_v5, %v3081_v1  ;;  %v580_v14 = vmul.f32 %v2432_v6, %v3081_v1  ;;  %v581_v15 = vmul.f32 %v2435_v7, %v3081_v1  ;;  %v582_v16 = vmul.f32 %v2436_v8, %v3081_v1  ;;  %v2732_v2 = vld [vmem:[%s3355_s22 + $0x8] sm:$0xff]  }
  0x14   : > { %v583_v20 = vmul.f32 %v3863_v11, %v3081_v1  ;;  %v584_v21 = vmul.f32 %v3862_v12, %v3081_v1  ;;  %v585_v36 = vmul.f32 %v3861_v17, %v3081_v1  ;;  %v586_v39 = vmul.f32 %v3860_v24, %v3081_v1 }
  0x15   : > { %v618_v18 = vadd.f32 %v3102_v10, %v579_v13  ;;  %v619_v19 = vadd.f32 %v3102_v10, %v580_v14  ;;  %v620_v22 = vadd.f32 %v3102_v10, %v581_v15  ;;  %v621_v23 = vadd.f32 %v3102_v10, %v582_v16 }
  0x16   : > { %v622_v27 = vadd.f32 %v3102_v10, %v583_v20  ;;  %v623_v28 = vadd.f32 %v3102_v10, %v584_v21  ;;  %v3859_v40 = vunpack.c.l.bf16 %v3133_v29  ;;  %v3858_v41 = vunpack.c.h.bf16 %v3133_v29 }
  0x17   : > { %v650_v25 = vmax.f32 %v618_v18, 0.0  ;;  %v651_v26 = vmax.f32 %v619_v19, 0.0  ;;  %v652_v30 = vmax.f32 %v620_v22, 0.0  ;;  %v653_v31 = vmax.f32 %v621_v23, 0.0 }
  0x18   : > { %v654_v34 = vmax.f32 %v622_v27, 0.0  ;;  %v655_v35 = vmax.f32 %v623_v28, 0.0  ;;  %v624_v43 = vadd.f32 %v3102_v10, %v585_v36  ;;  %v3857_v44 = vunpack.c.l.bf16 %v3136_v32  ;;  %v3200_v27 = vld [vmem:[%s3076_s21 + $0x48] sm:$0xff]  }
  0x19   : > { %v682_v33 = vpack.c.bf16 %v651_v26, %v650_v25  ;;  %v683_v38 = vpack.c.bf16 %v653_v31, %v652_v30  ;;  %v3856_v45 = vunpack.c.h.bf16 %v3136_v32  ;;  %v625_v46 = vadd.f32 %v3102_v10, %v586_v39 }
  0x1a   : > { %v684_v42 = vpack.c.bf16 %v655_v35, %v654_v34  ;;  %v587_v47 = vmul.f32 %v3859_v40, %v3081_v1  ;;  %v588_v48 = vmul.f32 %v3858_v41, %v3081_v1  ;;  %v3855_v49 = vunpack.c.l.bf16 %v3142_v37  ;;  %v3210_v34 = vld [vmem:[%s3076_s21 + $0x50] sm:$0xff]  }
  0x1b   : > { %2830 = vmatprep.mubr.msk.bf16.mxu0 %vm706_vm0, %v682_v33  ;;  %v656_v50 = vmax.f32 %v624_v43, 0.0  ;;  %v589_v51 = vmul.f32 %v3857_v44, %v3081_v1  ;;  %v590_v52 = vmul.f32 %v3856_v45, %v3081_v1  ;;  %v3854_v53 = vunpack.c.h.bf16 %v3142_v37 }
  0x1c   : > { %2831 = vmatmul.mubr.msk.bf16.vlgmr.msra.gmra.mrb[0].mxu0 %vm706_vm0, %v683_v38  ;;  %v657_v55 = vmax.f32 %v625_v46, 0.0  ;;  %v626_v56 = vadd.f32 %v3102_v10, %v587_v47  ;;  %v627_v57 = vadd.f32 %v3102_v10, %v588_v48  ;;  %v591_v58 = vmul.f32 %v3855_v49, %v3081_v1 }
  0x1d   : > { %2834 = vmatprep.mubr.msk.bf16.mxu0 %vm706_vm0, %v684_v42  ;;  %v628_v59 = vadd.f32 %v3102_v10, %v589_v51  ;;  %v629_v60 = vadd.f32 %v3102_v10, %v590_v52  ;;  %v592_v61 = vmul.f32 %v3854_v53, %v3081_v1  ;;  %v3853_v14 = vunpack.c.l.bf16 %v3171_v54  ;;  %v3420_v53 = vld [vmem:[%s3827_s6] ss:$0 sm:$0xff] }
  0x1e   : > { %v685_v63 = vpack.c.bf16 %v657_v55, %v656_v50  ;;  %v658_v0 = vmax.f32 %v626_v56, 0.0  ;;  %v659_v13 = vmax.f32 %v627_v57, 0.0  ;;  %v630_v15 = vadd.f32 %v3102_v10, %v591_v58 }
  0x1f   : > { %v631_v16 = vadd.f32 %v3102_v10, %v592_v61  ;;  %v3852_v18 = vunpack.c.h.bf16 %v3171_v54  ;;  %v3851_v20 = vunpack.c.l.bf16 %v3184_v62  ;;  %v3850_v21 = vunpack.c.h.bf16 %v3184_v62  ;;  %v3235_v61 = vld [vmem:[%s3076_s21 + $0x58] sm:$0xff]  }
  0x20   : > { %v686_v19 = vpack.c.bf16 %v659_v13, %v658_v0  ;;  %v660_v22 = vmax.f32 %v628_v59, 0.0  ;;  %v661_v23 = vmax.f32 %v629_v60, 0.0  ;;  %v593_v25 = vmul.f32 %v3853_v14, %v3081_v1 }
  0x21   : > { %v594_v26 = vmul.f32 %v3852_v18, %v3081_v1  ;;  %v662_v28 = vmax.f32 %v630_v15, 0.0  ;;  %v663_v30 = vmax.f32 %v631_v16, 0.0  ;;  %v595_v31 = vmul.f32 %v3851_v20, %v3081_v1 }
  0x22   : > { %v596_v33 = vmul.f32 %v3850_v21, %v3081_v1  ;;  %v3849_v35 = vunpack.c.l.bf16 %v3200_v27  ;;  %v3848_v36 = vunpack.c.h.bf16 %v3200_v27  ;;  %v687_v38 = vpack.c.bf16 %v661_v23, %v660_v22 }
  0x23   : > { %v632_v39 = vadd.f32 %v3102_v10, %v593_v25  ;;  %v633_v42 = vadd.f32 %v3102_v10, %v594_v26  ;;  %v3847_v43 = vunpack.c.l.bf16 %v3210_v34  ;;  %v688_v46 = vpack.c.bf16 %v663_v30, %v662_v28 }
  0x24   : > { %2835 = vmatmul.mubr.msk.bf16.gmra.mrb[4].mxu0 %vm706_vm0, %v685_v63  ;;  %v634_v47 = vadd.f32 %v3102_v10, %v595_v31  ;;  %v635_v48 = vadd.f32 %v3102_v10, %v596_v33  ;;  %v3846_v50 = vunpack.c.h.bf16 %v3210_v34  ;;  %v597_v51 = vmul.f32 %v3849_v35, %v3081_v1  ;;  %v3238_v63 = vld [vmem:[%s3076_s21 + $0x60] sm:$0xff]  }
  0x25   : > { %2838 = vmatprep.mubr.msk.bf16.mxu0 %vm706_vm0, %v686_v19  ;;  %v598_v52 = vmul.f32 %v3848_v36, %v3081_v1  ;;  %v664_v55 = vmax.f32 %v632_v39, 0.0  ;;  %v665_v56 = vmax.f32 %v633_v42, 0.0  ;;  %v599_v57 = vmul.f32 %v3847_v43, %v3081_v1  ;;  %v3256_v39 = vld [vmem:[%s3076_s21 + $0x68] sm:$0xff]  }
  0x26   : > { %v666_v58 = vmax.f32 %v634_v47, 0.0  ;;  %v667_v59 = vmax.f32 %v635_v48, 0.0  ;;  %v600_v60 = vmul.f32 %v3846_v50, %v3081_v1  ;;  %v636_v0 = vadd.f32 %v3102_v10, %v597_v51  ;;  %v3266_v51 = vld [vmem:[%s3076_s21 + $0x70] sm:$0xff]  }
  0x27   : > { %v637_v13 = vadd.f32 %v3102_v10, %v598_v52  ;;  %v689_v15 = vpack.c.bf16 %v665_v56, %v664_v55  ;;  %v638_v16 = vadd.f32 %v3102_v10, %v599_v57  ;;  %v3845_v19 = vunpack.c.l.bf16 %v3235_v61 }
  0x28   : > { %v3844_v22 = vunpack.c.h.bf16 %v3235_v61  ;;  %v690_v23 = vpack.c.bf16 %v667_v59, %v666_v58  ;;  %v639_v25 = vadd.f32 %v3102_v10, %v600_v60  ;;  %v3843_v26 = vunpack.c.l.bf16 %v3238_v63 }
  0x29   : > { %v3842_v28 = vunpack.c.h.bf16 %v3238_v63  ;;  %v668_v30 = vmax.f32 %v636_v0, 0.0  ;;  %v669_v31 = vmax.f32 %v637_v13, 0.0  ;;  %v601_v33 = vmul.f32 %v3845_v19, %v3081_v1 }
  0x2a   : > { %v670_v42 = vmax.f32 %v638_v16, 0.0  ;;  %v603_v47 = vmul.f32 %v3843_v26, %v3081_v1  ;;  %v3841_v55 = vunpack.c.l.bf16 %v3256_v39  ;;  %v3840_v58 = vunpack.c.h.bf16 %v3256_v39  ;;  %v3403_v26 = vld [vmem:[%s3826_s5] ss:$0 sm:$0xff] }
  0x2b   : > { %v604_v48 = vmul.f32 %v3842_v28, %v3081_v1  ;;  %v691_v52 = vpack.c.bf16 %v669_v31, %v668_v30  ;;  %v640_v56 = vadd.f32 %v3102_v10, %v601_v33  ;;  %v3836_v59 = vunpack.c.l.bf16 %v3266_v51 }
  0x2c   : > { %2839 = vmatmul.mubr.msk.bf16.gmra.mrb[8].mxu0 %vm706_vm0, %v687_v38  ;;  %v602_v38 = vmul.f32 %v3844_v22, %v3081_v1  ;;  %v642_v0 = vadd.f32 %v3102_v10, %v603_v47  ;;  %v605_v16 = vmul.f32 %v3841_v55, %v3081_v1  ;;  %v606_v30 = vmul.f32 %v3840_v58, %v3081_v1  ;;  %v3398_v55 = vld [vmem:[%s3355_s22 + $0x58] sm:$0xff]   ;;  %v3408_v22 = vld [vmem:[%s3832_s11] ss:$0 sm:$0xff] }
  0x2d   : > { %2842 = vmatprep.mubr.msk.bf16.mxu0 %vm706_vm0, %v688_v46  ;;  %v671_v46 = vmax.f32 %v639_v25, 0.0  ;;  %v643_v13 = vadd.f32 %v3102_v10, %v604_v48 }
  0x2e   : > { %v641_v57 = vadd.f32 %v3102_v10, %v602_v38  ;;  %v674_v31 = vmax.f32 %v642_v0, 0.0  ;;  %v607_v38 = vmul.f32 %v3836_v59, %v3081_v1  ;;  %v644_v47 = vadd.f32 %v3102_v10, %v605_v16 }
  0x2f   : > { %v692_v60 = vpack.c.bf16 %v671_v46, %v670_v42  ;;  %v675_v33 = vmax.f32 %v643_v13, 0.0  ;;  %v3291_v46 = vld [vmem:[%s3076_s21 + $0x78] sm:$0xff]  }
  0x30   : > { %v673_v25 = vmax.f32 %v641_v57, 0.0  ;;  %v3838_v57 = vunpack.c.h.bf16 %v3291_v46  ;;  %v646_v0 = vadd.f32 %v3102_v10, %v607_v38  ;;  %v676_v59 = vmax.f32 %v644_v47, 0.0 }
  0x34   : > { %2843 = vmatmul.mubr.msk.bf16.gmra.mrb[12].mxu0 %vm706_vm0, %v689_v15  ;;  %v3837_v15 = vunpack.c.h.bf16 %v3266_v51 }
  0x35   : > { %2846 = vmatprep.mubr.msk.bf16.mxu0 %vm706_vm0, %v690_v23  ;;  %v672_v23 = vmax.f32 %v640_v56, 0.0  ;;  %v3839_v56 = vunpack.c.l.bf16 %v3291_v46 }
  0x36   : > { %v608_v42 = vmul.f32 %v3837_v15, %v3081_v1 }
  0x37   : > { %v693_v48 = vpack.c.bf16 %v673_v25, %v672_v23  ;;  %v609_v16 = vmul.f32 %v3839_v56, %v3081_v1  ;;  %v610_v23 = vmul.f32 %v3838_v57, %v3081_v1  ;;  %v678_v25 = vmax.f32 %v646_v0, 0.0  ;;  %v1536_v1 = vld [vmem:[%s3833_s12] sm:$0xf] }
  0x38   : > { %v647_v13 = vadd.f32 %v3102_v10, %v608_v42  ;;  %2964 = vmatprep.subr.msk.bf16.mxu0 %vm1586_vm1, %v1536_v1  ;;  %2965 = vmatprep.subr.msk.bf16.mxu1 %vm1586_vm1, %v1536_v1 }
  0x39   : > { %v649_v38 = vadd.f32 %v3102_v10, %v610_v23 }
  0x3c   : > { %2847 = vmatmul.mubr.msk.bf16.gmra.mrb[16].mxu0 %vm706_vm0, %v691_v52  ;;  %v645_v52 = vadd.f32 %v3102_v10, %v606_v30  ;;  %v679_v30 = vmax.f32 %v647_v13, 0.0  ;;  %v3335_v13 = vld [vmem:[%s3829_s8] ss:$0 sm:$0xff] }
  0x3d   : > { %2850 = vmatprep.mubr.msk.bf16.mxu0 %vm706_vm0, %v692_v60  ;;  %v694_v60 = vpack.c.bf16 %v675_v33, %v674_v31  ;;  %v648_v33 = vadd.f32 %v3102_v10, %v609_v16  ;;  %v3318_v10 = vld [vmem:[%s3830_s9] sm:$0xff]  }
  0x3e   : > { %v677_v15 = vmax.f32 %v645_v52, 0.0  ;;  %v696_v42 = vpack.c.bf16 %v679_v30, %v678_v25 }
  0x3f   : > { %v680_v47 = vmax.f32 %v648_v33, 0.0 }
  0x40   : > { %v695_v31 = vpack.c.bf16 %v677_v15, %v676_v59  ;;  %v1588_v59 = vsel %vm1586_vm1, %v1536_v1, 0  ;;  %v3324_v15 = vld [vmem:[%s3828_s7] ss:$0 sm:$0xff]  ;;  %v2499_v1 = vunpack.c.l.bf16 %v2732_v2 }
  0x41   : > { %2863 = vmatpush3.bf16.msra.mxu0 %v1588_v59  ;;  %2931 = vmatpush3.bf16.msra.mxu1 %v1588_v59  ;;  %v1292_v0 = vmul.f32 %v2436_v8, %v3324_v15  ;;  %v1289_v25 = vmul.f32 %v2431_v5, %v3324_v15  ;;  %v2494_v5 = vld [vmem:[%s3355_s22] sm:$0xff]  }
  0x42   : > { %2896 = vmatprep.subr.bf16.mxu1 %v3318_v10  ;;  %v3369_v59 = vld [vmem:[%s3355_s22 + $0x20] sm:$0xff]  }
  0x43   : > { %v1331_v23 = vadd.f32 %v3335_v13, %v1292_v0  ;;  %v1328_v8 = vadd.f32 %v3335_v13, %v1289_v25  ;;  %v2495_v0 = vunpack.c.l.bf16 %v2494_v5  ;;  %v2512_v56 = vunpack.c.h.bf16 %v3369_v59 }
  0x44   : > { %2851 = vmatmul.mubr.msk.bf16.gmra.mrb[20].mxu0 %vm706_vm0, %v693_v48  ;;  %v681_v48 = vmax.f32 %v649_v38, 0.0 }
  0x45   : > { %2854 = vmatprep.mubr.msk.bf16.mxu0 %vm706_vm0, %v694_v60  ;;  %v1291_v60 = vmul.f32 %v2435_v7, %v3324_v15  ;;  %v1290_v7 = vmul.f32 %v2432_v6, %v3324_v15  ;;  %v1363_v3 = vmax.f32 %v1331_v23, 0.0  ;;  %v1360_v38 = vmax.f32 %v1328_v8, 0.0  ;;  %v3360_v6 = vld [vmem:[%s3355_s22 + $0x18] sm:$0xff]  }
  0x46   : > { %v697_v52 = vpack.c.bf16 %v681_v48, %v680_v47  ;;  %v3363_v48 = vld [vmem:[%s3355_s22 + $0x10] sm:$0xff]   ;;  %v2496_v23 = vunpack.c.h.bf16 %v2494_v5  ;;  %v2507_v25 = vunpack.c.l.bf16 %v3360_v6  ;;  %v2511_v5 = vunpack.c.l.bf16 %v3369_v59 }
  0x47   : > { %v1330_v16 = vadd.f32 %v3335_v13, %v1291_v60  ;;  %v3372_v60 = vld [vmem:[%s3355_s22 + $0x38] sm:$0xff]   ;;  %v2503_v8 = vunpack.c.l.bf16 %v3363_v48 }
  0x49   : > { %v1362_v30 = vmax.f32 %v1330_v16, 0.0  ;;  %v2500_v16 = vunpack.c.h.bf16 %v2732_v2  ;;  %v3391_v2 = vld [vmem:[%s3355_s22 + $0x40] sm:$0xff]  }
  0x4b   : > { %v3347_v33 = vpack.c.bf16 %v1363_v3, %v1362_v30  ;;  %v3379_v30 = vld [vmem:[%s3355_s22 + $0x48] sm:$0xff]   ;;  %v3384_v3 = vld [vmem:[%s3831_s10] ss:$0 sm:$0xff] }
  0x4c   : > { %2855 = vmatmul.mubr.msk.bf16.gmra.mrb[24].mxu0 %vm706_vm0, %v695_v31  ;;  %v1329_v31 = vadd.f32 %v3335_v13, %v1290_v7  ;;  %v3376_v7 = vld [vmem:[%s3355_s22 + $0x30] sm:$0xff]  }
  0x4d   : > { %2858 = vmatprep.mubr.msk.bf16.mxu0 %vm706_vm0, %v696_v42 }
  0x4e   : > { %v1361_v42 = vmax.f32 %v1329_v31, 0.0  ;;  %v2508_v31 = vunpack.c.h.bf16 %v3360_v6 }
  0x50   : > { %v3349_v47 = vpack.c.bf16 %v1361_v42, %v1360_v38  ;;  %v2504_v38 = vunpack.c.h.bf16 %v3363_v48 }
  0x54   : > { %2859 = vmatmul.mubr.msk.bf16.gmra.mrb[28].mxu0 %vm706_vm0, %v697_v52  ;;  %v3366_v52 = vld [vmem:[%s3355_s22 + $0x28] sm:$0xff]  }
  0x55   : > { %v2515_v42 = vunpack.c.l.bf16 %v3366_v52  ;;  %v2516_v57 = vunpack.c.h.bf16 %v3366_v52 }
  0xef   : > { %v2832_v28 = vpop.f32.mrb[0].mxu0 }
  0xf0   : > { %v982_v35 = vadd.f32 %v2832_v28, %v2499_v1  ;;  %v1419_v21 = vmul.f32 %v2832_v28, %v3384_v3  ;;  %v789_v20 = vpop.f32.mrb[1].mxu0  ;;  %v3426_v28 = vld [vmem:[%s3355_s22 + $0x50] sm:$0xff]  }
  0xf1   : > { %v980_v49 = vadd.f32 %v2495_v0, %v789_v20  ;;  %v1417_v45 = vmul.f32 %v3384_v3, %v789_v20  ;;  %v2833_v44 = vpop.f32.mrb[2].mxu0 }
  0xf2   : > { %v1021_v40 = vmul.f32 %v3403_v26, %v982_v35  ;;  %v1458_v24 = vadd.f32 %v3408_v22, %v1419_v21  ;;  %v983_v17 = vadd.f32 %v2833_v44, %v2500_v16  ;;  %v1420_v12 = vmul.f32 %v2833_v44, %v3384_v3  ;;  %v792_v11 = vpop.f32.mrb[3].mxu0 }
  0xf3   : > { %v1019_v14 = vmul.f32 %v3403_v26, %v980_v49  ;;  %v1456_v0 = vadd.f32 %v3408_v22, %v1417_v45  ;;  %v981_v20 = vadd.f32 %v2496_v23, %v792_v11  ;;  %v1418_v18 = vmul.f32 %v3384_v3, %v792_v11 }
  0xf4   : > { %v1060_v41 = vadd.f32 %v3420_v53, %v1021_v40  ;;  %v1022_v1 = vmul.f32 %v3403_v26, %v983_v17  ;;  %v1459_v36 = vadd.f32 %v3408_v22, %v1420_v12  ;;  %v2540_v45 = vunpack.c.h.bf16 %v3398_v55 }
  0xf5   : > { %v1058_v21 = vadd.f32 %v3420_v53, %v1019_v14  ;;  %v1020_v44 = vmul.f32 %v3403_v26, %v981_v20  ;;  %v1457_v16 = vadd.f32 %v3408_v22, %v1418_v18  ;;  %v1490_v49 = vmax.f32 %v1458_v24, 0.0 }
  0xf6   : > { %v1488_v23 = vmax.f32 %v1456_v0, 0.0  ;;  %v1061_v11 = vadd.f32 %v3420_v53, %v1022_v1  ;;  %v1491_v40 = vmax.f32 %v1459_v36, 0.0  ;;  %v1092_v43 = vmax.f32 %v1060_v41, 0.0 }
  0xf7   : > { %v1090_v17 = vmax.f32 %v1058_v21, 0.0  ;;  %v1059_v12 = vadd.f32 %v3420_v53, %v1020_v44  ;;  %v1489_v50 = vmax.f32 %v1457_v16, 0.0  ;;  %v2836_v35 = vpop.f32.mrb[4].mxu0 }
  0xf8   : > { %v1093_v19 = vmax.f32 %v1061_v11, 0.0  ;;  %v1521_v14 = vpack.c.bf16 %v1491_v40, %v1490_v49  ;;  %v986_v20 = vadd.f32 %v2836_v35, %v2507_v25  ;;  %v1423_v18 = vmul.f32 %v2836_v35, %v3384_v3  ;;  %v805_v58 = vpop.f32.mrb[5].mxu0  ;;  %v3459_v49 = vld [vmem:[%s3355_s22 + $0x68] sm:$0xff]  }
  0xf9   : > { %v1091_v24 = vmax.f32 %v1059_v12, 0.0  ;;  %v1520_v41 = vpack.c.bf16 %v1489_v50, %v1488_v23  ;;  %v984_v36 = vadd.f32 %v2503_v8, %v805_v58  ;;  %v1421_v1 = vmul.f32 %v3384_v3, %v805_v58  ;;  %v2837_v0 = vpop.f32.mrb[6].mxu0 }
  0xfa   : > { %v2565_v21 = vpack.c.bf16 %v1093_v19, %v1092_v43  ;;  %v1025_v25 = vmul.f32 %v3403_v26, %v986_v20  ;;  %v1462_v35 = vadd.f32 %v3408_v22, %v1423_v18  ;;  %v987_v44 = vadd.f32 %v2837_v0, %v2508_v31  ;;  %v808_v16 = vpop.f32.mrb[7].mxu0 }
  0xfb   : > { %v2560_v11 = vpack.c.bf16 %v1091_v24, %v1090_v17  ;;  %v1023_v50 = vmul.f32 %v3403_v26, %v984_v36  ;;  %v1460_v8 = vadd.f32 %v3408_v22, %v1421_v1  ;;  %v1424_v58 = vmul.f32 %v2837_v0, %v3384_v3  ;;  %2864 = vmatprep.mubr.msk.bf16.mxu0 %vm1537_vm2, %v1520_v41 }
  0xfc   : > { %2747 = vst [vmem:[%s3449_s19 + $0x8] sm:$0xff] %v2565_v21   ;;  %v1064_v43 = vadd.f32 %v3420_v53, %v1025_v25  ;;  %v1026_v19 = vmul.f32 %v3403_v26, %v987_v44  ;;  %v985_v6 = vadd.f32 %v2504_v38, %v808_v16  ;;  %2865 = vmatmul.mubr.msk.bf16.vlgmr.msra.gmra.mrb[32].mxu0 %vm1537_vm2, %v1521_v14  ;;  %v2536_v31 = vunpack.c.h.bf16 %v3426_v28 }
  0xfd   : > { %2561 = vst [vmem:[%s3449_s19] sm:$0xff] %v2560_v11   ;;  %v1062_v23 = vadd.f32 %v3420_v53, %v1023_v50  ;;  %v1463_v40 = vadd.f32 %v3408_v22, %v1424_v58  ;;  %v1422_v17 = vmul.f32 %v3384_v3, %v808_v16  ;;  %v2547_v12 = vunpack.c.l.bf16 %v3459_v49 }
  0xfe   : > { %v1494_v20 = vmax.f32 %v1462_v35, 0.0  ;;  %v1492_v18 = vmax.f32 %v1460_v8, 0.0  ;;  %v1065_v24 = vadd.f32 %v3420_v53, %v1026_v19  ;;  %v1024_v48 = vmul.f32 %v3403_v26, %v985_v6 }
  0xff   : > { %v1096_v38 = vmax.f32 %v1064_v43, 0.0  ;;  %v1094_v14 = vmax.f32 %v1062_v23, 0.0  ;;  %v1495_v41 = vmax.f32 %v1463_v40, 0.0  ;;  %v1461_v36 = vadd.f32 %v3408_v22, %v1422_v17  ;;  %v2840_v1 = vpop.f32.mrb[8].mxu0  ;;  %v3488_v43 = vld [vmem:[%s3355_s22 + $0x60] sm:$0xff]  }
 0x100   : > { %v1097_v0 = vmax.f32 %v1065_v24, 0.0  ;;  %v1063_v21 = vadd.f32 %v3420_v53, %v1024_v48  ;;  %v990_v25 = vadd.f32 %v2840_v1, %v2515_v42  ;;  %v1427_v35 = vmul.f32 %v2840_v1, %v3384_v3  ;;  %v821_v44 = vpop.f32.mrb[9].mxu0 }
 0x101   : > { %v1523_v16 = vpack.c.bf16 %v1495_v41, %v1494_v20  ;;  %v1493_v11 = vmax.f32 %v1461_v36, 0.0  ;;  %v988_v50 = vadd.f32 %v2511_v5, %v821_v44  ;;  %v1425_v8 = vmul.f32 %v3384_v3, %v821_v44  ;;  %v2841_v58 = vpop.f32.mrb[10].mxu0 }
 0x102   : > { %v2575_v19 = vpack.c.bf16 %v1097_v0, %v1096_v38  ;;  %v1095_v6 = vmax.f32 %v1063_v21, 0.0  ;;  %v1029_v23 = vmul.f32 %v3403_v26, %v990_v25  ;;  %v1466_v42 = vadd.f32 %v3408_v22, %v1427_v35  ;;  %v824_v40 = vpop.f32.mrb[11].mxu0 }
 0x103   : > { %v1522_v17 = vpack.c.bf16 %v1493_v11, %v1492_v18  ;;  %v1027_v20 = vmul.f32 %v3403_v26, %v988_v50  ;;  %v1464_v24 = vadd.f32 %v3408_v22, %v1425_v8  ;;  %v991_v5 = vadd.f32 %v2841_v58, %v2516_v57 }
 0x104   : > { %2749 = vst [vmem:[%s3449_s19 + $0x18] sm:$0xff] %v2575_v19   ;;  %v2570_v48 = vpack.c.bf16 %v1095_v6, %v1094_v14  ;;  %v1068_v41 = vadd.f32 %v3420_v53, %v1029_v23  ;;  %v1428_v38 = vmul.f32 %v2841_v58, %v3384_v3  ;;  %v2543_v36 = vunpack.c.l.bf16 %v3488_v43 }
 0x105   : > { %v1066_v1 = vadd.f32 %v3420_v53, %v1027_v20  ;;  %v1030_v0 = vmul.f32 %v3403_v26, %v991_v5  ;;  %v989_v18 = vadd.f32 %v2512_v56, %v824_v40  ;;  %2868 = vmatprep.mubr.msk.bf16.mxu0 %vm1537_vm2, %v1522_v17  ;;  %v2548_v52 = vunpack.c.h.bf16 %v3459_v49 }
 0x106   : > { %2748 = vst [vmem:[%s3449_s19 + $0x10] sm:$0xff] %v2570_v48   ;;  %v1498_v57 = vmax.f32 %v1466_v42, 0.0  ;;  %v1496_v14 = vmax.f32 %v1464_v24, 0.0  ;;  %v1467_v21 = vadd.f32 %v3408_v22, %v1428_v38  ;;  %v1426_v25 = vmul.f32 %v3384_v3, %v824_v40  ;;  %2869 = vmatmul.mubr.msk.bf16.gmra.mrb[36].mxu0 %vm1537_vm2, %v1523_v16 }
 0x107   : > { %v1100_v35 = vmax.f32 %v1068_v41, 0.0  ;;  %v1098_v44 = vmax.f32 %v1066_v1, 0.0  ;;  %v1069_v11 = vadd.f32 %v3420_v53, %v1030_v0  ;;  %v1028_v59 = vmul.f32 %v3403_v26, %v989_v18  ;;  %v2844_v56 = vpop.f32.mrb[12].mxu0  ;;  %v3523_v0 = vld [vmem:[%s3355_s22 + $0x78] sm:$0xff]   ;;  %v3526_v18 = vld [vmem:[%s3355_s22 + $0x70] sm:$0xff]   ;;  %s3800_s22 = scalar_lea.vmem %s3835_s14, %s3070_s18 }
 0x108   : > { %v1499_v50 = vmax.f32 %v1467_v21, 0.0  ;;  %v1465_v8 = vadd.f32 %v3408_v22, %v1426_v25  ;;  %v3864_v58 = vunpack.c.l.bf16 %v3372_v60  ;;  %v1431_v6 = vmul.f32 %v2844_v56, %v3384_v3  ;;  %v837_v23 = vpop.f32.mrb[13].mxu0 }
 0x109   : > { %v1101_v42 = vmax.f32 %v1069_v11, 0.0  ;;  %v1067_v16 = vadd.f32 %v3420_v53, %v1028_v59  ;;  %v3865_v40 = vunpack.c.l.bf16 %v3376_v7  ;;  %v1429_v20 = vmul.f32 %v3384_v3, %v837_v23  ;;  %v2845_v24 = vpop.f32.mrb[14].mxu0 }
 0x10a   : > { %v994_v19 = vadd.f32 %v2844_v56, %v3864_v58  ;;  %v1525_v5 = vpack.c.bf16 %v1499_v50, %v1498_v57  ;;  %v1497_v48 = vmax.f32 %v1465_v8, 0.0  ;;  %v1470_v38 = vadd.f32 %v3408_v22, %v1431_v6  ;;  %v840_v1 = vpop.f32.mrb[15].mxu0 }
 0x10b   : > { %v992_v17 = vadd.f32 %v3865_v40, %v837_v23  ;;  %v2585_v21 = vpack.c.bf16 %v1101_v42, %v1100_v35  ;;  %v1099_v25 = vmax.f32 %v1067_v16, 0.0  ;;  %v1468_v59 = vadd.f32 %v3408_v22, %v1429_v20 }
 0x10c   : > { %v1033_v41 = vmul.f32 %v3403_v26, %v994_v19  ;;  %v1524_v56 = vpack.c.bf16 %v1497_v48, %v1496_v14  ;;  %v3866_v50 = vunpack.c.h.bf16 %v3372_v60  ;;  %v2544_v58 = vunpack.c.h.bf16 %v3488_v43 }
 0x10d   : > { %v1031_v11 = vmul.f32 %v3403_v26, %v992_v17  ;;  %2751 = vst [vmem:[%s3449_s19 + $0x28] sm:$0xff] %v2585_v21   ;;  %v2580_v19 = vpack.c.bf16 %v1099_v25, %v1098_v44  ;;  %v1432_v6 = vmul.f32 %v2845_v24, %v3384_v3  ;;  %v2555_v35 = vunpack.c.l.bf16 %v3523_v0 }
 0x10e   : > { %v1072_v57 = vadd.f32 %v3420_v53, %v1033_v41  ;;  %v995_v8 = vadd.f32 %v2845_v24, %v3866_v50  ;;  %v1502_v42 = vmax.f32 %v1470_v38, 0.0  ;;  %v3867_v14 = vunpack.c.h.bf16 %v3376_v7  ;;  %2872 = vmatprep.mubr.msk.bf16.mxu0 %vm1537_vm2, %v1524_v56 }
 0x10f   : > { %v1430_v17 = vmul.f32 %v3384_v3, %v840_v1  ;;  %2750 = vst [vmem:[%s3449_s19 + $0x20] sm:$0xff] %v2580_v19   ;;  %v1070_v44 = vadd.f32 %v3420_v53, %v1031_v11  ;;  %v1500_v20 = vmax.f32 %v1468_v59, 0.0  ;;  %v1471_v24 = vadd.f32 %v3408_v22, %v1432_v6  ;;  %2873 = vmatmul.mubr.msk.bf16.gmra.mrb[40].mxu0 %vm1537_vm2, %v1525_v5  ;;  %v2848_v48 = vpop.f32.mrb[16].mxu0 }
 0x110   : > { %v1034_v16 = vmul.f32 %v3403_v26, %v995_v8  ;;  %v993_v40 = vadd.f32 %v3867_v14, %v840_v1  ;;  %v1104_v60 = vmax.f32 %v1072_v57, 0.0  ;;  %v3868_v1 = vunpack.c.l.bf16 %v3379_v30  ;;  %v853_v25 = vpop.f32.mrb[17].mxu0 }
 0x111   : > { %v1469_v7 = vadd.f32 %v3408_v22, %v1430_v17  ;;  %v1503_v56 = vmax.f32 %v1471_v24, 0.0  ;;  %v1435_v57 = vmul.f32 %v2848_v48, %v3384_v3  ;;  %v3869_v11 = vunpack.c.l.bf16 %v3391_v2  ;;  %v2849_v5 = vpop.f32.mrb[18].mxu0 }
 0x112   : > { %v1073_v41 = vadd.f32 %v3420_v53, %v1034_v16  ;;  %v1032_v38 = vmul.f32 %v3403_v26, %v993_v40  ;;  %v998_v21 = vadd.f32 %v2848_v48, %v3868_v1  ;;  %v1433_v50 = vmul.f32 %v3384_v3, %v853_v25  ;;  %v856_v14 = vpop.f32.mrb[19].mxu0 }
 0x113   : > { %v996_v59 = vadd.f32 %v3869_v11, %v853_v25  ;;  %v1501_v6 = vmax.f32 %v1469_v7, 0.0  ;;  %v1102_v40 = vmax.f32 %v1070_v44, 0.0  ;;  %v1527_v17 = vpack.c.bf16 %v1503_v56, %v1502_v42 }
 0x114   : > { %v1105_v8 = vmax.f32 %v1073_v41, 0.0  ;;  %v1071_v19 = vadd.f32 %v3420_v53, %v1032_v38  ;;  %v1037_v16 = vmul.f32 %v3403_v26, %v998_v21  ;;  %v1474_v24 = vadd.f32 %v3408_v22, %v1435_v57 }
 0x115   : > { %v1035_v48 = vmul.f32 %v3403_v26, %v996_v59  ;;  %v1526_v11 = vpack.c.bf16 %v1501_v6, %v1500_v20  ;;  %v1472_v38 = vadd.f32 %v3408_v22, %v1433_v50  ;;  %v3870_v7 = vunpack.c.h.bf16 %v3379_v30 }
 0x116   : > { %v2595_v1 = vpack.c.bf16 %v1105_v8, %v1104_v60  ;;  %v1103_v23 = vmax.f32 %v1071_v19, 0.0  ;;  %v1076_v25 = vadd.f32 %v3420_v53, %v1037_v16  ;;  %v1436_v44 = vmul.f32 %v2849_v5, %v3384_v3 }
 0x117   : > { %v1074_v41 = vadd.f32 %v3420_v53, %v1035_v48  ;;  %v999_v21 = vadd.f32 %v2849_v5, %v3870_v7  ;;  %v1506_v56 = vmax.f32 %v1474_v24, 0.0  ;;  %v3871_v57 = vunpack.c.h.bf16 %v3391_v2  ;;  %2876 = vmatprep.mubr.msk.bf16.mxu0 %vm1537_vm2, %v1526_v11  ;;  %v2852_v30 = vpop.f32.mrb[20].mxu0 }
 0x118   : > { %2753 = vst [vmem:[%s3449_s19 + $0x38] sm:$0xff] %v2595_v1   ;;  %v2590_v42 = vpack.c.bf16 %v1103_v23, %v1102_v40  ;;  %v1434_v20 = vmul.f32 %v3384_v3, %v856_v14  ;;  %v1108_v59 = vmax.f32 %v1076_v25, 0.0  ;;  %v1475_v50 = vadd.f32 %v3408_v22, %v1436_v44  ;;  %2877 = vmatmul.mubr.msk.bf16.gmra.mrb[44].mxu0 %vm1537_vm2, %v1527_v17 }
 0x119   : > { %v997_v60 = vadd.f32 %v3871_v57, %v856_v14  ;;  %v1106_v8 = vmax.f32 %v1074_v41, 0.0  ;;  %v1038_v19 = vmul.f32 %v3403_v26, %v999_v21  ;;  %v3872_v2 = vunpack.c.l.bf16 %v3398_v55  ;;  %v869_v14 = vpop.f32.mrb[21].mxu0 }
 0x11a   : > { %2752 = vst [vmem:[%s3449_s19 + $0x30] sm:$0xff] %v2590_v42   ;;  %v1473_v5 = vadd.f32 %v3408_v22, %v1434_v20  ;;  %v1439_v16 = vmul.f32 %v2852_v30, %v3384_v3  ;;  %v1507_v24 = vmax.f32 %v1475_v50, 0.0  ;;  %v3873_v48 = vunpack.c.l.bf16 %v3426_v28  ;;  %v2853_v11 = vpop.f32.mrb[22].mxu0 }
 0x11b   : > { %v1036_v23 = vmul.f32 %v3403_v26, %v997_v60  ;;  %v1002_v6 = vadd.f32 %v2852_v30, %v3872_v2  ;;  %v1077_v40 = vadd.f32 %v3420_v53, %v1038_v19  ;;  %v1437_v17 = vmul.f32 %v3384_v3, %v869_v14  ;;  %v872_v44 = vpop.f32.mrb[23].mxu0 }
 0x11c   : > { %v1000_v1 = vadd.f32 %v3873_v48, %v869_v14  ;;  %v1478_v7 = vadd.f32 %v3408_v22, %v1439_v16  ;;  %v1003_v21 = vadd.f32 %v2853_v11, %v2540_v45  ;;  %v1529_v57 = vpack.c.bf16 %v1507_v24, %v1506_v56 }
 0x11d   : > { %v1075_v25 = vadd.f32 %v3420_v53, %v1036_v23  ;;  %v1041_v41 = vmul.f32 %v3403_v26, %v1002_v6  ;;  %v1109_v42 = vmax.f32 %v1077_v40, 0.0  ;;  %v1476_v20 = vadd.f32 %v3408_v22, %v1437_v17 }
 0x11e   : > { %v1039_v60 = vmul.f32 %v3403_v26, %v1000_v1  ;;  %v1042_v30 = vmul.f32 %v3403_v26, %v1003_v21  ;;  %v1504_v23 = vmax.f32 %v1472_v38, 0.0  ;;  %v1510_v6 = vmax.f32 %v1478_v7, 0.0 }
 0x11f   : > { %v1107_v19 = vmax.f32 %v1075_v25, 0.0  ;;  %v1080_v50 = vadd.f32 %v3420_v53, %v1041_v41  ;;  %v2605_v2 = vpack.c.bf16 %v1109_v42, %v1108_v59  ;;  %v1440_v45 = vmul.f32 %v2853_v11, %v3384_v3  ;;  %v2856_v59 = vpop.f32.mrb[24].mxu0 }
 0x120   : > { %v1078_v55 = vadd.f32 %v3420_v53, %v1039_v60  ;;  %v1508_v14 = vmax.f32 %v1476_v20, 0.0  ;;  %v1081_v56 = vadd.f32 %v3420_v53, %v1042_v30  ;;  %v1001_v40 = vadd.f32 %v2536_v31, %v872_v44  ;;  %v885_v41 = vpop.f32.mrb[25].mxu0 }
 0x121   : > { %v2600_v16 = vpack.c.bf16 %v1107_v19, %v1106_v8  ;;  %2755 = vst [vmem:[%s3449_s19 + $0x48] sm:$0xff] %v2605_v2   ;;  %v1112_v24 = vmax.f32 %v1080_v50, 0.0  ;;  %v1479_v48 = vadd.f32 %v3408_v22, %v1440_v45  ;;  %v1438_v1 = vmul.f32 %v3384_v3, %v872_v44 }
 0x122   : > { %v1505_v38 = vmax.f32 %v1473_v5, 0.0  ;;  %v1113_v17 = vmax.f32 %v1081_v56, 0.0  ;;  %v1040_v25 = vmul.f32 %v3403_v26, %v1001_v40  ;;  %v1006_v8 = vadd.f32 %v2856_v59, %v2547_v12  ;;  %v2857_v5 = vpop.f32.mrb[26].mxu0 }
 0x123   : > { %2754 = vst [vmem:[%s3449_s19 + $0x40] sm:$0xff] %v2600_v16   ;;  %v1443_v11 = vmul.f32 %v2856_v59, %v3384_v3  ;;  %v1511_v28 = vmax.f32 %v1479_v48, 0.0  ;;  %v1477_v31 = vadd.f32 %v3408_v22, %v1438_v1  ;;  %v1004_v21 = vadd.f32 %v2543_v36, %v885_v41  ;;  %v888_v12 = vpop.f32.mrb[27].mxu0 }
 0x124   : > { %v1528_v7 = vpack.c.bf16 %v1505_v38, %v1504_v23  ;;  %v2615_v44 = vpack.c.bf16 %v1113_v17, %v1112_v24  ;;  %v1079_v42 = vadd.f32 %v3420_v53, %v1040_v25  ;;  %v1045_v60 = vmul.f32 %v3403_v26, %v1006_v8 }
 0x125   : > { %v1482_v20 = vadd.f32 %v3408_v22, %v1443_v11  ;;  %v1531_v19 = vpack.c.bf16 %v1511_v28, %v1510_v6  ;;  %v1509_v50 = vmax.f32 %v1477_v31, 0.0  ;;  %v1043_v30 = vmul.f32 %v3403_v26, %v1004_v21 }
 0x126   : > { %2880 = vmatprep.mubr.msk.bf16.mxu1 %vm1537_vm2, %v1528_v7  ;;  %v1441_v23 = vmul.f32 %v3384_v3, %v885_v41  ;;  %v1110_v2 = vmax.f32 %v1078_v55, 0.0  ;;  %2757 = vst [vmem:[%s3449_s19 + $0x58] sm:$0xff] %v2615_v44   ;;  %v1111_v36 = vmax.f32 %v1079_v42, 0.0  ;;  %v1007_v45 = vadd.f32 %v2857_v5, %v2548_v52 }
 0x127   : > { %2881 = vmatmul.mubr.msk.bf16.vlgmr.msra.gmra.mrb[0].mxu1 %vm1537_vm2, %v1529_v57  ;;  %v2556_v16 = vunpack.c.h.bf16 %v3523_v0  ;;  %v1530_v56 = vpack.c.bf16 %v1509_v50, %v1508_v14  ;;  %v1084_v6 = vadd.f32 %v3420_v53, %v1045_v60  ;;  %v1444_v40 = vmul.f32 %v2857_v5, %v3384_v3  ;;  %v2860_v38 = vpop.f32.mrb[28].mxu0 }
 0x128   : > { %2897 = vmatpush3.bf16.msra.mxu1 %v3318_v10  ;;  %v2552_v24 = vunpack.c.h.bf16 %v3526_v18  ;;  %v2610_v55 = vpack.c.bf16 %v1111_v36, %v1110_v2  ;;  %v1480_v48 = vadd.f32 %v3408_v22, %v1441_v23  ;;  %v1046_v57 = vmul.f32 %v3403_v26, %v1007_v45 }
 0x129   : > { %v1005_v49 = vadd.f32 %v2544_v58, %v888_v12  ;;  %v1514_v52 = vmax.f32 %v1482_v20, 0.0  ;;  %v1082_v1 = vadd.f32 %v3420_v53, %v1043_v30  ;;  %v1483_v14 = vadd.f32 %v3408_v22, %v1444_v40  ;;  %2884 = vmatprep.mubr.msk.bf16.mxu1 %vm1537_vm2, %v1530_v56  ;;  %v901_v58 = vpop.f32.mrb[29].mxu0 }
 0x12a   : > { %v1442_v10 = vmul.f32 %v3384_v3, %v888_v12  ;;  %2756 = vst [vmem:[%s3449_s19 + $0x50] sm:$0xff] %v2610_v55   ;;  %v1085_v59 = vadd.f32 %v3420_v53, %v1046_v57  ;;  %v1010_v25 = vadd.f32 %v2860_v38, %v2555_v35  ;;  %v1447_v43 = vmul.f32 %v2860_v38, %v3384_v3  ;;  %v2861_v7 = vpop.f32.mrb[30].mxu0 }
 0x12b   : > { %v1044_v17 = vmul.f32 %v3403_v26, %v1005_v49  ;;  %v1116_v8 = vmax.f32 %v1084_v6, 0.0  ;;  %v1515_v11 = vmax.f32 %v1483_v14, 0.0  ;;  %v3874_v28 = vunpack.c.l.bf16 %v3526_v18  ;;  %v904_v0 = vpop.f32.mrb[31].mxu0 }
 0x12c   : > { %v1481_v41 = vadd.f32 %v3408_v22, %v1442_v10  ;;  %v1512_v21 = vmax.f32 %v1480_v48, 0.0  ;;  %v1117_v5 = vmax.f32 %v1085_v59, 0.0  ;;  %v1486_v42 = vadd.f32 %v3408_v22, %v1447_v43 }
 0x12d   : > { %v1008_v31 = vadd.f32 %v3874_v28, %v901_v58  ;;  %v1083_v44 = vadd.f32 %v3420_v53, %v1044_v17  ;;  %v1533_v35 = vpack.c.bf16 %v1515_v11, %v1514_v52  ;;  %v1049_v20 = vmul.f32 %v3403_v26, %v1010_v25 }
 0x12e   : > { %v1513_v60 = vmax.f32 %v1481_v41, 0.0  ;;  %v1445_v12 = vmul.f32 %v3384_v3, %v901_v58  ;;  %v1114_v50 = vmax.f32 %v1082_v1, 0.0  ;;  %v2625_v30 = vpack.c.bf16 %v1117_v5, %v1116_v8 }
 0x12f   : > { %v1115_v18 = vmax.f32 %v1083_v44, 0.0  ;;  %2885 = vmatmul.mubr.msk.bf16.gmra.mrb[4].mxu1 %vm1537_vm2, %v1531_v19  ;;  %v1047_v23 = vmul.f32 %v3403_v26, %v1008_v31  ;;  %v1011_v36 = vadd.f32 %v2861_v7, %v2556_v16  ;;  %v1448_v56 = vmul.f32 %v2861_v7, %v3384_v3 }
 0x130   : > { %v1532_v2 = vpack.c.bf16 %v1513_v60, %v1512_v21  ;;  %2759 = vst [vmem:[%s3449_s19 + $0x68] sm:$0xff] %v2625_v30   ;;  %v1009_v6 = vadd.f32 %v2552_v24, %v904_v0  ;;  %v1088_v40 = vadd.f32 %v3420_v53, %v1049_v20  ;;  %v1484_v55 = vadd.f32 %v3408_v22, %v1445_v12 }
 0x131   : > { %v2620_v45 = vpack.c.bf16 %v1115_v18, %v1114_v50  ;;  %v1050_v48 = vmul.f32 %v3403_v26, %v1011_v36  ;;  %v1446_v57 = vmul.f32 %v3384_v3, %v904_v0  ;;  %v1086_v19 = vadd.f32 %v3420_v53, %v1047_v23 }
 0x132   : > { %2888 = vmatprep.mubr.msk.bf16.mxu1 %vm1537_vm2, %v1532_v2  ;;  %v1487_v16 = vadd.f32 %v3408_v22, %v1448_v56  ;;  %v1048_v49 = vmul.f32 %v3403_v26, %v1009_v6  ;;  %v1518_v1 = vmax.f32 %v1486_v42, 0.0  ;;  %v1120_v3 = vmax.f32 %v1088_v40, 0.0 }
 0x133   : > { %2758 = vst [vmem:[%s3449_s19 + $0x60] sm:$0xff] %v2620_v45   ;;  %v1089_v52 = vadd.f32 %v3420_v53, %v1050_v48  ;;  %v1485_v24 = vadd.f32 %v3408_v22, %v1446_v57  ;;  %v1516_v38 = vmax.f32 %v1484_v55, 0.0  ;;  %v1118_v25 = vmax.f32 %v1086_v19, 0.0 }
 0x134   : > { %v1519_v14 = vmax.f32 %v1487_v16, 0.0  ;;  %v1087_v10 = vadd.f32 %v3420_v53, %v1048_v49  ;;  %v3875_v22 = vunpack.c.l.bf16 %v3090_v4  ;;  %v3876_v41 = vunpack.c.h.bf16 %v3090_v4 }
 0x135   : > { %v1121_v59 = vmax.f32 %v1089_v52, 0.0  ;;  %v1517_v17 = vmax.f32 %v1485_v24, 0.0  ;;  %v3877_v21 = vunpack.c.l.bf16 %v3097_v9  ;;  %v3878_v44 = vunpack.c.h.bf16 %v3097_v9 }
 0x136   : > { %v1535_v43 = vpack.c.bf16 %v1519_v14, %v1518_v1  ;;  %v1119_v58 = vmax.f32 %v1087_v10, 0.0  ;;  %v1293_v11 = vmul.f32 %v3875_v22, %v3324_v15  ;;  %v1294_v53 = vmul.f32 %v3876_v41, %v3324_v15 }
 0x137   : > { %2889 = vmatmul.mubr.msk.bf16.gmra.mrb[8].mxu1 %vm1537_vm2, %v1533_v35  ;;  %v2635_v26 = vpack.c.bf16 %v1121_v59, %v1120_v3  ;;  %v1534_v8 = vpack.c.bf16 %v1517_v17, %v1516_v38  ;;  %v1295_v5 = vmul.f32 %v3877_v21, %v3324_v15  ;;  %v1296_v4 = vmul.f32 %v3878_v44, %v3324_v15 }
 0x138   : > { %v2630_v28 = vpack.c.bf16 %v1119_v58, %v1118_v25  ;;  %v1332_v31 = vadd.f32 %v3335_v13, %v1293_v11  ;;  %v1333_v7 = vadd.f32 %v3335_v13, %v1294_v53  ;;  %v3879_v35 = vunpack.c.l.bf16 %v3133_v29 }
 0x139   : > { %2761 = vst [vmem:[%s3449_s19 + $0x78] sm:$0xff] %v2635_v26   ;;  %2892 = vmatprep.mubr.msk.bf16.mxu1 %vm1537_vm2, %v1534_v8  ;;  %v3880_v20 = vunpack.c.h.bf16 %v3133_v29  ;;  %v1334_v50 = vadd.f32 %v3335_v13, %v1295_v5  ;;  %v1335_v30 = vadd.f32 %v3335_v13, %v1296_v4  ;;  %v3881_v36 = vunpack.c.l.bf16 %v3136_v32 }
 0x13a   : > { %2760 = vst [vmem:[%s3449_s19 + $0x70] sm:$0xff] %v2630_v28   ;;  %v1364_v42 = vmax.f32 %v1332_v31, 0.0  ;;  %v1365_v0 = vmax.f32 %v1333_v7, 0.0  ;;  %v1297_v60 = vmul.f32 %v3879_v35, %v3324_v15  ;;  %v3882_v29 = vunpack.c.h.bf16 %v3136_v32 }
 0x13b   : > { %v1298_v12 = vmul.f32 %v3880_v20, %v3324_v15  ;;  %v1367_v2 = vmax.f32 %v1335_v30, 0.0  ;;  %v1299_v45 = vmul.f32 %v3881_v36, %v3324_v15  ;;  %v3883_v55 = vunpack.c.l.bf16 %v3142_v37 }
 0x13c   : > { %v1394_v18 = vpack.c.bf16 %v1365_v0, %v1364_v42  ;;  %v1336_v9 = vadd.f32 %v3335_v13, %v1297_v60  ;;  %v1300_v56 = vmul.f32 %v3882_v29, %v3324_v15  ;;  %v3885_v10 = vunpack.c.l.bf16 %v3171_v54 }
 0x13d   : > { %v1337_v23 = vadd.f32 %v3335_v13, %v1298_v12  ;;  %v1301_v48 = vmul.f32 %v3883_v55, %v3324_v15  ;;  %v1338_v16 = vadd.f32 %v3335_v13, %v1299_v45  ;;  %v3887_v25 = vunpack.c.l.bf16 %v3184_v62 }
 0x13e   : > { %v1368_v6 = vmax.f32 %v1336_v9, 0.0  ;;  %v1339_v49 = vadd.f32 %v3335_v13, %v1300_v56  ;;  %v1303_v3 = vmul.f32 %v3885_v10, %v3324_v15  ;;  %v3888_v58 = vunpack.c.h.bf16 %v3184_v62 }
 0x13f   : > { %2893 = vmatmul.mubr.msk.bf16.gmra.mrb[12].mxu1 %vm1537_vm2, %v1535_v43  ;;  %v1369_v40 = vmax.f32 %v1337_v23, 0.0  ;;  %v1340_v32 = vadd.f32 %v3335_v13, %v1301_v48  ;;  %v1370_v1 = vmax.f32 %v1338_v16, 0.0  ;;  %v1305_v43 = vmul.f32 %v3887_v25, %v3324_v15 }
 0x140   : > { %2898 = vmatprep.mubr.msk.bf16.mxu1 %vm706_vm0, %v3349_v47  ;;  %v1366_v47 = vmax.f32 %v1334_v50, 0.0  ;;  %v1371_v14 = vmax.f32 %v1339_v49, 0.0  ;;  %v1306_v26 = vmul.f32 %v3888_v58, %v3324_v15  ;;  %v1342_v22 = vadd.f32 %v3335_v13, %v1303_v3 }
 0x141   : > { %v1396_v52 = vpack.c.bf16 %v1369_v40, %v1368_v6  ;;  %v1372_v59 = vmax.f32 %v1340_v32, 0.0  ;;  %v3889_v7 = vunpack.c.l.bf16 %v3200_v27  ;;  %v3890_v62 = vunpack.c.h.bf16 %v3200_v27 }
 0x142   : > { %v1395_v19 = vpack.c.bf16 %v1367_v2, %v1366_v47  ;;  %v1397_v8 = vpack.c.bf16 %v1371_v14, %v1370_v1  ;;  %v1345_v53 = vadd.f32 %v3335_v13, %v1306_v26  ;;  %v1374_v28 = vmax.f32 %v1342_v22, 0.0 }
 0x143   : > { %v1307_v21 = vmul.f32 %v3889_v7, %v3324_v15  ;;  %v1308_v5 = vmul.f32 %v3890_v62, %v3324_v15  ;;  %v3891_v42 = vunpack.c.l.bf16 %v3210_v34  ;;  %v3892_v35 = vunpack.c.h.bf16 %v3210_v34 }
 0x144   : > { %v1377_v4 = vmax.f32 %v1345_v53, 0.0  ;;  %v3893_v47 = vunpack.c.l.bf16 %v3235_v61  ;;  %v3894_v34 = vunpack.c.h.bf16 %v3235_v61  ;;  %v3895_v56 = vunpack.c.l.bf16 %v3238_v63 }
 0x145   : > { %v1309_v0 = vmul.f32 %v3891_v42, %v3324_v15  ;;  %v1310_v60 = vmul.f32 %v3892_v35, %v3324_v15  ;;  %v1346_v12 = vadd.f32 %v3335_v13, %v1307_v21  ;;  %v1347_v50 = vadd.f32 %v3335_v13, %v1308_v5 }
 0x146   : > { %v1311_v2 = vmul.f32 %v3893_v47, %v3324_v15  ;;  %v1312_v36 = vmul.f32 %v3894_v34, %v3324_v15  ;;  %v1313_v6 = vmul.f32 %v3895_v56, %v3324_v15  ;;  %v3896_v40 = vunpack.c.h.bf16 %v3238_v63 }
 0x147   : > { %2899 = vmatmul.mubr.msk.bf16.vlgmr.msra.gmra.mrb[16].mxu1 %vm706_vm0, %v3347_v33  ;;  %v3884_v33 = vunpack.c.h.bf16 %v3142_v37  ;;  %v3886_v37 = vunpack.c.h.bf16 %v3171_v54  ;;  %v1344_v54 = vadd.f32 %v3335_v13, %v1305_v43  ;;  %v1348_v27 = vadd.f32 %v3335_v13, %v1309_v0 }
 0x148   : > { %2902 = vmatprep.mubr.msk.bf16.mxu1 %vm706_vm0, %v1394_v18  ;;  %v1349_v18 = vadd.f32 %v3335_v13, %v1310_v60  ;;  %v1378_v9 = vmax.f32 %v1346_v12, 0.0  ;;  %v1379_v23 = vmax.f32 %v1347_v50, 0.0  ;;  %v1314_v55 = vmul.f32 %v3896_v40, %v3324_v15 }
 0x149   : > { %v1302_v57 = vmul.f32 %v3884_v33, %v3324_v15  ;;  %v1304_v38 = vmul.f32 %v3886_v37, %v3324_v15  ;;  %v1376_v44 = vmax.f32 %v1344_v54, 0.0  ;;  %v1380_v45 = vmax.f32 %v1348_v27, 0.0 }
 0x14a   : > { %v1381_v29 = vmax.f32 %v1349_v18, 0.0  ;;  %v1401_v48 = vpack.c.bf16 %v1379_v23, %v1378_v9  ;;  %v1350_v33 = vadd.f32 %v3335_v13, %v1311_v2  ;;  %v1352_v61 = vadd.f32 %v3335_v13, %v1313_v6 }
 0x14b   : > { %v1341_v24 = vadd.f32 %v3335_v13, %v1302_v57  ;;  %v1343_v11 = vadd.f32 %v3335_v13, %v1304_v38  ;;  %v1400_v30 = vpack.c.bf16 %v1377_v4, %v1376_v44  ;;  %v1351_v57 = vadd.f32 %v3335_v13, %v1312_v36 }
 0x14c   : > { %v1353_v16 = vadd.f32 %v3335_v13, %v1314_v55  ;;  %v1382_v49 = vmax.f32 %v1350_v33, 0.0  ;;  %v3897_v32 = vunpack.c.l.bf16 %v3256_v39  ;;  %v3898_v63 = vunpack.c.h.bf16 %v3256_v39 }
 0x14d   : > { %v1373_v17 = vmax.f32 %v1341_v24, 0.0  ;;  %v1375_v31 = vmax.f32 %v1343_v11, 0.0  ;;  %v1384_v14 = vmax.f32 %v1352_v61, 0.0  ;;  %v3899_v3 = vunpack.c.l.bf16 %v3266_v51 }
 0x14e   : > { %v1315_v24 = vmul.f32 %v3897_v32, %v3324_v15  ;;  %v1316_v1 = vmul.f32 %v3898_v63, %v3324_v15  ;;  %v1385_v10 = vmax.f32 %v1353_v16, 0.0  ;;  %v3900_v38 = vunpack.c.h.bf16 %v3266_v51 }
 0x14f   : > { %2903 = vmatmul.mubr.msk.bf16.gmra.mrb[20].mxu1 %vm706_vm0, %v1395_v19  ;;  %v1398_v41 = vpack.c.bf16 %v1373_v17, %v1372_v59  ;;  %v1399_v20 = vpack.c.bf16 %v1375_v31, %v1374_v28  ;;  %v1402_v19 = vpack.c.bf16 %v1381_v29, %v1380_v45  ;;  %v1317_v37 = vmul.f32 %v3899_v3, %v3324_v15 }
 0x150   : > { %2906 = vmatprep.mubr.msk.bf16.mxu1 %vm706_vm0, %v1396_v52  ;;  %v1383_v52 = vmax.f32 %v1351_v57, 0.0  ;;  %v1318_v59 = vmul.f32 %v3900_v38, %v3324_v15  ;;  %v1354_v25 = vadd.f32 %v3335_v13, %v1315_v24  ;;  %v1355_v43 = vadd.f32 %v3335_v13, %v1316_v1 }
 0x151   : > { %v1404_v58 = vpack.c.bf16 %v1385_v10, %v1384_v14  ;;  %v1356_v39 = vadd.f32 %v3335_v13, %v1317_v37  ;;  %v3901_v11 = vunpack.c.l.bf16 %v3291_v46  ;;  %v3902_v51 = vunpack.c.h.bf16 %v3291_v46 }
 0x152   : > { %v1403_v17 = vpack.c.bf16 %v1383_v52, %v1382_v49  ;;  %v1357_v26 = vadd.f32 %v3335_v13, %v1318_v59  ;;  %v1387_v22 = vmax.f32 %v1355_v43, 0.0 }
 0x153   : > { %v1320_v54 = vmul.f32 %v3902_v51, %v3324_v15  ;;  %v1388_v53 = vmax.f32 %v1356_v39, 0.0 }
 0x154   : > { %v1389_v28 = vmax.f32 %v1357_v26, 0.0 }
 0x155   : > { %v1359_v21 = vadd.f32 %v3335_v13, %v1320_v54 }
 0x156   : > { %v1406_v62 = vpack.c.bf16 %v1389_v28, %v1388_v53 }
 0x157   : > { %2907 = vmatmul.mubr.msk.bf16.gmra.mrb[24].mxu1 %vm706_vm0, %v1397_v8  ;;  %v1386_v8 = vmax.f32 %v1354_v25, 0.0  ;;  %v1391_v44 = vmax.f32 %v1359_v21, 0.0 }
 0x158   : > { %2910 = vmatprep.mubr.msk.bf16.mxu1 %vm706_vm0, %v1398_v41  ;;  %v1319_v41 = vmul.f32 %v3901_v11, %v3324_v15 }
 0x159   : > { %v1405_v31 = vpack.c.bf16 %v1387_v22, %v1386_v8 }
 0x15a   : > { %v1358_v7 = vadd.f32 %v3335_v13, %v1319_v41 }
 0x15c   : > { %v1390_v5 = vmax.f32 %v1358_v7, 0.0 }
 0x15e   : > { %v1407_v4 = vpack.c.bf16 %v1391_v44, %v1390_v5 }
 0x15f   : > { %2911 = vmatmul.mubr.msk.bf16.gmra.mrb[28].mxu1 %vm706_vm0, %v1399_v20 }
 0x160   : > { %2914 = vmatprep.mubr.msk.bf16.mxu1 %vm706_vm0, %v1400_v30 }
 0x167   : > { %2915 = vmatmul.mubr.msk.bf16.gmra.mrb[0].mxu1 %vm706_vm0, %v1401_v48 }
 0x168   : > { %2918 = vmatprep.mubr.msk.bf16.mxu1 %vm706_vm0, %v1402_v19 }
 0x16f   : > { %2919 = vmatmul.mubr.msk.bf16.gmra.mrb[4].mxu1 %vm706_vm0, %v1403_v17 }
 0x170   : > { %2922 = vmatprep.mubr.msk.bf16.mxu1 %vm706_vm0, %v1404_v58 }
 0x177   : > { %2923 = vmatmul.mubr.msk.bf16.gmra.mrb[8].mxu1 %vm706_vm0, %v1405_v31 }
 0x178   : > { %2926 = vmatprep.mubr.msk.bf16.mxu1 %vm706_vm0, %v1406_v62 }
 0x17f   : > { %2927 = vmatmul.mubr.msk.bf16.gmra.mrb[12].mxu1 %vm706_vm0, %v1407_v4 }
 0x1cf   : > { %v2866_v46 = vpop.f32.mrb[32].mxu0 }
 0x1d0   : > { %v1624_v15 = vpop.f32.mrb[33].mxu0 }
 0x1d1   : > { %v2867_v42 = vpop.f32.mrb[34].mxu0 }
 0x1d2   : > { %v1627_v0 = vpop.f32.mrb[35].mxu0 }
 0x1d9   : > { %v2870_v35 = vpop.f32.mrb[36].mxu0 }
 0x1da   : > { %v1640_v60 = vpop.f32.mrb[37].mxu0 }
 0x1db   : > { %v2871_v20 = vpop.f32.mrb[38].mxu0 }
 0x1dc   : > { %v1643_v12 = vpop.f32.mrb[39].mxu0 }
 0x1e2   : > { %v2874_v13 = vpop.f32.mrb[40].mxu0 }
 0x1e3   : > { %v1656_v50 = vpop.f32.mrb[41].mxu0 }
 0x1e4   : > { %v2875_v30 = vpop.f32.mrb[42].mxu0 }
 0x1e5   : > { %v1659_v27 = vpop.f32.mrb[43].mxu0 }
 0x1eb   : > { %v2878_v18 = vpop.f32.mrb[44].mxu0 }
 0x1ec   : > { %v1672_v9 = vpop.f32.mrb[45].mxu0 }
 0x1ed   : > { %v2879_v23 = vpop.f32.mrb[46].mxu0 }
 0x1ee   : > { %v1675_v47 = vpop.f32.mrb[47].mxu0 }
 0x21a   : > { %v2900_v2 = vpop.f32.mrb[16].mxu1 }
 0x21b   : > { %v1848_v34 = vadd.f32 %v2900_v2, %v2866_v46  ;;  %v1839_v36 = vpop.f32.mrb[17].mxu1 }
 0x21c   : > { %v1840_v45 = vadd.f32 %v1839_v36, %v1624_v15  ;;  %v2901_v29 = vpop.f32.mrb[18].mxu1 }
 0x21d   : > { %v1851_v56 = vadd.f32 %v2901_v29, %v2867_v42  ;;  %v1842_v6 = vpop.f32.mrb[19].mxu1 }
 0x21e   : > { %v1843_v40 = vadd.f32 %v1842_v6, %v1627_v0 }
 0x21f   : > { %v2645_v55 = vpack.c.bf16 %v1851_v56, %v1848_v34 }
 0x220   : > { %v2640_v48 = vpack.c.bf16 %v1843_v40, %v1840_v45 }
 0x221   : > { %2762 = vst [vmem:[%s3800_s22 + $0x8] sm:$0xff] %v2645_v55  }
 0x222   : > { %2641 = vst [vmem:[%s3800_s22] sm:$0xff] %v2640_v48   ;;  %v2904_v33 = vpop.f32.mrb[20].mxu1 }
 0x223   : > { %v1864_v57 = vadd.f32 %v2904_v33, %v2870_v35  ;;  %v1855_v19 = vpop.f32.mrb[21].mxu1 }
 0x224   : > { %v1856_v61 = vadd.f32 %v1855_v19, %v1640_v60  ;;  %v2905_v16 = vpop.f32.mrb[22].mxu1 }
 0x225   : > { %v1867_v49 = vadd.f32 %v2905_v16, %v2871_v20  ;;  %v1858_v52 = vpop.f32.mrb[23].mxu1 }
 0x226   : > { %v1859_v32 = vadd.f32 %v1858_v52, %v1643_v12 }
 0x227   : > { %v2655_v24 = vpack.c.bf16 %v1867_v49, %v1864_v57 }
 0x228   : > { %v2650_v63 = vpack.c.bf16 %v1859_v32, %v1856_v61 }
 0x229   : > { %2764 = vst [vmem:[%s3800_s22 + $0x18] sm:$0xff] %v2655_v24  }
 0x22a   : > { %2763 = vst [vmem:[%s3800_s22 + $0x10] sm:$0xff] %v2650_v63   ;;  %v2908_v1 = vpop.f32.mrb[24].mxu1 }
 0x22b   : > { %v1880_v14 = vadd.f32 %v2908_v1, %v2874_v13  ;;  %v1871_v10 = vpop.f32.mrb[25].mxu1 }
 0x22c   : > { %v1872_v3 = vadd.f32 %v1871_v10, %v1656_v50  ;;  %v2909_v37 = vpop.f32.mrb[26].mxu1 }
 0x22d   : > { %v1883_v38 = vadd.f32 %v2909_v37, %v2875_v30  ;;  %v1874_v59 = vpop.f32.mrb[27].mxu1 }
 0x22e   : > { %v1875_v17 = vadd.f32 %v1874_v59, %v1659_v27 }
 0x22f   : > { %v2665_v25 = vpack.c.bf16 %v1883_v38, %v1880_v14 }
 0x230   : > { %v2660_v43 = vpack.c.bf16 %v1875_v17, %v1872_v3 }
 0x231   : > { %2766 = vst [vmem:[%s3800_s22 + $0x28] sm:$0xff] %v2665_v25  }
 0x232   : > { %2765 = vst [vmem:[%s3800_s22 + $0x20] sm:$0xff] %v2660_v43   ;;  %v2912_v58 = vpop.f32.mrb[28].mxu1 }
 0x233   : > { %v1896_v39 = vadd.f32 %v2912_v58, %v2878_v18  ;;  %v1887_v26 = vpop.f32.mrb[29].mxu1 }
 0x234   : > { %v1888_v8 = vadd.f32 %v1887_v26, %v1672_v9  ;;  %v2913_v22 = vpop.f32.mrb[30].mxu1 }
 0x235   : > { %v1899_v11 = vadd.f32 %v2913_v22, %v2879_v23  ;;  %v1890_v41 = vpop.f32.mrb[31].mxu1 }
 0x236   : > { %v1891_v51 = vadd.f32 %v1890_v41, %v1675_v47 }
 0x237   : > { %v2675_v54 = vpack.c.bf16 %v1899_v11, %v1896_v39 }
 0x238   : > { %v2670_v53 = vpack.c.bf16 %v1891_v51, %v1888_v8 }
 0x239   : > { %2768 = vst [vmem:[%s3800_s22 + $0x38] sm:$0xff] %v2675_v54  }
 0x23a   : > { %2767 = vst [vmem:[%s3800_s22 + $0x30] sm:$0xff] %v2670_v53   ;;  %v2916_v28 = vpop.f32.mrb[0].mxu1 }
 0x23b   : > { %v1903_v31 = vpop.f32.mrb[1].mxu1 }
 0x23c   : > { %v2917_v7 = vpop.f32.mrb[2].mxu1 }
 0x23d   : > { %v2685_v21 = vpack.c.bf16 %v2917_v7, %v2916_v28  ;;  %v1906_v62 = vpop.f32.mrb[3].mxu1 }
 0x23e   : > { %v2680_v5 = vpack.c.bf16 %v1906_v62, %v1903_v31 }
 0x23f   : > { %2770 = vst [vmem:[%s3800_s22 + $0x48] sm:$0xff] %v2685_v21  }
 0x240   : > { %2769 = vst [vmem:[%s3800_s22 + $0x40] sm:$0xff] %v2680_v5  }
 0x242   : > { %v2920_v44 = vpop.f32.mrb[4].mxu1 }
 0x243   : > { %v1919_v4 = vpop.f32.mrb[5].mxu1 }
 0x244   : > { %v2921_v46 = vpop.f32.mrb[6].mxu1 }
 0x245   : > { %v2695_v15 = vpack.c.bf16 %v2921_v46, %v2920_v44  ;;  %v1922_v42 = vpop.f32.mrb[7].mxu1 }
 0x246   : > { %v2690_v0 = vpack.c.bf16 %v1922_v42, %v1919_v4 }
 0x247   : > { %2772 = vst [vmem:[%s3800_s22 + $0x58] sm:$0xff] %v2695_v15  }
 0x248   : > { %2771 = vst [vmem:[%s3800_s22 + $0x50] sm:$0xff] %v2690_v0  }
 0x24a   : > { %v2924_v35 = vpop.f32.mrb[8].mxu1 }
 0x24b   : > { %v1935_v60 = vpop.f32.mrb[9].mxu1 }
 0x24c   : > { %v2925_v20 = vpop.f32.mrb[10].mxu1 }
 0x24d   : > { %v2705_v12 = vpack.c.bf16 %v2925_v20, %v2924_v35  ;;  %v1938_v13 = vpop.f32.mrb[11].mxu1 }
 0x24e   : > { %v2700_v50 = vpack.c.bf16 %v1938_v13, %v1935_v60 }
 0x24f   : > { %2774 = vst [vmem:[%s3800_s22 + $0x68] sm:$0xff] %v2705_v12  }
 0x250   : > { %2773 = vst [vmem:[%s3800_s22 + $0x60] sm:$0xff] %v2700_v50  }
 0x252   : > { %v2928_v30 = vpop.f32.mrb[12].mxu1 }
 0x253   : > { %v1951_v27 = vpop.f32.mrb[13].mxu1 }
 0x254   : > { %v2929_v18 = vpop.f32.mrb[14].mxu1 }
 0x255   : > { %v2715_v9 = vpack.c.bf16 %v2929_v18, %v2928_v30  ;;  %v1954_v23 = vpop.f32.mrb[15].mxu1 }
 0x256   : > { %v2710_v47 = vpack.c.bf16 %v1954_v23, %v1951_v27 }
 0x257   : > { %2776 = vst [vmem:[%s3800_s22 + $0x78] sm:$0xff] %v2715_v9  }
 0x258   : > { %2775 = vst [vmem:[%s3800_s22 + $0x70] sm:$0xff] %v2710_v47  }
 0x259 PF: > { %s25_s29 = sadd.s32 1, %s2982_s29  }
 0x25a   : > { %p22_p4 = scmp.ge.s32.totalorder %s25_s29, 4  }
 0x25c   :  { %24 = sbr.rel (!%p22_p4) target bundleno = 1 (0x1), region = 117 }

// kernel: pappm_forward.3
= control target key start
LH: loop header
LB: loop body
LE: loop exit
PB: predicated region body
PF: predicated region fallthrough
CT: control target
= control target key end

     0   :  { %s8514_s21 = smov 0   ;;  %s10571_s0 = inlined_call_operand.vmem [shape: bf16[2,16,16,128], index: 0, kind: input, shape index: {}]   ;;  %s10572_s1 = inlined_call_operand.vmem [shape: bf16[2,16,16,128], index: 1, kind: input, shape index: {}]   ;;  %s10573_s2 = inlined_call_operand.vmem [shape: bf16[9,128,128], index: 2, kind: input, shape index: {}]   ;;  %s10574_s3 = inlined_call_operand.vmem [shape: f32[1,128], index: 3, kind: input, shape index: {}]   ;;  %s10575_s4 = inlined_call_operand.vmem [shape: f32[1,128], index: 4, kind: input, shape index: {}]   ;;  %s10576_s5 = inlined_call_operand.vmem [shape: bf16[128,128], index: 5, kind: input, shape index: {}]   ;;  %s10577_s6 = inlined_call_operand.vmem [shape: f32[2,16,16,128], index: 6, kind: output, shape index: {}]  }
   0x1 LB: > { %s6925_s22 = sadd.s32 4294967295, %s8475_s21   ;;  %p6929_p0 = scmp.ge.s32.totalorder %s8475_s21, 1  ;;  %s8475_s21 = sphi %s8514_s21, %s16_s21  }
   0x2   : > { %p222_p1 = scmp.lt.s32.totalorder %s8475_s21, 3 }
   0x4   : > { %p223_p2 = pnand %p6929_p0, %p222_p1 }
   0x6   : > { %226 = sbr.rel (%p223_p2) target bundleno = 924 (0x39c), region = 44 }
   0xd   : > { %v8354_v0 = vld [vmem:[%s10573_s2 + $0x40] sm:$0xff]   ;;  %v8356_v2 = vld [vmem:[%s10573_s2 + $0x48] sm:$0xff]   ;;  %p8533_p3 = scmp.lt.s32.totalorder %s6925_s22, 1  ;;  %v8477_v3 = vmov 0   ;;  %v8358_v5 = vld [vmem:[%s10573_s2 + $0x50] sm:$0xff]   ;;  %vm310_vm0 = vcmask 1047553  }
   0xe   : > { %v8355_v1 = vld [vmem:[%s10573_s2 + $0x100] sm:$0xff]   ;;  %7536 = vmatprep.subr.bf16.mxu1 %v8354_v0  ;;  %273 = vst [vmem:[#allocation2] sm:$0xff] %v8477_v3  ;;  %274 = vst [vmem:[#allocation2 + $0x8] sm:$0xff] %v8477_v3  ;;  %v8357_v4 = vld [vmem:[%s10573_s2 + $0x108] sm:$0xff]   ;;  %vm316_vm1 = vcmask 1041408   ;;  %v8579_v14 = vrot.slane %v8477_v3, 1 }
   0xf   : > { %275 = vst [vmem:[#allocation2 + $0x10] sm:$0xff] %v8477_v3  ;;  %276 = vst [vmem:[#allocation2 + $0x18] sm:$0xff] %v8477_v3  ;;  %7744 = vmatprep.subr.bf16.mxu0 %v8355_v1  ;;  %7537 = vmatpush3.bf16.msra.mxu1 %v8354_v0  ;;  %v8359_v6 = vld [vmem:[%s10573_s2 + $0x110] sm:$0xff]   ;;  %s10903_s22 = smov (!%p8533_p3, %s6925_s22), 1  ;;  %v8360_v7 = vld [vmem:[%s10573_s2 + $0x58] sm:$0xff]   ;;  %vm339_vm3 = vcmask 1047554  }
  0x10   : > { %277 = vst [vmem:[#allocation2 + $0x20] sm:$0xff] %v8477_v3  ;;  %278 = vst [vmem:[#allocation2 + $0x28] sm:$0xff] %v8477_v3  ;;  %7745 = vmatpush3.bf16.msra.mxu0 %v8355_v1  ;;  %7538 = vmatprep.subr.bf16.mxu1 %v8356_v2  ;;  %v8361_v8 = vld [vmem:[%s10573_s2 + $0x118] sm:$0xff]   ;;  %s7194_s16 = sshll.u32 %s10903_s22, 7  ;;  %v8362_v9 = vld [vmem:[%s10573_s2 + $0x60] sm:$0xff]   ;;  %vm345_vm4 = vcmask 1042432  }
  0x11   : > { %279 = vst [vmem:[#allocation2 + $0x30] sm:$0xff] %v8477_v3  ;;  %280 = vst [vmem:[#allocation2 + $0x38] sm:$0xff] %v8477_v3  ;;  %7746 = vmatprep.subr.bf16.mxu0 %v8357_v4  ;;  %v8363_v10 = vld [vmem:[%s10573_s2 + $0x120] sm:$0xff]   ;;  %s8570_s25 = scalar_lea.vmem %s10571_s0, %s7194_s16  ;;  %v8364_v11 = vld [vmem:[%s10573_s2 + $0x68] sm:$0xff]   ;;  %vm311_vm2 = vsmask.f32 7942  ;;  %s9655_s27 = scalar_lea.vmem %s10572_s1, %s7194_s16 }
  0x12   : > { %283 = vst [vmem:[#allocation2 + $0x50] sm:$0xff] %v8477_v3  ;;  %284 = vst [vmem:[#allocation2 + $0x58] sm:$0xff] %v8477_v3  ;;  %v8370_v12 = vld [vmem:[%s8570_s25] sm:$0xff]   ;;  %v8365_v13 = vld [vmem:[%s10573_s2 + $0x128] sm:$0xff]   ;;  %vm317_vm5 = vsmask.f32 1280 }
  0x13   : > { %285 = vst [vmem:[#allocation2 + $0x60] sm:$0xff] %v8477_v3  ;;  %286 = vst [vmem:[#allocation2 + $0x68] sm:$0xff] %v8477_v3  ;;  %7539 = vmatpush3.bf16.msra.mxu1 %v8356_v2  ;;  %v8366_v15 = vld [vmem:[%s10573_s2 + $0x70] sm:$0xff]   ;;  %v302_v16 = vshrl.u32 %v8370_v12, 16  ;;  %v305_v17 = vshll.u32 %v8370_v12, 16  ;;  %vm368_vm6 = vcmask 1047555  }
  0x14   : > { %287 = vst [vmem:[#allocation2 + $0x70] sm:$0xff] %v8477_v3  ;;  %288 = vst [vmem:[#allocation2 + $0x78] sm:$0xff] %v8477_v3  ;;  %7747 = vmatpush3.bf16.msra.mxu0 %v8357_v4  ;;  %7540 = vmatprep.subr.bf16.mxu1 %v8358_v5  ;;  %v8367_v18 = vld [vmem:[%s10573_s2 + $0x130] sm:$0xff]   ;;  %vm374_vm7 = vcmask 1043456   ;;  %v8371_v23 = vld [vmem:[%s8570_s25 + $0x8] sm:$0xff]   ;;  %vm397_vm9 = vcmask 1047556  }
  0x15   : > { %289 = vst [vmem:[#allocation2 + $0x80] sm:$0xff] %v8477_v3  ;;  %292 = vst [vmem:[#allocation2 + $0x98] sm:$0xff] %v8477_v3  ;;  %7748 = vmatprep.subr.bf16.mxu0 %v8359_v6  ;;  %v304_v19 = vrot.slane %v302_v16, 6  ;;  %v307_v20 = vrot.slane %v305_v17, 7  ;;  %v313_v22 = vld [vmem:[#allocation2 + $0x8] sm:$0xfe] }
  0x16   : > { %293 = vst [vmem:[#allocation2 + $0xa0] sm:$0xff] %v8477_v3  ;;  %vm8589_vm8 = vmand %vm310_vm0, %vm311_vm2  ;;  %v319_v25 = vld [vmem:[#allocation2 + $0x10] sm:$0x3]  ;;  %vm340_vm11 = vsmask.f32 7946  ;;  %v8368_v26 = vld [vmem:[%s10573_s2 + $0x78] sm:$0xff]  }
  0x17   : > { %7541 = vmatpush3.bf16.msra.mxu1 %v8358_v5  ;;  %vm8595_vm10 = vmand %vm316_vm1, %vm317_vm5  ;;  %vm346_vm12 = vsmask.f32 2304  ;;  %v308_v27 = vor.u32 %v307_v20, %v304_v19  ;;  %v331_v28 = vshrl.u32 %v8371_v23, 16  ;;  %v334_v29 = vshll.u32 %v8371_v23, 16  ;;  %v8369_v30 = vld [vmem:[%s10573_s2 + $0x138] sm:$0xff]   ;;  %v8372_v32 = vld [vmem:[%s8570_s25 + $0x10] sm:$0xff]  }
  0x18   : > { %7749 = vmatpush3.bf16.msra.mxu0 %v8359_v6  ;;  %7542 = vmatprep.subr.bf16.mxu1 %v8360_v7  ;;  %vm10578_vm13 = vcmask 1044480   ;;  %v342_v31 = vld [vmem:[#allocation2 + $0x10] sm:$0xfc]  ;;  %vm369_vm14 = vsmask.f32 7950  ;;  %vm8612_vm0 = vmand %vm339_vm3, %vm340_vm11  ;;  %v360_v40 = vshrl.u32 %v8372_v32, 16 }
  0x19   : > { %7750 = vmatprep.subr.bf16.mxu0 %v8361_v8  ;;  %v314_v33 = vsel %vm8589_vm8, %v308_v27, %v313_v22  ;;  %v320_v34 = vsel %vm8595_vm10, %v308_v27, %v319_v25  ;;  %v333_v35 = vrot.slane %v331_v28, 5  ;;  %v336_v36 = vrot.slane %v334_v29, 6  ;;  %vm8618_vm2 = vmand %vm345_vm4, %vm346_vm12  ;;  %v348_v39 = vld [vmem:[#allocation2 + $0x18] sm:$0x7]  ;;  %v371_v43 = vld [vmem:[#allocation2 + $0x18] sm:$0xf8] }
  0x1a   : > { %315 = vst [vmem:[#allocation2 + $0x8] sm:$0xfe] %v314_v33  ;;  %321 = vst [vmem:[#allocation2 + $0x10] sm:$0x3] %v320_v34  ;;  %v363_v41 = vshll.u32 %v8372_v32, 16  ;;  %v362_v44 = vrot.slane %v360_v40, 4 }
  0x1b   : > { %7543 = vmatpush3.bf16.msra.mxu1 %v8360_v7  ;;  %vm375_vm5 = vsmask.f32 3328  ;;  %v337_v42 = vor.u32 %v336_v36, %v333_v35  ;;  %vm8624_vm11 = vmand %vm368_vm6, %vm369_vm14  ;;  %v8631_v47 = vld [vmem:[%s10573_s2 + $0x140] sm:$0xff]   ;;  %v8374_v48 = vld [vmem:[%s8570_s25 + $0x18] sm:$0xff]   ;;  %vm398_vm6 = vsmask.f32 7954 }
  0x1c   : > { %7751 = vmatpush3.bf16.msra.mxu0 %v8361_v8  ;;  %7544 = vmatprep.subr.bf16.mxu1 %v8362_v9  ;;  %v365_v45 = vrot.slane %v363_v41, 5  ;;  %vm8639_vm4 = vmand %vm374_vm7, %vm375_vm5  ;;  %v377_v52 = vld [vmem:[#allocation2 + $0x20] sm:$0xf]  ;;  %vm10585_vm12 = vsmask.f32 6400  ;;  %v389_v54 = vshrl.u32 %v8374_v48, 16 }
  0x1d   : > { %7752 = vmatprep.subr.bf16.mxu0 %v8363_v10  ;;  %v343_v49 = vsel %vm8612_vm0, %v337_v42, %v342_v31  ;;  %v349_v50 = vsel %vm8618_vm2, %v337_v42, %v348_v39  ;;  %v392_v55 = vshll.u32 %v8374_v48, 16  ;;  %v8375_v56 = vld [vmem:[%s8570_s25 + $0x20] sm:$0xff]   ;;  %vm404_vm3 = vsmask.f32 4352  ;;  %vm8650_vm7 = vmand %vm397_vm9, %vm398_vm6  ;;  %v406_v63 = vld [vmem:[#allocation2 + $0x28] sm:$0x1f] }
  0x1e   : > { %344 = vst [vmem:[#allocation2 + $0x10] sm:$0xfc] %v343_v49  ;;  %350 = vst [vmem:[#allocation2 + $0x18] sm:$0x7] %v349_v50  ;;  %v366_v53 = vor.u32 %v365_v45, %v362_v44  ;;  %vm427_vm1 = vsmask.f32 7958 }
  0x1f   : > { %7545 = vmatpush3.bf16.msra.mxu1 %v8362_v9  ;;  %v391_v59 = vrot.slane %v389_v54, 3  ;;  %v394_v60 = vrot.slane %v392_v55, 4  ;;  %v400_v62 = vld [vmem:[#allocation2 + $0x20] sm:$0xf0]  ;;  %v418_v2 = vshrl.u32 %v8375_v56, 16  ;;  %v421_v3 = vshll.u32 %v8375_v56, 16  ;;  %vm8658_vm9 = vmand %vm10578_vm13, %vm404_vm3 }
  0x20   : > { %7753 = vmatpush3.bf16.msra.mxu0 %v8363_v10  ;;  %7546 = vmatprep.subr.bf16.mxu1 %v8364_v11  ;;  %v372_v57 = vsel %vm8624_vm11, %v366_v53, %v371_v43  ;;  %v378_v58 = vsel %vm8639_vm4, %v366_v53, %v377_v52  ;;  %v8377_v4 = vld [vmem:[%s8570_s25 + $0x28] sm:$0xff]   ;;  %vm10649_vm6 = vcmask 1047557   ;;  %vm10579_vm14 = vsmask.f32 5376  ;;  %v458_v39 = vld [vmem:[#allocation2 + $0x30] sm:$0xc0] }
  0x21   : > { %7754 = vmatprep.subr.bf16.mxu0 %v8365_v13  ;;  %v709_v0 = vld [vmem:[#allocation2 + $0x8] sm:$0xff]  ;;  %373 = vst [vmem:[#allocation2 + $0x18] sm:$0xf8] %v372_v57  ;;  %379 = vst [vmem:[#allocation2 + $0x20] sm:$0xf] %v378_v58  ;;  %v395_v12 = vor.u32 %v394_v60, %v391_v59  ;;  %vm10652_vm3 = vcmask 1045504  }
  0x22   : > { %v1729_v1 = vld [vmem:[#allocation2 + $0x8] sm:$0xfe]  ;;  %v768_v5 = vshll.u32 %v709_v0, 16  ;;  %v772_v8 = vshrl.u32 %v709_v0, 16  ;;  %vm8664_vm15 = vmand %vm10649_vm6, %vm427_vm1  ;;  %v10653_v20 = vmov 0  ;;  %v447_v22 = vshrl.u32 %v8377_v4, 16 }
  0x23   : > { %7547 = vmatpush3.bf16.msra.mxu1 %v8364_v11  ;;  %v2119_v6 = vshrl.u32 %v1729_v1, 16  ;;  %v2122_v7 = vshll.u32 %v1729_v1, 16  ;;  %v429_v10 = vld [vmem:[#allocation2 + $0x28] sm:$0xe0]  ;;  %v435_v11 = vld [vmem:[#allocation2 + $0x30] sm:$0x3f]  ;;  %vm8670_vm13 = vmand %vm10652_vm3, %vm10579_vm14  ;;  %v401_v25 = vsel %vm8650_vm7, %v395_v12, %v400_v62 }
  0x24   : > { %7755 = vmatpush3.bf16.msra.mxu0 %v8365_v13  ;;  %7548 = vmatprep.subr.bf16.mxu1 %v8366_v15  ;;  %v420_v13 = vrot.slane %v418_v2, 2  ;;  %v770_v17 = vrot.slane %v768_v5, 1  ;;  %v10654_v20 = vsel %vm8670_vm13, 4294967295, %v10653_v20  ;;  %v450_v28 = vshll.u32 %v8377_v4, 16  ;;  %402 = vst [vmem:[#allocation2 + $0x20] sm:$0xf0] %v401_v25 }
  0x25   : > { %7756 = vmatprep.subr.bf16.mxu0 %v8367_v18  ;;  %v2124_v19 = vrot.slane %v2122_v7, 2  ;;  %v8674_v23 = vld [vmem:[#allocation2 + $0x10] sm:$0xff]  ;;  %vm10655_vm1 = vsmask.f32 7424  ;;  %v449_v36 = vrot.slane %v447_v22, 1  ;;  %vm10656_vm3 = vcmask 1046528  }
  0x26   : > { %v771_v29 = vsel %vm10655_vm1, %v8579_v14, %v770_v17  ;;  %v2127_v31 = vshrl.u32 %v8674_v23, 16  ;;  %v2130_v32 = vshll.u32 %v8674_v23, 16  ;;  %v774_v33 = vor.u32 %v772_v8, %v770_v17  ;;  %v464_v40 = vld [vmem:[#allocation2 + $0x38] sm:$0x7f]  ;;  %v8378_v14 = vld [vmem:[%s8570_s25 + $0x30] sm:$0xff]   ;;  %vm8695_vm1 = vmand %vm10656_vm3, %vm10585_vm12  ;;  %s7196_s16 = sshll.u32 %s10903_s22, 8 }
  0x27   : > { %7549 = vmatpush3.bf16.msra.mxu1 %v8366_v15  ;;  %v423_v15 = vrot.slane %v421_v3, 3  ;;  %7552 = vmatprep.mubr.bf16.mxu1 %v771_v29  ;;  %v452_v45 = vrot.slane %v450_v28, 2  ;;  %vm456_vm6 = vsmask.f32 7962  ;;  %v10657_v50 = vmov 0  ;;  %v8380_v54 = vld [vmem:[%s8570_s25 + $0x38] sm:$0xff]   ;;  %s10025_s29 = scalar_lea.vmem %s10577_s6, %s7196_s16 }
  0x28   : > { %7757 = vmatpush3.bf16.msra.mxu0 %v8367_v18  ;;  %7550 = vmatprep.subr.bf16.mxu1 %v8368_v26  ;;  %v2121_v18 = vrot.slane %v2119_v6, 1  ;;  %v2129_v41 = vrot.slane %v2127_v31, 1  ;;  %v2132_v42 = vrot.slane %v2130_v32, 2  ;;  %v778_v43 = vrot.slane %v2130_v32, 1  ;;  %v8689_v44 = vld [vmem:[#allocation2 + $0x18] sm:$0xff]  ;;  %v8394_v51 = vld [vmem:[%s10573_s2 + $0x170] sm:$0xff]  }
  0x29   : > { %7758 = vmatprep.subr.bf16.mxu0 %v8369_v30  ;;  %v424_v27 = vor.u32 %v423_v15, %v420_v13  ;;  %v2136_v48 = vshrl.u32 %v8689_v44, 16  ;;  %v2139_v49 = vshll.u32 %v8689_v44, 16  ;;  %v10658_v50 = vsel %vm8695_vm1, 4294967295, %v10657_v50  ;;  %v487_v53 = vld [vmem:[#allocation2 + $0x38] sm:$0x80]  ;;  %v8376_v13 = vld [vmem:[%s10573_s2 + $0x148] sm:$0xff]  }
  0x2a   : > { %v476_v52 = vshll.u32 %v8378_v14, 16  ;;  %v2133_v55 = vor.u32 %v2132_v42, %v2129_v41  ;;  %vm10659_vm14 = vsmask.f32 7424  ;;  %v782_v57 = vor.u32 %v2127_v31, %v778_v43  ;;  %v8393_v21 = vld [vmem:[%s10573_s2 + $0x18] sm:$0xff]   ;;  %v679_v9 = vld [vmem:[#allocation2 + $0x80] sm:$0x80] }
  0x2b   : > { %7551 = vmatpush3.bf16.msra.mxu1 %v8368_v26  ;;  %v407_v26 = vsel %vm8658_vm9, %v395_v12, %v406_v63  ;;  %v430_v34 = vsel %vm8664_vm15, %v424_v27, %v429_v10  ;;  %v436_v35 = vsel %vm8670_vm13, %v424_v27, %v435_v11  ;;  %v779_v56 = vsel %vm10659_vm14, %v774_v33, %v778_v43  ;;  %v8712_v6 = vld [vmem:[#allocation2 + $0x20] sm:$0xff] }
  0x2c   : > { %7759 = vmatpush3.bf16.msra.mxu0 %v8369_v30  ;;  %v2125_v30 = vor.u32 %v2124_v19, %v2121_v18  ;;  %408 = vst [vmem:[#allocation2 + $0x28] sm:$0x1f] %v407_v26  ;;  %431 = vst [vmem:[#allocation2 + $0x28] sm:$0xe0] %v430_v34  ;;  %v453_v58 = vor.u32 %v452_v45, %v449_v36  ;;  %vm10660_vm5 = vcmask 1047558   ;;  %v2138_v60 = vrot.slane %v2136_v48, 1 }
  0x2d   : > { %7796 = vmatprep.subr.bf16.mxu0 %v8631_v47  ;;  %437 = vst [vmem:[#allocation2 + $0x30] sm:$0x3f] %v436_v35  ;;  %vm8702_vm13 = vmand %vm10660_vm5, %vm456_vm6  ;;  %v2141_v62 = vrot.slane %v2139_v49, 2  ;;  %v786_v63 = vrot.slane %v2139_v49, 1  ;;  %v478_v0 = vrot.slane %v476_v52, 1  ;;  %vm10664_vm6 = vcmask 1047559  }
  0x2e   : > { %7553 = vmatmul.mubr.bf16.vlgmr.msra.gmra.mrb[0].mxu1 %v779_v56  ;;  %v2134_v1 = vsel %vm10585_vm12, %v2125_v30, %v2133_v55  ;;  %v459_v2 = vsel %vm8702_vm13, %v453_v58, %v458_v39  ;;  %v465_v3 = vsel %vm8695_vm1, %v453_v58, %v464_v40  ;;  %vm485_vm14 = vsmask.f32 7966  ;;  %v8379_v40 = vld [vmem:[%s10573_s2 + $0x150] sm:$0xff]   ;;  %v8381_v56 = vld [vmem:[%s10573_s2 + $0x158] sm:$0xff]   ;;  %v8396_v16 = vld [vmem:[%s10573_s2 + $0x20] sm:$0xff]  }
  0x2f   : > { %7760 = vmatprep.mubr.bf16.mxu0 %v2134_v1  ;;  %v2142_v4 = vor.u32 %v2141_v62, %v2138_v60  ;;  %vm10663_vm5 = vsmask.f32 7424  ;;  %v790_v7 = vor.u32 %v2136_v48, %v786_v63  ;;  %460 = vst [vmem:[#allocation2 + $0x30] sm:$0xc0] %v459_v2  ;;  %466 = vst [vmem:[#allocation2 + $0x38] sm:$0x7f] %v465_v3 }
  0x30   : > { %v787_v5 = vsel %vm10663_vm5, %v782_v57, %v786_v63  ;;  %vm8715_vm3 = vmand %vm10664_vm6, %vm485_vm14  ;;  %v10665_v8 = vmov 0  ;;  %v479_v10 = vshrl.u32 %v8378_v14, 16  ;;  %v2145_v11 = vshrl.u32 %v8712_v6, 16 }
  0x31   : > { %v10666_v8 = vsel %vm8715_vm3, 4294967295, %v10665_v8  ;;  %7556 = vmatprep.mubr.bf16.mxu1 %v787_v5  ;;  %v2148_v12 = vshll.u32 %v8712_v6, 16  ;;  %v488_v15 = vsel %vm8715_vm3, %v478_v0, %v487_v53  ;;  %vm10581_vm5 = vcmask 1047552   ;;  %v8382_v5 = vld [vmem:[%s8570_s25 + $0x40] sm:$0xff]  }
  0x32   : > { %v2143_v17 = vsel %vm10585_vm12, %v2133_v55, %v2142_v4  ;;  %489 = vst [vmem:[#allocation2 + $0x38] sm:$0x80] %v488_v15  ;;  %v481_v19 = vor.u32 %v479_v10, %v478_v0  ;;  %vm10667_vm14 = vsmask.f32 7424  ;;  %v10668_v22 = vmov 0 }
  0x33   : > { %v8727_v18 = vld [vmem:[#allocation2 + $0x28] sm:$0xff]  ;;  %vm8731_vm6 = vmand %vm10581_vm5, %vm10667_vm14  ;;  %v505_v25 = vshrl.u32 %v8380_v54, 16  ;;  %v508_v26 = vshll.u32 %v8380_v54, 16  ;;  %7761 = vmatmul.mubr.bf16.vlgmr.msra.gmra.mrb[0].mxu0 %v2143_v17  ;;  %v2147_v27 = vrot.slane %v2145_v11, 1  ;;  %v2150_v28 = vrot.slane %v2148_v12, 2 }
  0x34   : > { %v10669_v22 = vsel %vm8731_vm6, 4294967295, %v10668_v22  ;;  %v794_v29 = vrot.slane %v2148_v12, 1  ;;  %v2154_v30 = vshrl.u32 %v8727_v18, 16  ;;  %7797 = vmatpush3.bf16.msra.mxu0 %v8631_v47  ;;  %v2157_v31 = vshll.u32 %v8727_v18, 16  ;;  %vm10670_vm5 = vmmov %vm10667_vm14  ;;  %v521_v0 = vld [vmem:[#allocation2 + $0x50] sm:$0x1] }
  0x35   : > { %v8740_v32 = vsel %vm8731_vm6, %v481_v19, 0  ;;  %v8742_v33 = vrot.slane %v505_v25, 7  ;;  %v2151_v34 = vor.u32 %v2150_v28, %v2147_v27  ;;  %7798 = vmatprep.subr.bf16.mxu0 %v8376_v13  ;;  %vm519_vm14 = vsmask.f32 256  ;;  %v8384_v27 = vld [vmem:[%s10573_s2 + $0x160] sm:$0xff]  }
  0x36   : > { %v795_v35 = vsel %vm10670_vm5, %v790_v7, %v794_v29  ;;  %v2156_v36 = vrot.slane %v2154_v30, 1  ;;  %v798_v39 = vor.u32 %v2145_v11, %v794_v29  ;;  %495 = vst [vmem:[#allocation2 + $0x40] sm:$0xff] %v8740_v32  ;;  %v2159_v47 = vrot.slane %v2157_v31, 2  ;;  %v8752_v45 = vld [vmem:[#allocation2 + $0x30] sm:$0xff]  ;;  %v8772_v7 = vld [vmem:[%s8570_s25 + $0x48] sm:$0xff]   ;;  %v8386_v28 = vld [vmem:[%s10573_s2] sm:$0xff]  }
  0x37   : > { %7557 = vmatmul.mubr.bf16.gmra.mrb[4].mxu1 %v795_v35  ;;  %v802_v14 = vrot.slane %v2157_v31, 1  ;;  %v2181_v41 = vshrl.u32 %v8740_v32, 16  ;;  %v2184_v42 = vshll.u32 %v8740_v32, 16  ;;  %v2152_v43 = vsel %vm10585_vm12, %v2142_v4, %v2151_v34  ;;  %7588 = vmatprep.subr.bf16.mxu1 %v8386_v28 }
  0x38   : > { %v510_v48 = vor.u32 %v508_v26, %v8742_v33  ;;  %vm518_vm5 = vcmask 1040384   ;;  %7764 = vmatprep.mubr.bf16.mxu0 %v2152_v43  ;;  %v2160_v49 = vor.u32 %v2159_v47, %v2156_v36  ;;  %7799 = vmatpush3.bf16.msra.mxu0 %v8376_v13  ;;  %vm10671_vm6 = vsmask.f32 7424  ;;  %v8385_v47 = vld [vmem:[%s8570_s25 + $0x50] sm:$0xff]  }
  0x39   : > { %v803_v52 = vsel %vm10671_vm6, %v798_v39, %v802_v14  ;;  %v2163_v53 = vshrl.u32 %v8752_v45, 16  ;;  %v2166_v54 = vshll.u32 %v8752_v45, 16  ;;  %vm10672_vm3 = vsmask.f32 7938  ;;  %v8767_v58 = vld [vmem:[#allocation2 + $0x38] sm:$0xff]  ;;  %7800 = vmatprep.subr.bf16.mxu0 %v8379_v40  ;;  %7589 = vmatpush3.bf16.msra.mxu1 %v8386_v28 }
  0x3a   : > { %vm10673_vm1 = vcmask 1047552   ;;  %7560 = vmatprep.mubr.bf16.mxu1 %v803_v52  ;;  %v806_v57 = vor.u32 %v2154_v30, %v802_v14  ;;  %v2183_v60 = vrot.slane %v2181_v41, 1  ;;  %v2186_v62 = vrot.slane %v2184_v42, 2  ;;  %v8387_v52 = vld [vmem:[%s8570_s25 + $0x58] sm:$0xff]  }
  0x3b   : > { %vm8760_vm12 = vmand %vm10673_vm1, %vm10672_vm3  ;;  %v826_v63 = vrot.slane %v2184_v42, 1  ;;  %vm10676_vm6 = vsmask.f32 6400  ;;  %v2165_v2 = vrot.slane %v2163_v53, 1  ;;  %v2168_v3 = vrot.slane %v2166_v54, 2 }
  0x3c   : > { %v2161_v1 = vsel %vm10676_vm6, %v2151_v34, %v2160_v49  ;;  %v810_v4 = vrot.slane %v2166_v54, 1  ;;  %v2172_v10 = vshrl.u32 %v8767_v58, 16  ;;  %v2175_v11 = vshll.u32 %v8767_v58, 16  ;;  %vm8784_vm1 = vmand %vm518_vm5, %vm519_vm14  ;;  %7801 = vmatpush3.bf16.msra.mxu0 %v8379_v40  ;;  %v564_v28 = vld [vmem:[#allocation2 + $0x58] sm:$0xfc] }
  0x3d   : > { %7765 = vmatmul.mubr.bf16.gmra.mrb[4].mxu0 %v2161_v1  ;;  %v8776_v12 = vor.u32 %v2186_v62, %v2183_v60  ;;  %v8780_v13 = vsel %vm8760_vm12, %v510_v48, 0  ;;  %v2169_v17 = vor.u32 %v2168_v3, %v2165_v2  ;;  %vm10679_vm3 = vsmask.f32 7424  ;;  %7802 = vmatprep.subr.bf16.mxu0 %v8381_v56  ;;  %vm10680_vm14 = vmmov %vm10676_vm6  ;;  %v541_v62 = vld [vmem:[#allocation2 + $0x50] sm:$0xfe] }
  0x3e   : > { %v811_v19 = vsel %vm10679_vm3, %v806_v57, %v810_v4  ;;  %v814_v25 = vor.u32 %v2163_v53, %v810_v4  ;;  %517 = vst [vmem:[#allocation2 + $0x48] sm:$0xff] %v8780_v13  ;;  %v2190_v26 = vshrl.u32 %v8780_v13, 16  ;;  %v2174_v29 = vrot.slane %v2172_v10, 1  ;;  %vm10681_vm5 = vmmov %vm10679_vm3  ;;  %v544_v3 = vld [vmem:[#allocation2 + $0x58] sm:$0x3]  ;;  %v8389_v4 = vld [vmem:[%s10573_s2 + $0x168] sm:$0xff]  }
  0x3f   : > { %v2177_v30 = vrot.slane %v2175_v11, 2  ;;  %v818_v31 = vrot.slane %v2175_v11, 1  ;;  %v2193_v34 = vshll.u32 %v8780_v13, 16  ;;  %v2170_v35 = vsel %vm10680_vm14, %v2160_v49, %v2169_v17  ;;  %7561 = vmatmul.mubr.bf16.gmra.mrb[8].mxu1 %v811_v19  ;;  %v8388_v49 = vld [vmem:[%s10573_s2 + $0x8] sm:$0xff]   ;;  %vm10682_vm3 = vmmov %vm10676_vm6  ;;  %v8391_v19 = vld [vmem:[%s10573_s2 + $0x10] sm:$0xff]  }
  0x40   : > { %v2192_v36 = vrot.slane %v2190_v26, 1  ;;  %v830_v39 = vor.u32 %v2181_v41, %v826_v63  ;;  %v522_v40 = vsel %vm8784_vm1, %v8742_v33, %v521_v0  ;;  %7768 = vmatprep.mubr.bf16.mxu0 %v2170_v35  ;;  %7803 = vmatpush3.bf16.msra.mxu0 %v8381_v56  ;;  %v533_v33 = vshrl.u32 %v8382_v5, 16  ;;  %vm10683_vm14 = vmmov %vm10681_vm5  ;;  %v8392_v35 = vld [vmem:[%s8570_s25 + $0x68] sm:$0xff]  }
  0x41   : > { %v2178_v14 = vor.u32 %v2177_v30, %v2174_v29  ;;  %v819_v42 = vsel %vm10681_vm5, %v814_v25, %v818_v31  ;;  %v822_v43 = vor.u32 %v2172_v10, %v818_v31  ;;  %v2195_v48 = vrot.slane %v2193_v34, 2  ;;  %523 = vst [vmem:[#allocation2 + $0x50] sm:$0x1] %v522_v40  ;;  %7804 = vmatprep.subr.bf16.mxu0 %v8384_v27  ;;  %v567_v29 = vld [vmem:[#allocation2 + $0x60] sm:$0x7] }
  0x42   : > { %7564 = vmatprep.mubr.bf16.mxu1 %v819_v42  ;;  %v8810_v41 = vrot.slane %v2193_v34, 1  ;;  %v536_v53 = vshll.u32 %v8382_v5, 16  ;;  %v556_v54 = vshrl.u32 %v8772_v7, 16  ;;  %v535_v2 = vrot.slane %v533_v33, 6  ;;  %7590 = vmatprep.subr.bf16.mxu1 %v8388_v49  ;;  %v8390_v5 = vld [vmem:[%s8570_s25 + $0x60] sm:$0xff]  }
  0x43   : > { %v2179_v57 = vsel %vm10676_vm6, %v2169_v17, %v2178_v14  ;;  %v2188_v60 = vsel %vm10682_vm3, %v2178_v14, %v8776_v12  ;;  %v827_v0 = vsel %vm10683_vm14, %v822_v43, %v826_v63  ;;  %v8817_v1 = vor.u32 %v2195_v48, %v2192_v36  ;;  %7591 = vmatpush3.bf16.msra.mxu1 %v8388_v49  ;;  %v587_v40 = vld [vmem:[#allocation2 + $0x60] sm:$0xf8]  ;;  %v590_v14 = vld [vmem:[#allocation2 + $0x68] sm:$0xf]  ;;  %v610_v49 = vld [vmem:[#allocation2 + $0x68] sm:$0xf0] }
  0x44   : > { %v538_v56 = vrot.slane %v536_v53, 7  ;;  %v835_v10 = vsel %vm10681_vm5, %v830_v39, %v8810_v41  ;;  %v558_v11 = vrot.slane %v556_v54, 5  ;;  %v559_v17 = vshll.u32 %v8772_v7, 16  ;;  %7805 = vmatpush3.bf16.msra.mxu0 %v8384_v27  ;;  %7592 = vmatprep.subr.bf16.mxu1 %v8391_v19  ;;  %v633_v33 = vld [vmem:[#allocation2 + $0x70] sm:$0xe0] }
  0x45   : > { %7769 = vmatmul.mubr.bf16.gmra.mrb[8].mxu0 %v2179_v57  ;;  %v579_v63 = vshrl.u32 %v8385_v47, 16  ;;  %v582_v30 = vshll.u32 %v8385_v47, 16  ;;  %v602_v31 = vshrl.u32 %v8387_v52, 16  ;;  %v605_v34 = vshll.u32 %v8387_v52, 16  ;;  %7806 = vmatprep.subr.bf16.mxu0 %v8389_v4  ;;  %v613_v52 = vld [vmem:[#allocation2 + $0x70] sm:$0x1f] }
  0x46   : > { %7772 = vmatprep.mubr.bf16.mxu0 %v2188_v60  ;;  %v539_v25 = vor.u32 %v538_v56, %v535_v2  ;;  %v561_v36 = vrot.slane %v559_v17, 6  ;;  %v625_v7 = vshrl.u32 %v8390_v5, 16  ;;  %v628_v42 = vshll.u32 %v8390_v5, 16  ;;  %v636_v2 = vld [vmem:[#allocation2 + $0x78] sm:$0x3f] }
  0x47   : > { %v581_v39 = vrot.slane %v579_v63, 4  ;;  %7565 = vmatmul.mubr.bf16.gmra.mrb[12].mxu1 %v827_v0  ;;  %v584_v48 = vrot.slane %v582_v30, 5  ;;  %v604_v47 = vrot.slane %v602_v31, 3  ;;  %v607_v54 = vrot.slane %v605_v34, 4  ;;  %v656_v17 = vld [vmem:[#allocation2 + $0x78] sm:$0xc0] }
  0x48   : > { %v542_v43 = vsel %vm8589_vm8, %v539_v25, %v541_v62  ;;  %v545_v27 = vsel %vm8595_vm10, %v539_v25, %v544_v3  ;;  %7568 = vmatprep.mubr.bf16.mxu1 %v835_v10  ;;  %v562_v53 = vor.u32 %v561_v36, %v558_v11  ;;  %v627_v57 = vrot.slane %v625_v7, 2  ;;  %7593 = vmatpush3.bf16.msra.mxu1 %v8391_v19  ;;  %vm10684_vm8 = vmmov %vm10682_vm3 }
  0x49   : > { %543 = vst [vmem:[#allocation2 + $0x50] sm:$0xfe] %v542_v43  ;;  %546 = vst [vmem:[#allocation2 + $0x58] sm:$0x3] %v545_v27  ;;  %v630_v60 = vrot.slane %v628_v42, 3  ;;  %v2197_v24 = vsel %vm10684_vm8, %v8776_v12, %v8817_v1  ;;  %v585_v62 = vor.u32 %v584_v48, %v581_v39  ;;  %7807 = vmatpush3.bf16.msra.mxu0 %v8389_v4  ;;  %v648_v0 = vshrl.u32 %v8392_v35, 16 }
  0x4a   : > { %v651_v56 = vshll.u32 %v8392_v35, 16  ;;  %v565_v3 = vsel %vm8612_vm0, %v562_v53, %v564_v28  ;;  %v568_v5 = vsel %vm8618_vm2, %v562_v53, %v567_v29  ;;  %v608_v10 = vor.u32 %v607_v54, %v604_v47  ;;  %7594 = vmatprep.subr.bf16.mxu1 %v8393_v21  ;;  %v659_v28 = vld [vmem:[#allocation2 + $0x80] sm:$0x7f]  ;;  %v8860_v29 = vld [vmem:[%s8570_s25 + $0x70] sm:$0xff]   ;;  %7808 = vmatprep.subr.bf16.mxu0 %v8394_v51  ;;  %v8397_v35 = vld [vmem:[%s10573_s2 + $0x28] sm:$0xff]  }
  0x4b   : > { %v631_v11 = vor.u32 %v630_v60, %v627_v57  ;;  %566 = vst [vmem:[#allocation2 + $0x58] sm:$0xfc] %v565_v3  ;;  %569 = vst [vmem:[#allocation2 + $0x60] sm:$0x7] %v568_v5  ;;  %v588_v63 = vsel %vm8624_vm11, %v585_v62, %v587_v40  ;;  %v591_v12 = vsel %vm8639_vm4, %v585_v62, %v590_v14  ;;  %v650_v4 = vrot.slane %v648_v0, 1  ;;  %v8909_v5 = vld [vmem:[%s10573_s2 + $0x180] sm:$0xff]  }
  0x4c   : > { %v653_v19 = vrot.slane %v651_v56, 2  ;;  %589 = vst [vmem:[#allocation2 + $0x60] sm:$0xf8] %v588_v63  ;;  %592 = vst [vmem:[#allocation2 + $0x68] sm:$0xf] %v591_v12  ;;  %v611_v37 = vsel %vm8650_vm7, %v608_v10, %v610_v49  ;;  %v614_v38 = vsel %vm8658_vm9, %v608_v10, %v613_v52  ;;  %vm10685_vm10 = vnez %v10654_v20  ;;  %7595 = vmatpush3.bf16.msra.mxu1 %v8393_v21  ;;  %v8400_v21 = vld [vmem:[%s10573_s2 + $0x30] sm:$0xff]  }
  0x4d   : > { %7773 = vmatmul.mubr.bf16.gmra.mrb[12].mxu0 %v2197_v24  ;;  %v634_v25 = vsel %vm8664_vm15, %v631_v11, %v633_v33  ;;  %v637_v46 = vsel %vm10685_vm10, %v631_v11, %v636_v2  ;;  %612 = vst [vmem:[#allocation2 + $0x68] sm:$0xf0] %v611_v37  ;;  %615 = vst [vmem:[#allocation2 + $0x70] sm:$0x1f] %v614_v38  ;;  %vm10686_vm15 = vnez %v10658_v50  ;;  %v671_v34 = vshll.u32 %v8860_v29, 16  ;;  %v8401_v38 = vld [vmem:[%s10573_s2 + $0x38] sm:$0xff]  }
  0x4e   : > { %635 = vst [vmem:[#allocation2 + $0x70] sm:$0xe0] %v634_v25  ;;  %638 = vst [vmem:[#allocation2 + $0x78] sm:$0x3f] %v637_v46  ;;  %v654_v61 = vor.u32 %v653_v19, %v650_v4  ;;  %7809 = vmatpush3.bf16.msra.mxu0 %v8394_v51  ;;  %v838_v40 = vor.u32 %v2190_v26, %v8810_v41  ;;  %7596 = vmatprep.subr.bf16.mxu1 %v8396_v16  ;;  %v674_v59 = vshrl.u32 %v8860_v29, 16  ;;  %v8399_v41 = vld [vmem:[%s10573_s2 + $0x178] sm:$0xff]  }
  0x4f   : > { %v673_v50 = vrot.slane %v671_v34, 1  ;;  %vm10688_vm0 = vmmov %vm10681_vm5  ;;  %7810 = vmatprep.subr.bf16.mxu0 %v8399_v41  ;;  %vm10696_vm14 = vnez %v10669_v22 }
  0x50   : > { %v8865_v20 = vld [vmem:[#allocation2 + $0x50] sm:$0xff]  ;;  %v657_v30 = vsel %vm8702_vm13, %v654_v61, %v656_v17  ;;  %v660_v31 = vsel %vm10686_vm15, %v654_v61, %v659_v28  ;;  %7597 = vmatpush3.bf16.msra.mxu1 %v8396_v16  ;;  %vm10687_vm13 = vnez %v10666_v8  ;;  %vm10689_vm2 = vmmov %vm10682_vm3 }
  0x51   : > { %v2199_v36 = vshrl.u32 %v8865_v20, 16  ;;  %v2202_v39 = vshll.u32 %v8865_v20, 16  ;;  %658 = vst [vmem:[#allocation2 + $0x78] sm:$0xc0] %v657_v30  ;;  %661 = vst [vmem:[#allocation2 + $0x80] sm:$0x7f] %v660_v31  ;;  %7598 = vmatprep.subr.bf16.mxu1 %v8397_v35  ;;  %v680_v26 = vsel %vm10687_vm13, %v673_v50, %v679_v9 }
  0x52   : > { %v8881_v43 = vld [vmem:[#allocation2 + $0x58] sm:$0xff]  ;;  %681 = vst [vmem:[#allocation2 + $0x80] sm:$0x80] %v680_v26  ;;  %7811 = vmatpush3.bf16.msra.mxu0 %v8399_v41  ;;  %vm10690_vm11 = vmmov %vm10688_vm0 }
  0x53   : > { %v2201_v14 = vrot.slane %v2199_v36, 1  ;;  %v2204_v7 = vrot.slane %v2202_v39, 2  ;;  %v842_v42 = vrot.slane %v2202_v39, 1  ;;  %v2208_v27 = vshrl.u32 %v8881_v43, 16  ;;  %v8885_v47 = vld [vmem:[#allocation2 + $0x60] sm:$0xff]  ;;  %7848 = vmatprep.subr.bf16.mxu0 %v8909_v5  ;;  %vm10691_vm4 = vmmov %vm10689_vm2 }
  0x54   : > { %v2211_v48 = vshll.u32 %v8881_v43, 16  ;;  %v2217_v53 = vshrl.u32 %v8885_v47, 16  ;;  %v8894_v54 = vld [vmem:[#allocation2 + $0x68] sm:$0xff]  ;;  %v2220_v8 = vshll.u32 %v8885_v47, 16  ;;  %7599 = vmatpush3.bf16.msra.mxu1 %v8397_v35  ;;  %vm10692_vm7 = vmmov %vm10688_vm0  ;;  %v676_v35 = vor.u32 %v674_v59, %v673_v50 }
  0x55   : > { %v2205_v49 = vor.u32 %v2204_v7, %v2201_v14  ;;  %v843_v52 = vsel %vm10688_vm0, %v838_v40, %v842_v42  ;;  %v846_v33 = vor.u32 %v2199_v36, %v842_v42  ;;  %v2210_v57 = vrot.slane %v2208_v27, 1  ;;  %v8904_v3 = vld [vmem:[#allocation2 + $0x70] sm:$0xff]  ;;  %7600 = vmatprep.subr.bf16.mxu1 %v8400_v21  ;;  %vm10693_vm9 = vmmov %vm10689_vm2  ;;  %v8398_v36 = vld [vmem:[%s8570_s25 + $0x78] sm:$0xff]  }
  0x56   : > { %7569 = vmatmul.mubr.bf16.gmra.mrb[16].mxu1 %v843_v52  ;;  %v2213_v60 = vrot.slane %v2211_v48, 2  ;;  %v850_v2 = vrot.slane %v2211_v48, 1  ;;  %v2219_v62 = vrot.slane %v2217_v53, 1  ;;  %v2226_v0 = vshrl.u32 %v8894_v54, 16  ;;  %vm10694_vm6 = vmmov %vm10688_vm0 }
  0x57   : > { %v2206_v24 = vsel %vm10689_vm2, %v8817_v1, %v2205_v49  ;;  %v2229_v56 = vshll.u32 %v8894_v54, 16  ;;  %v2222_v17 = vrot.slane %v2220_v8, 2  ;;  %v858_v63 = vrot.slane %v2220_v8, 1  ;;  %vm10695_vm3 = vmmov %vm10689_vm2 }
  0x58   : > { %7776 = vmatprep.mubr.bf16.mxu0 %v2206_v24  ;;  %v2214_v10 = vor.u32 %v2213_v60, %v2210_v57  ;;  %v851_v11 = vsel %vm10690_vm11, %v846_v33, %v850_v2  ;;  %v854_v1 = vor.u32 %v2208_v27, %v850_v2  ;;  %v2228_v12 = vrot.slane %v2226_v0, 1  ;;  %v8912_v37 = vld [vmem:[#allocation2 + $0x78] sm:$0xff]  ;;  %7601 = vmatpush3.bf16.msra.mxu1 %v8400_v21  ;;  %vm10697_vm5 = vmmov %vm10689_vm2  ;;  %v8944_v21 = vld [vmem:[%s10573_s2 + $0x80] sm:$0xff]  }
  0x59   : > { %7572 = vmatprep.mubr.bf16.mxu1 %v851_v11  ;;  %v2231_v4 = vrot.slane %v2229_v56, 2  ;;  %v866_v19 = vrot.slane %v2229_v56, 1  ;;  %v2223_v46 = vor.u32 %v2222_v17, %v2219_v62  ;;  %v2235_v51 = vshrl.u32 %v8904_v3, 16  ;;  %v8923_v34 = vld [vmem:[#allocation2 + $0x80] sm:$0xff]  ;;  %7602 = vmatprep.subr.bf16.mxu1 %v8401_v38  ;;  %vm10698_vm8 = vmmov %vm10688_vm0 }
  0x5a   : > { %v2215_v25 = vsel %vm10691_vm4, %v2205_v49, %v2214_v10  ;;  %v2238_v28 = vshll.u32 %v8904_v3, 16  ;;  %v859_v61 = vsel %vm10692_vm7, %v854_v1, %v858_v63  ;;  %v862_v9 = vor.u32 %v2217_v53, %v858_v63  ;;  %v8932_v53 = vld [vmem:[#allocation2] sm:$0xff]  ;;  %vm10699_vm10 = vmmov %vm10688_vm0 }
  0x5b   : > { %7777 = vmatmul.mubr.bf16.gmra.mrb[16].mxu0 %v2215_v25  ;;  %v2232_v29 = vor.u32 %v2231_v4, %v2228_v12  ;;  %v2224_v16 = vsel %vm10693_vm9, %v2214_v10, %v2223_v46  ;;  %v2237_v30 = vrot.slane %v2235_v51, 1  ;;  %v870_v40 = vor.u32 %v2226_v0, %v866_v19  ;;  %v705_v0 = vld [vmem:[#allocation2 + $0x98] sm:$0x1]  ;;  %vm10700_vm15 = vmmov %vm10689_vm2 }
  0x5c   : > { %v2240_v31 = vrot.slane %v2238_v28, 2  ;;  %7780 = vmatprep.mubr.bf16.mxu0 %v2224_v16  ;;  %v867_v39 = vsel %vm10694_vm6, %v862_v9, %v866_v19  ;;  %v2244_v14 = vshrl.u32 %v8912_v37, 16  ;;  %v2247_v7 = vshll.u32 %v8912_v37, 16  ;;  %7603 = vmatpush3.bf16.msra.mxu1 %v8401_v38  ;;  %vm10702_vm13 = vmmov %vm10688_vm0 }
  0x5d   : > { %v2233_v42 = vsel %vm10695_vm3, %v2223_v46, %v2232_v29  ;;  %v874_v48 = vrot.slane %v2238_v28, 1  ;;  %v2253_v26 = vshrl.u32 %v8923_v34, 16  ;;  %v2256_v49 = vshll.u32 %v8923_v34, 16  ;;  %7640 = vmatprep.subr.bf16.mxu1 %v8944_v21  ;;  %vm10706_vm11 = vmmov %vm10694_vm6 }
  0x5e   : > { %7573 = vmatmul.mubr.bf16.gmra.mrb[20].mxu1 %v859_v61  ;;  %v2241_v27 = vor.u32 %v2240_v31, %v2237_v30  ;;  %v2246_v50 = vrot.slane %v2244_v14, 1  ;;  %v2249_v59 = vrot.slane %v2247_v7, 2  ;;  %v882_v41 = vrot.slane %v2247_v7, 1 }
  0x5f   : > { %7576 = vmatprep.mubr.bf16.mxu1 %v867_v39  ;;  %v878_v52 = vor.u32 %v2235_v51, %v874_v48  ;;  %v2255_v33 = vrot.slane %v2253_v26, 1  ;;  %v8937_v57 = vsel %vm10696_vm14, %v676_v35, %v8932_v53  ;;  %v694_v60 = vshrl.u32 %v8398_v36, 16 }
  0x60   : > { %v2242_v2 = vsel %vm10697_vm5, %v2232_v29, %v2241_v27  ;;  %v2258_v8 = vrot.slane %v2256_v49, 2  ;;  %684 = vst [vmem:[#allocation2 + $0x88] sm:$0xff] %v8937_v57  ;;  %v2262_v24 = vshrl.u32 %v8937_v57, 16  ;;  %v875_v22 = vsel %vm10698_vm8, %v870_v40, %v874_v48 }
  0x61   : > { %v696_v62 = vrot.slane %v694_v60, 7  ;;  %v2265_v56 = vshll.u32 %v8937_v57, 16  ;;  %v697_v10 = vshll.u32 %v8398_v36, 16  ;;  %v2250_v11 = vor.u32 %v2249_v59, %v2246_v50 }
  0x62   : > { %v883_v17 = vsel %vm10699_vm10, %v878_v52, %v882_v41  ;;  %v2259_v1 = vor.u32 %v2258_v8, %v2255_v33  ;;  %v890_v4 = vrot.slane %v2256_v49, 1  ;;  %v2264_v19 = vrot.slane %v2262_v24, 1  ;;  %v2567_v49 = vld [vmem:[#allocation2 + $0x8] sm:$0xfc] }
  0x63   : > { %7781 = vmatmul.mubr.bf16.gmra.mrb[20].mxu0 %v2233_v42  ;;  %v699_v63 = vor.u32 %v697_v10, %v696_v62  ;;  %v706_v12 = vsel %vm8784_vm1, %v696_v62, %v705_v0  ;;  %v886_v38 = vor.u32 %v2244_v14, %v882_v41  ;;  %v2267_v25 = vrot.slane %v2265_v56, 2  ;;  %vm10701_vm1 = vmmov %vm10689_vm2  ;;  %v8408_v0 = vld [vmem:[%s10573_s2 + $0x88] sm:$0xff]  }
  0x64   : > { %7784 = vmatprep.mubr.bf16.mxu0 %v2242_v2  ;;  %707 = vst [vmem:[#allocation2 + $0x98] sm:$0x1] %v706_v12  ;;  %v898_v46 = vrot.slane %v2265_v56, 1  ;;  %v2251_v28 = vsel %vm10700_vm15, %v2241_v27, %v2250_v11  ;;  %v894_v61 = vor.u32 %v2253_v26, %v890_v4  ;;  %v2260_v9 = vsel %vm10701_vm1, %v2250_v11, %v2259_v1  ;;  %v8984_v56 = vld [vmem:[#allocation2 + $0x8] sm:$0xff]  ;;  %v8410_v11 = vld [vmem:[%s10573_s2 + $0x90] sm:$0xff]   ;;  %v9008_v12 = vld [vmem:[#allocation2 + $0x18] sm:$0xff] }
  0x65   : > { %v8956_v51 = vsel %vm8760_vm12, %v699_v63, %v8932_v53  ;;  %v891_v31 = vsel %vm10702_vm13, %v886_v38, %v890_v4  ;;  %v2268_v55 = vor.u32 %v2267_v25, %v2264_v19  ;;  %vm10703_vm12 = vmmov %vm10688_vm0  ;;  %v2587_v60 = vrot.slane %v2567_v49, 2  ;;  %v8411_v63 = vld [vmem:[%s10573_s2 + $0x98] sm:$0xff]   ;;  %v8413_v4 = vld [vmem:[%s10573_s2 + $0xa0] sm:$0xff]  }
  0x66   : > { %7577 = vmatmul.mubr.bf16.gmra.mrb[24].mxu1 %v875_v22  ;;  %704 = vst [vmem:[#allocation2 + $0x90] sm:$0xff] %v8956_v51  ;;  %v2271_v15 = vshrl.u32 %v8956_v51, 16  ;;  %v2274_v29 = vshll.u32 %v8956_v51, 16  ;;  %v899_v35 = vsel %vm10703_vm12, %v894_v61, %v898_v46  ;;  %v902_v42 = vor.u32 %v2262_v24, %v898_v46  ;;  %vm10704_vm0 = vmmov %vm10701_vm1  ;;  %v8414_v25 = vld [vmem:[%s10573_s2 + $0xa8] sm:$0xff]  }
  0x67   : > { %7580 = vmatprep.mubr.bf16.mxu1 %v883_v17  ;;  %v2269_v27 = vsel %vm10704_vm0, %v2259_v1, %v2268_v55  ;;  %vm10705_vm2 = vmmov %vm10704_vm0  ;;  %v2588_v2 = vrot.slane %v8674_v23, 2  ;;  %vm10708_vm7 = vcmask 1045504   ;;  %v2590_v62 = vrot.slane %v8689_v44, 2  ;;  %v8987_v23 = vld [vmem:[#allocation2 + $0x10] sm:$0xff]  ;;  %v8403_v44 = vld [vmem:[%s10573_s2 + $0x188] sm:$0xff]  }
  0x68   : > { %v2273_v16 = vrot.slane %v2271_v15, 1  ;;  %v2276_v30 = vrot.slane %v2274_v29, 2  ;;  %vm10707_vm4 = vmmov %vm10704_vm0  ;;  %v2592_v22 = vrot.slane %v8712_v6, 2  ;;  %v2596_v17 = vrot.slane %v8752_v45, 2  ;;  %v8404_v1 = vld [vmem:[%s10573_s2 + $0x190] sm:$0xff]   ;;  %v8409_v61 = vld [vmem:[%s10573_s2 + $0x1a8] sm:$0xff]  }
  0x69   : > { %v2589_v24 = vsel %vm10708_vm7, %v2587_v60, %v2588_v2  ;;  %vm10709_vm9 = vmmov %vm10708_vm7  ;;  %v2600_v46 = vrot.slane %v8740_v32, 2  ;;  %v8416_v15 = vld [vmem:[%s10573_s2 + $0xb0] sm:$0xff]   ;;  %v9106_v60 = vrot.slane %v8956_v51, 2 }
  0x6a   : > { %v2277_v36 = vor.u32 %v2276_v30, %v2273_v16  ;;  %vm10710_vm6 = vmmov %vm10708_vm7  ;;  %v8412_v16 = vld [vmem:[%s10573_s2 + $0x1b0] sm:$0xff]   ;;  %v9047_v30 = vld [vmem:[#allocation2 + $0x40] sm:$0xff] }
  0x6b   : > { %7785 = vmatmul.mubr.bf16.gmra.mrb[24].mxu0 %v2251_v28  ;;  %v8965_v39 = vld [vmem:[#allocation2 + $0x98] sm:$0x3]  ;;  %v2593_v10 = vsel %vm10710_vm6, %v2590_v62, %v2592_v22  ;;  %vm10711_vm3 = vmmov %vm10710_vm6  ;;  %v8406_v28 = vld [vmem:[%s10573_s2 + $0x1a0] sm:$0xff]  }
  0x6c   : > { %7788 = vmatprep.mubr.bf16.mxu0 %v2260_v9  ;;  %v2280_v40 = vshrl.u32 %v8965_v39, 16  ;;  %v2283_v14 = vshll.u32 %v8965_v39, 16  ;;  %v2278_v59 = vsel %vm10705_vm2, %v2268_v55, %v2277_v36  ;;  %vm10712_vm14 = vmmov %vm10711_vm3  ;;  %v2604_v9 = vrot.slane %v8865_v20, 2 }
  0x6d   : > { %v8969_v7 = vld [vmem:[#allocation2 + $0x90] sm:$0x1]  ;;  %vm10713_vm5 = vmmov %vm10711_vm3  ;;  %v2622_v51 = vrot.slane %v8965_v39, 2  ;;  %v9136_v39 = vld [vmem:[#allocation2 + $0x20] sm:$0xff] }
  0x6e   : > { %7581 = vmatmul.mubr.bf16.gmra.mrb[28].mxu1 %v891_v31  ;;  %v904_v48 = vshll.u32 %v8969_v7, 16  ;;  %v2282_v26 = vrot.slane %v2280_v40, 1  ;;  %v2285_v50 = vrot.slane %v2283_v14, 2  ;;  %vm10714_vm8 = vmmov %vm10711_vm3  ;;  %v2608_v40 = vrot.slane %v8885_v47, 2  ;;  %v9067_v14 = vld [vmem:[%s10573_s2 + $0x1c0] sm:$0xff]  }
  0x6f   : > { %7584 = vmatprep.mubr.bf16.mxu1 %v899_v35  ;;  %vm10715_vm10 = vmmov %vm10711_vm3  ;;  %v8415_v35 = vld [vmem:[%s10573_s2 + $0x1b8] sm:$0xff]  }
  0x70   : > { %v906_v41 = vrot.slane %v904_v48, 1  ;;  %v2286_v33 = vor.u32 %v2285_v50, %v2282_v26  ;;  %vm10716_vm15 = vmmov %vm10711_vm3  ;;  %v2610_v48 = vrot.slane %v8894_v54, 2  ;;  %v2612_v26 = vrot.slane %v8904_v3, 2 }
  0x71   : > { %vm10717_vm1 = vmmov %vm10711_vm3 }
  0x72   : > { %v907_v52 = vsel %vm10706_vm11, %v902_v42, %v906_v41  ;;  %v2287_v8 = vsel %vm10707_vm4, %v2277_v36, %v2286_v33  ;;  %v9061_v36 = vrot.slane %v8881_v43, 2  ;;  %vm10718_vm13 = vmmov %vm10717_vm1  ;;  %v2616_v41 = vrot.slane %v8923_v34, 2 }
  0x73   : > { %7789 = vmatmul.mubr.bf16.gmra.mrb[28].mxu0 %v2269_v27  ;;  %vm10719_vm12 = vmmov %vm10717_vm1  ;;  %v2618_v33 = vrot.slane %v8937_v57, 2 }
  0x74   : > { %7792 = vmatprep.mubr.bf16.mxu0 %v2278_v59  ;;  %v2607_v42 = vsel %vm10717_vm1, %v2604_v9, %v9061_v36  ;;  %v9076_v27 = vsel %vm10718_vm13, %v9061_v36, %v2608_v40  ;;  %vm10720_vm0 = vmmov %vm10717_vm1  ;;  %v2614_v59 = vrot.slane %v8912_v37, 2 }
  0x75   : > { %v9088_v50 = vsel %vm10720_vm0, %v2610_v48, %v2612_v26  ;;  %vm10721_vm2 = vmmov %vm10720_vm0 }
  0x76   : > { %7585 = vmatmul.mubr.bf16.gmra.mrb[32].mxu1 %v907_v52  ;;  %v9097_v49 = vsel %vm10721_vm2, %v2612_v26, %v2614_v59  ;;  %vm10722_vm11 = vmmov %vm10720_vm0 }
  0x77   : > { %7604 = vmatprep.mubr.bf16.mxu1 %v8932_v53  ;;  %v2591_v53 = vsel %vm10709_vm9, %v2588_v2, %v2590_v62  ;;  %v9100_v52 = vsel %vm10722_vm11, %v2614_v59, %v2616_v41  ;;  %v1376_v2 = vld [vmem:[#allocation2] sm:$0xfe]  ;;  %vm10723_vm4 = vmmov %vm10720_vm0  ;;  %v1414_v62 = vrot.slane %v8984_v56, 1  ;;  %vm10725_vm9 = vcmask 1046528  }
  0x78   : > { %vm10724_vm7 = vmmov %vm10720_vm0  ;;  %v9184_v59 = vld [vmem:[#allocation2 + $0x40] sm:$0xff] }
  0x79   : > { %vm10726_vm6 = vmmov %vm10720_vm0 }
  0x7a   : > { %vm10734_vm13 = vmmov %vm10720_vm0 }
  0x7b   : > { %7793 = vmatmul.mubr.bf16.gmra.mrb[32].mxu0 %v2287_v8  ;;  %v9111_v8 = vsel %vm10723_vm4, %v2616_v41, %v2618_v33  ;;  %v8421_v41 = vld [vmem:[%s10573_s2 + $0x1d8] sm:$0xff]  }
  0x7c   : > { %7812 = vmatprep.mubr.bf16.mxu0 %v2589_v24  ;;  %v1413_v24 = vrot.slane %v1376_v2, 1  ;;  %v9192_v2 = vld [vmem:[#allocation2 + $0x48] sm:$0xff] }
  0x7e   : > { %7605 = vmatmul.mubr.bf16.vlgmr.msra.gmra.mrb[0].mxu1 %v8984_v56 }
  0x7f   : > { %7608 = vmatprep.mubr.bf16.mxu1 %v8987_v23  ;;  %7641 = vmatpush3.bf16.msra.mxu1 %v8944_v21  ;;  %v2594_v21 = vrot.slane %v8727_v18, 2 }
  0x80   : > { %7642 = vmatprep.subr.bf16.mxu1 %v8408_v0 }
  0x81   : > { %v2595_v19 = vsel %vm10711_vm3, %v2592_v22, %v2594_v21  ;;  %v2597_v38 = vsel %vm10712_vm14, %v2594_v21, %v2596_v17  ;;  %v9118_v22 = vld [vmem:[#allocation2 + $0x10] sm:$0xfc]  ;;  %v2623_v21 = vsel %vm10726_vm6, %v9106_v60, %v2622_v51  ;;  %vm10727_vm3 = vmmov %vm10720_vm0 }
  0x82   : > { %vm10728_vm14 = vmmov %vm10725_vm9 }
  0x83   : > { %7813 = vmatmul.mubr.bf16.vlgmr.msra.gmra.mrb[0].mxu0 %v2591_v53  ;;  %7643 = vmatpush3.bf16.msra.mxu1 %v8408_v0  ;;  %v9116_v0 = vsel %vm10724_vm7, %v2618_v33, %v9106_v60  ;;  %v9120_v53 = vld [vmem:[#allocation2 + $0x18] sm:$0xff]  ;;  %v8429_v33 = vld [vmem:[%s10573_s2 + $0xe0] sm:$0xff]   ;;  %vm10738_vm11 = vmmov %vm10727_vm3 }
  0x84   : > { %7849 = vmatpush3.bf16.msra.mxu0 %v8909_v5  ;;  %7816 = vmatprep.mubr.bf16.mxu0 %v2593_v10  ;;  %v8405_v5 = vld [vmem:[%s10573_s2 + $0x198] sm:$0xff]   ;;  %v2958_v10 = vrot.slane %v9118_v22, 2  ;;  %v2959_v56 = vrot.slane %v9120_v53, 2  ;;  %vm10739_vm4 = vmmov %vm10727_vm3 }
  0x85   : > { %7850 = vmatprep.subr.bf16.mxu0 %v8403_v44  ;;  %7644 = vmatprep.subr.bf16.mxu1 %v8410_v11  ;;  %vm10742_vm6 = vmmov %vm10727_vm3 }
  0x86   : > { %7609 = vmatmul.mubr.bf16.gmra.mrb[4].mxu1 %v9008_v12 }
  0x87   : > { %7612 = vmatprep.mubr.bf16.mxu1 %v8712_v6  ;;  %7645 = vmatpush3.bf16.msra.mxu1 %v8410_v11  ;;  %v2598_v6 = vrot.slane %v8767_v58, 2  ;;  %v9130_v11 = vrot.slane %v8987_v23, 1 }
  0x88   : > { %7851 = vmatpush3.bf16.msra.mxu0 %v8403_v44  ;;  %7646 = vmatprep.subr.bf16.mxu1 %v8411_v63  ;;  %v1415_v44 = vsel %vm10725_vm9, %v1413_v24, %v1414_v62 }
  0x89   : > { %7852 = vmatprep.subr.bf16.mxu0 %v8404_v1  ;;  %v2599_v32 = vsel %vm10713_vm5, %v2596_v17, %v2598_v6  ;;  %v2601_v29 = vsel %vm10714_vm8, %v2598_v6, %v2600_v46  ;;  %v1418_v17 = vrot.slane %v9008_v12, 1  ;;  %vm10729_vm5 = vmmov %vm10725_vm9  ;;  %v8424_v12 = vld [vmem:[%s10573_s2 + $0xc8] sm:$0xff]  }
  0x8a   : > { %vm10730_vm8 = vmmov %vm10720_vm0 }
  0x8b   : > { %7817 = vmatmul.mubr.bf16.gmra.mrb[4].mxu0 %v2595_v19  ;;  %7647 = vmatpush3.bf16.msra.mxu1 %v8411_v63  ;;  %v9138_v63 = vld [vmem:[#allocation2 + $0x28] sm:$0xff]  ;;  %v9145_v23 = vsel %vm10729_vm5, %v9130_v11, %v1418_v17  ;;  %vm10733_vm1 = vmmov %vm10729_vm5 }
  0x8c   : > { %7820 = vmatprep.mubr.bf16.mxu0 %v2597_v38  ;;  %7853 = vmatpush3.bf16.msra.mxu0 %v8404_v1  ;;  %v2960_v1 = vsel %vm10727_vm3, %v2958_v10, %v2959_v56  ;;  %v2963_v19 = vrot.slane %v9138_v63, 2  ;;  %v8455_v38 = vld [vmem:[#allocation2 + $0x20] sm:$0xff]  ;;  %v2971_v10 = vrot.slane %v9192_v2, 2 }
  0x8d   : > { %7854 = vmatprep.subr.bf16.mxu0 %v8405_v5  ;;  %7648 = vmatprep.subr.bf16.mxu1 %v8413_v4  ;;  %v1420_v6 = vrot.slane %v8455_v38, 1 }
  0x8e   : > { %7613 = vmatmul.mubr.bf16.gmra.mrb[8].mxu1 %v8727_v18  ;;  %v2602_v18 = vrot.slane %v8780_v13, 2 }
  0x8f   : > { %7616 = vmatprep.mubr.bf16.mxu1 %v8752_v45  ;;  %7649 = vmatpush3.bf16.msra.mxu1 %v8413_v4  ;;  %v8417_v45 = vld [vmem:[%s10573_s2 + $0xb8] sm:$0xff]   ;;  %v2961_v4 = vrot.slane %v9136_v39, 2 }
  0x90   : > { %7855 = vmatpush3.bf16.msra.mxu0 %v8405_v5  ;;  %7650 = vmatprep.subr.bf16.mxu1 %v8414_v25  ;;  %v2603_v31 = vsel %vm10715_vm10, %v2600_v46, %v2602_v18  ;;  %v2605_v55 = vsel %vm10716_vm15, %v2602_v18, %v2604_v9  ;;  %v1417_v5 = vsel %vm10728_vm14, %v1414_v62, %v9130_v11  ;;  %v8456_v46 = vld [vmem:[#allocation2 + $0x28] sm:$0xff]  ;;  %vm10731_vm10 = vmmov %vm10720_vm0  ;;  %v9163_v18 = vld [vmem:[#allocation2 + $0x38] sm:$0xff]  ;;  %v2969_v62 = vrot.slane %v9184_v59, 2 }
  0x91   : > { %7856 = vmatprep.subr.bf16.mxu0 %v8406_v28  ;;  %vm10732_vm15 = vmmov %vm10729_vm5 }
  0x93   : > { %7821 = vmatmul.mubr.bf16.gmra.mrb[8].mxu0 %v2599_v32  ;;  %7651 = vmatpush3.bf16.msra.mxu1 %v8414_v25  ;;  %v2962_v25 = vsel %vm10730_vm8, %v2959_v56, %v2961_v4  ;;  %v8419_v32 = vld [vmem:[%s10573_s2 + $0x1c8] sm:$0xff]   ;;  %v8422_v56 = vld [vmem:[%s10573_s2 + $0x1e0] sm:$0xff]  }
  0x94   : > { %7824 = vmatprep.mubr.bf16.mxu0 %v2601_v29  ;;  %7857 = vmatpush3.bf16.msra.mxu0 %v8406_v28  ;;  %v1422_v28 = vrot.slane %v8456_v46, 1  ;;  %v8426_v29 = vld [vmem:[%s10573_s2 + $0xd0] sm:$0xff]   ;;  %v8433_v46 = vld [vmem:[%s10573_s2 + $0xf8] sm:$0xff]  }
  0x95   : > { %7858 = vmatprep.subr.bf16.mxu0 %v8409_v61  ;;  %7652 = vmatprep.subr.bf16.mxu1 %v8416_v15 }
  0x96   : > { %7617 = vmatmul.mubr.bf16.gmra.mrb[12].mxu1 %v8767_v58  ;;  %v9058_v58 = vld [vmem:[%s10573_s2 + $0xc0] sm:$0xff]  }
  0x97   : > { %7620 = vmatprep.mubr.bf16.mxu1 %v9047_v30  ;;  %7653 = vmatpush3.bf16.msra.mxu1 %v8416_v15  ;;  %v9155_v15 = vld [vmem:[#allocation2 + $0x30] sm:$0xff] }
  0x98   : > { %7859 = vmatpush3.bf16.msra.mxu0 %v8409_v61  ;;  %7654 = vmatprep.subr.bf16.mxu1 %v8417_v45  ;;  %v2964_v61 = vsel %vm10731_vm10, %v2961_v4, %v2963_v19  ;;  %v2965_v9 = vrot.slane %v9155_v15, 2  ;;  %v2972_v4 = vsel %vm10739_vm4, %v2969_v62, %v2971_v10 }
  0x99   : > { %7860 = vmatprep.subr.bf16.mxu0 %v8412_v16 }
  0x9b   : > { %7825 = vmatmul.mubr.bf16.gmra.mrb[12].mxu0 %v2603_v31  ;;  %7655 = vmatpush3.bf16.msra.mxu1 %v8417_v45  ;;  %v9166_v45 = vsel %vm10732_vm15, %v1418_v17, %v1420_v6  ;;  %v8427_v31 = vld [vmem:[%s10573_s2 + $0xd8] sm:$0xff]  }
  0x9c   : > { %7828 = vmatprep.mubr.bf16.mxu0 %v2605_v55  ;;  %7861 = vmatpush3.bf16.msra.mxu0 %v8412_v16  ;;  %v9171_v16 = vsel %vm10733_vm1, %v1420_v6, %v1422_v28  ;;  %v2967_v55 = vrot.slane %v9163_v18, 2 }
  0x9d   : > { %7862 = vmatprep.subr.bf16.mxu0 %v8415_v35  ;;  %7692 = vmatprep.subr.bf16.mxu1 %v9058_v58 }
  0x9e   : > { %7621 = vmatmul.mubr.bf16.gmra.mrb[16].mxu1 %v8780_v13  ;;  %v9085_v13 = vsel %vm10719_vm12, %v2608_v40, %v2610_v48  ;;  %vm10735_vm12 = vmmov %vm10720_vm0  ;;  %v2970_v17 = vsel %vm10738_vm11, %v2967_v55, %v2969_v62  ;;  %v2921_v62 = vld [vmem:[#allocation2 + $0xa0] sm:$0x3] }
  0x9f   : > { %7624 = vmatprep.mubr.bf16.mxu1 %v8865_v20  ;;  %v2968_v26 = vsel %vm10735_vm12, %v2965_v9, %v2967_v55  ;;  %vm10736_vm0 = vmmov %vm10733_vm1 }
  0xa0   : > { %7863 = vmatpush3.bf16.msra.mxu0 %v8415_v35  ;;  %v8420_v35 = vld [vmem:[%s10573_s2 + $0x1d0] sm:$0xff]   ;;  %vm10737_vm2 = vmmov %vm10736_vm0 }
  0xa1   : > { %7900 = vmatprep.subr.bf16.mxu0 %v9067_v14  ;;  %vm10740_vm7 = vmmov %vm10736_vm0 }
  0xa2   : > { %vm10741_vm9 = vmmov %vm10736_vm0 }
  0xa3   : > { %7829 = vmatmul.mubr.bf16.gmra.mrb[16].mxu0 %v2607_v42  ;;  %v8458_v42 = vld [vmem:[#allocation2 + $0x38] sm:$0xff]  ;;  %vm10743_vm14 = vmmov %vm10736_vm0 }
  0xa4   : > { %7832 = vmatprep.mubr.bf16.mxu0 %v9076_v27  ;;  %v1426_v48 = vrot.slane %v8458_v42, 1  ;;  %vm10744_vm5 = vmmov %vm10736_vm0 }
  0xa5   : > { %vm10745_vm8 = vmmov %vm10736_vm0 }
  0xa6   : > { %7625 = vmatmul.mubr.bf16.gmra.mrb[20].mxu1 %v8881_v43  ;;  %vm10746_vm10 = vmmov %vm10736_vm0 }
  0xa7   : > { %7628 = vmatprep.mubr.bf16.mxu1 %v8885_v47  ;;  %vm10747_vm15 = vmmov %vm10736_vm0 }
  0xa8   : > { %vm10748_vm1 = vmmov %vm10736_vm0 }
  0xa9   : > { %vm10750_vm12 = vmmov %vm10736_vm0 }
  0xaa   : > { %vm10753_vm11 = vmmov %vm10748_vm1 }
  0xab   : > { %7833 = vmatmul.mubr.bf16.gmra.mrb[20].mxu0 %v9085_v13 }
  0xac   : > { %7836 = vmatprep.mubr.bf16.mxu0 %v9088_v50 }
  0xae   : > { %7629 = vmatmul.mubr.bf16.gmra.mrb[24].mxu1 %v8894_v54 }
  0xaf   : > { %7632 = vmatprep.mubr.bf16.mxu1 %v8904_v3 }
  0xb3   : > { %7837 = vmatmul.mubr.bf16.gmra.mrb[24].mxu0 %v9097_v49 }
  0xb4   : > { %7840 = vmatprep.mubr.bf16.mxu0 %v9100_v52 }
  0xb6   : > { %7633 = vmatmul.mubr.bf16.gmra.mrb[28].mxu1 %v8912_v37 }
  0xb7   : > { %7636 = vmatprep.mubr.bf16.mxu1 %v8923_v34 }
  0xbb   : > { %7841 = vmatmul.mubr.bf16.gmra.mrb[28].mxu0 %v9111_v8 }
  0xbc   : > { %7844 = vmatprep.mubr.bf16.mxu0 %v9116_v0 }
  0xbe   : > { %7637 = vmatmul.mubr.bf16.gmra.mrb[32].mxu1 %v8937_v57 }
  0xbf   : > { %7656 = vmatprep.mubr.bf16.mxu1 %v1415_v44  ;;  %v8430_v44 = vld [vmem:[%s10573_s2 + $0xe8] sm:$0xff]  }
  0xc3   : > { %7845 = vmatmul.mubr.bf16.gmra.mrb[32].mxu0 %v2623_v21  ;;  %v1428_v21 = vrot.slane %v9047_v30, 1  ;;  %v8432_v30 = vld [vmem:[%s10573_s2 + $0xf0] sm:$0xff]  }
  0xc4   : > { %7864 = vmatprep.mubr.bf16.mxu0 %v2960_v1  ;;  %v8459_v1 = vld [vmem:[#allocation2 + $0x48] sm:$0xff] }
  0xc5   : > { %v9222_v38 = vsel %vm10740_vm7, %v1426_v48, %v1428_v21  ;;  %vm10755_vm7 = vsmask.f32 5376 }
  0xc6   : > { %7657 = vmatmul.mubr.bf16.vlgmr.msra.gmra.mrb[0].mxu1 %v1417_v5  ;;  %v1430_v5 = vrot.slane %v8459_v1, 1  ;;  %v3310_v1 = vshrl.u32 %v9136_v39, 16 }
  0xc7   : > { %7660 = vmatprep.mubr.bf16.mxu1 %v9145_v23  ;;  %7693 = vmatpush3.bf16.msra.mxu1 %v9058_v58  ;;  %v8457_v58 = vld [vmem:[#allocation2 + $0x30] sm:$0xff] }
  0xc8   : > { %7694 = vmatprep.subr.bf16.mxu1 %v8424_v12  ;;  %v1424_v40 = vrot.slane %v8457_v58, 1 }
  0xca   : > { %v9195_v24 = vsel %vm10736_vm0, %v1422_v28, %v1424_v40  ;;  %v9199_v51 = vsel %vm10737_vm2, %v1424_v40, %v1426_v48  ;;  %v8428_v28 = vld [vmem:[%s10573_s2 + $0x1f0] sm:$0xff]   ;;  %v3301_v48 = vshrl.u32 %v9120_v53, 16  ;;  %vm10752_vm2 = vmmov %vm10748_vm1 }
  0xcb   : > { %7865 = vmatmul.mubr.bf16.vlgmr.msra.gmra.mrb[0].mxu0 %v2962_v25  ;;  %7695 = vmatpush3.bf16.msra.mxu1 %v8424_v12  ;;  %v9213_v12 = vld [vmem:[#allocation2 + $0x50] sm:$0xff]  ;;  %v9226_v25 = vsel %vm10741_vm9, %v1428_v21, %v1430_v5  ;;  %vm10756_vm9 = vmmov %vm10755_vm7 }
  0xcc   : > { %7901 = vmatpush3.bf16.msra.mxu0 %v9067_v14  ;;  %7868 = vmatprep.mubr.bf16.mxu0 %v2964_v61  ;;  %v2966_v14 = vsel %vm10734_vm13, %v2963_v19, %v2965_v9  ;;  %v8425_v19 = vld [vmem:[%s10573_s2 + $0x1e8] sm:$0xff]   ;;  %v2973_v6 = vrot.slane %v9213_v12, 2  ;;  %v1432_v61 = vrot.slane %v8865_v20, 1  ;;  %vm10749_vm13 = vmmov %vm10736_vm0 }
  0xcd   : > { %7902 = vmatprep.subr.bf16.mxu0 %v8419_v32  ;;  %7696 = vmatprep.subr.bf16.mxu1 %v8426_v29  ;;  %vm10751_vm0 = vmmov %vm10727_vm3 }
  0xce   : > { %7661 = vmatmul.mubr.bf16.gmra.mrb[4].mxu1 %v9166_v45  ;;  %v2976_v9 = vsel %vm10727_vm3, %v2973_v6, %v9061_v36  ;;  %v9245_v55 = vsel %vm10743_vm14, %v1430_v5, %v1432_v61  ;;  %v1436_v36 = vrot.slane %v8885_v47, 1  ;;  %v1440_v47 = vrot.slane %v8904_v3, 1  ;;  %vm10754_vm4 = vmmov %vm10751_vm0 }
  0xcf   : > { %7664 = vmatprep.mubr.bf16.mxu1 %v9171_v16  ;;  %7697 = vmatpush3.bf16.msra.mxu1 %v8426_v29  ;;  %v1434_v29 = vrot.slane %v8881_v43, 1  ;;  %v9253_v43 = vld [vmem:[%s10573_s2 + $0x200] sm:$0xff]   ;;  %v9284_v3 = vrot.slane %v8937_v57, 1  ;;  %v3296_v57 = vshll.u32 %v9118_v22, 16 }
  0xd0   : > { %7903 = vmatpush3.bf16.msra.mxu0 %v8419_v32  ;;  %7698 = vmatprep.subr.bf16.mxu1 %v8427_v31  ;;  %v2974_v32 = vsel %vm10742_vm6, %v2971_v10, %v2973_v6  ;;  %v3312_v6 = vrot.slane %v3310_v1, 2  ;;  %vm10757_vm6 = vmmov %vm10755_vm7  ;;  %v9346_v1 = vld [vmem:[#allocation2 + $0x58] sm:$0xff] }
  0xd1   : > { %7904 = vmatprep.subr.bf16.mxu0 %v8420_v35  ;;  %v9248_v20 = vsel %vm10744_vm5, %v1432_v61, %v1434_v29  ;;  %v9262_v58 = vsel %vm10745_vm8, %v1434_v29, %v1436_v36  ;;  %v3298_v10 = vrot.slane %v3296_v57, 3  ;;  %v3328_v29 = vshrl.u32 %v9155_v15, 16  ;;  %vm10758_vm3 = vmmov %vm10757_vm6 }
  0xd2   : > { %vm10759_vm14 = vmmov %vm10758_vm3 }
  0xd3   : > { %7869 = vmatmul.mubr.bf16.gmra.mrb[4].mxu0 %v2966_v14  ;;  %7699 = vmatpush3.bf16.msra.mxu1 %v8427_v31  ;;  %v8431_v31 = vld [vmem:[%s10573_s2 + $0x1f8] sm:$0xff]   ;;  %v1444_v14 = vrot.slane %v8923_v34, 1  ;;  %v3293_v34 = vshrl.u32 %v9118_v22, 16  ;;  %vm10760_vm5 = vmmov %vm10758_vm3 }
  0xd4   : > { %7872 = vmatprep.mubr.bf16.mxu0 %v2968_v26  ;;  %7905 = vmatpush3.bf16.msra.mxu0 %v8420_v35  ;;  %v1438_v35 = vrot.slane %v8894_v54, 1  ;;  %v1442_v54 = vrot.slane %v8912_v37, 1  ;;  %v9286_v37 = vld [vmem:[#allocation2 + $0x98] sm:$0xff]  ;;  %v3304_v26 = vshll.u32 %v9120_v53, 16  ;;  %vm10761_vm8 = vmmov %vm10758_vm3 }
  0xd5   : > { %7906 = vmatprep.subr.bf16.mxu0 %v8421_v41  ;;  %7700 = vmatprep.subr.bf16.mxu1 %v8429_v33  ;;  %v2991_v42 = vrot.slane %v9286_v37, 2 }
  0xd6   : > { %7665 = vmatmul.mubr.bf16.gmra.mrb[8].mxu1 %v9195_v24  ;;  %v9266_v40 = vsel %vm10746_vm10, %v1436_v36, %v1438_v35  ;;  %v3306_v22 = vrot.slane %v3304_v26, 3  ;;  %v3337_v36 = vshrl.u32 %v9163_v18, 16  ;;  %vm10762_vm10 = vmmov %vm10758_vm3 }
  0xd7   : > { %7668 = vmatprep.mubr.bf16.mxu1 %v9199_v51  ;;  %7701 = vmatpush3.bf16.msra.mxu1 %v8429_v33 }
  0xd8   : > { %7907 = vmatpush3.bf16.msra.mxu0 %v8421_v41  ;;  %7702 = vmatprep.subr.bf16.mxu1 %v8430_v44  ;;  %v8460_v41 = vld [vmem:[#allocation2 + $0x8] sm:$0xfe]  ;;  %v3339_v57 = vrot.slane %v3337_v36, 2 }
  0xd9   : > { %7908 = vmatprep.subr.bf16.mxu0 %v8422_v56  ;;  %v1784_v33 = vrot.slane %v8460_v41, 1  ;;  %v3355_v41 = vshrl.u32 %v9192_v2, 16 }
  0xdb   : > { %7873 = vmatmul.mubr.bf16.gmra.mrb[8].mxu0 %v2970_v17  ;;  %7703 = vmatpush3.bf16.msra.mxu1 %v8430_v44  ;;  %v3295_v44 = vrot.slane %v3293_v34, 2  ;;  %v2993_v17 = vrot.slane %v2921_v62, 2  ;;  %v8435_v34 = vld [vmem:[%s10573_s2 + $0x208] sm:$0xff]  }
  0xdc   : > { %7876 = vmatprep.mubr.bf16.mxu0 %v2972_v4  ;;  %7909 = vmatpush3.bf16.msra.mxu0 %v8422_v56  ;;  %v3303_v56 = vrot.slane %v3301_v48, 2 }
  0xdd   : > { %7910 = vmatprep.subr.bf16.mxu0 %v8425_v19  ;;  %7704 = vmatprep.subr.bf16.mxu1 %v8432_v30  ;;  %v3299_v5 = vor.u32 %v3298_v10, %v3295_v44 }
  0xde   : > { %7669 = vmatmul.mubr.bf16.gmra.mrb[12].mxu1 %v9222_v38  ;;  %v3307_v4 = vor.u32 %v3306_v22, %v3303_v56  ;;  %v3357_v56 = vrot.slane %v3355_v41, 2 }
  0xdf   : > { %7672 = vmatprep.mubr.bf16.mxu1 %v9226_v25  ;;  %7705 = vmatpush3.bf16.msra.mxu1 %v8432_v30  ;;  %v3322_v30 = vshll.u32 %v9138_v63, 16 }
  0xe0   : > { %7911 = vmatpush3.bf16.msra.mxu0 %v8425_v19  ;;  %7706 = vmatprep.subr.bf16.mxu1 %v8433_v46  ;;  %v3319_v19 = vshrl.u32 %v9138_v63, 16 }
  0xe1   : > { %7912 = vmatprep.subr.bf16.mxu0 %v8428_v28 }
  0xe2   : > { %v3321_v61 = vrot.slane %v3319_v19, 2 }
  0xe3   : > { %7877 = vmatmul.mubr.bf16.gmra.mrb[12].mxu0 %v2974_v32  ;;  %7707 = vmatpush3.bf16.msra.mxu1 %v8433_v46 }
  0xe4   : > { %7880 = vmatprep.mubr.bf16.mxu0 %v2976_v9  ;;  %7913 = vmatpush3.bf16.msra.mxu0 %v8428_v28  ;;  %v3308_v28 = vsel %vm10755_vm7, %v3299_v5, %v3307_v4  ;;  %v3331_v9 = vshll.u32 %v9155_v15, 16  ;;  %v3376_v5 = vshll.u32 %v9346_v1, 16 }
  0xe5   : > { %7914 = vmatprep.subr.bf16.mxu0 %v8431_v31 }
  0xe6   : > { %7673 = vmatmul.mubr.bf16.gmra.mrb[16].mxu1 %v9245_v55 }
  0xe7   : > { %7676 = vmatprep.mubr.bf16.mxu1 %v9248_v20 }
  0xe8   : > { %7915 = vmatpush3.bf16.msra.mxu0 %v8431_v31 }
  0xe9   : > { %7952 = vmatprep.subr.bf16.mxu0 %v9253_v43 }
  0xeb   : > { %7881 = vmatmul.mubr.bf16.gmra.mrb[16].mxu0 %v9076_v27  ;;  %v9274_v27 = vsel %vm10747_vm15, %v1438_v35, %v1440_v47  ;;  %v3340_v35 = vshll.u32 %v9163_v18, 16  ;;  %vm10763_vm15 = vmmov %vm10758_vm3 }
  0xec   : > { %7884 = vmatprep.mubr.bf16.mxu0 %v9085_v13  ;;  %v9278_v13 = vsel %vm10748_vm1, %v1440_v47, %v1442_v54  ;;  %vm10764_vm1 = vmmov %vm10758_vm3 }
  0xed   : > { %v3342_v48 = vrot.slane %v3340_v35, 3  ;;  %v8440_v35 = vld [vmem:[%s10573_s2 + $0x230] sm:$0xff]  }
  0xee   : > { %7677 = vmatmul.mubr.bf16.gmra.mrb[20].mxu1 %v9262_v58 }
  0xef   : > { %7680 = vmatprep.mubr.bf16.mxu1 %v9266_v40 }
  0xf3   : > { %7885 = vmatmul.mubr.bf16.gmra.mrb[20].mxu0 %v9088_v50  ;;  %v9290_v50 = vsel %vm10749_vm13, %v1442_v54, %v1444_v14  ;;  %v3330_v54 = vrot.slane %v3328_v29, 2  ;;  %vm10765_vm13 = vmmov %vm10764_vm1 }
  0xf4   : > { %7888 = vmatprep.mubr.bf16.mxu0 %v9097_v49  ;;  %v9295_v49 = vsel %vm10750_vm12, %v1444_v14, %v9284_v3  ;;  %v3333_v14 = vrot.slane %v3331_v9, 3  ;;  %v9364_v9 = vld [vmem:[#allocation2 + $0x68] sm:$0xff]  ;;  %vm10766_vm12 = vmmov %vm10764_vm1 }
  0xf5   : > { %v3394_v36 = vshll.u32 %v9364_v9, 16 }
  0xf6   : > { %7681 = vmatmul.mubr.bf16.gmra.mrb[24].mxu1 %v9274_v27  ;;  %v3334_v26 = vor.u32 %v3333_v14, %v3330_v54 }
  0xf7   : > { %7684 = vmatprep.mubr.bf16.mxu1 %v9278_v13 }
  0xfb   : > { %7889 = vmatmul.mubr.bf16.gmra.mrb[24].mxu0 %v9100_v52  ;;  %v1448_v52 = vrot.slane %v8969_v7, 1  ;;  %v1786_v7 = vsel %vm10753_vm11, %v1784_v33, %v9130_v11  ;;  %v3324_v11 = vrot.slane %v3322_v30, 3  ;;  %v3358_v33 = vshll.u32 %v9192_v2, 16 }
  0xfc   : > { %7892 = vmatprep.mubr.bf16.mxu0 %v9111_v8  ;;  %v2992_v8 = vsel %vm10751_vm0, %v9106_v60, %v2991_v42  ;;  %v3313_v60 = vshll.u32 %v9136_v39, 16  ;;  %vm10767_vm0 = vmmov %vm10764_vm1 }
  0xfd   : > { %v1449_v21 = vsel %vm10752_vm2, %v9284_v3, %v1448_v52  ;;  %v3325_v31 = vor.u32 %v3324_v11, %v3321_v61  ;;  %v3343_v52 = vor.u32 %v3342_v48, %v3339_v57  ;;  %v3360_v22 = vrot.slane %v3358_v33, 3  ;;  %v8439_v61 = vld [vmem:[%s10573_s2 + $0x228] sm:$0xff]   ;;  %v8441_v48 = vld [vmem:[%s10573_s2 + $0x238] sm:$0xff]   ;;  %vm10768_vm2 = vmmov %vm10767_vm0 }
  0xfe   : > { %7685 = vmatmul.mubr.bf16.gmra.mrb[28].mxu1 %v9290_v50  ;;  %v3315_v46 = vrot.slane %v3313_v60, 3  ;;  %v3373_v60 = vshrl.u32 %v9346_v1, 16  ;;  %v3396_v57 = vrot.slane %v3394_v36, 3  ;;  %vm10769_vm11 = vmmov %vm10767_vm0 }
  0xff   : > { %7688 = vmatprep.mubr.bf16.mxu1 %v9295_v49  ;;  %v3344_v10 = vsel %vm10759_vm14, %v3334_v26, %v3343_v52  ;;  %vm10771_vm7 = vmmov %vm10767_vm0  ;;  %vm10775_vm14 = vcmask 1044480  }
 0x100   : > { %v3316_v32 = vor.u32 %v3315_v46, %v3312_v6  ;;  %v3375_v46 = vrot.slane %v3373_v60, 2 }
 0x102   : > { %v3317_v47 = vsel %vm10756_vm9, %v3307_v4, %v3316_v32  ;;  %v8438_v4 = vld [vmem:[%s10573_s2 + $0x220] sm:$0xff]   ;;  %vm10772_vm9 = vmmov %vm10767_vm0 }
 0x103   : > { %7893 = vmatmul.mubr.bf16.gmra.mrb[28].mxu0 %v9116_v0  ;;  %v2994_v0 = vsel %vm10754_vm4, %v2991_v42, %v2993_v17  ;;  %v3326_v42 = vsel %vm10757_vm6, %v3316_v32, %v3325_v31  ;;  %vm10770_vm4 = vcmask 1046528  }
 0x104   : > { %7896 = vmatprep.mubr.bf16.mxu0 %v2992_v8  ;;  %v8436_v8 = vld [vmem:[%s10573_s2 + $0x210] sm:$0xff]   ;;  %vm10773_vm6 = vmmov %vm10770_vm4 }
 0x106   : > { %7689 = vmatmul.mubr.bf16.gmra.mrb[32].mxu1 %v1449_v21  ;;  %v8437_v21 = vld [vmem:[%s10573_s2 + $0x218] sm:$0xff]  }
 0x107   : > { %7708 = vmatprep.mubr.bf16.mxu1 %v1786_v7  ;;  %v3361_v7 = vor.u32 %v3360_v22, %v3357_v56 }
 0x10b   : > { %7897 = vmatmul.mubr.bf16.gmra.mrb[32].mxu0 %v2994_v0 }
 0x10c   : > { %7916 = vmatprep.mubr.bf16.mxu0 %v3308_v28  ;;  %v3378_v28 = vrot.slane %v3376_v5, 3 }
 0x10e   : > { %7709 = vmatmul.mubr.bf16.vlgmr.msra.gmra.mrb[0].mxu1 %v9145_v23  ;;  %v3346_v23 = vshrl.u32 %v9184_v59, 16  ;;  %v3379_v29 = vor.u32 %v3378_v28, %v3375_v46  ;;  %v9402_v46 = vld [vmem:[#allocation2 + $0x90] sm:$0xff] }
 0x10f   : > { %7712 = vmatprep.mubr.bf16.mxu1 %v9166_v45  ;;  %v3349_v45 = vshll.u32 %v9184_v59, 16  ;;  %v3436_v28 = vshrl.u32 %v9402_v46, 16 }
 0x110   : > { %v3348_v62 = vrot.slane %v3346_v23, 2 }
 0x111   : > { %v3351_v44 = vrot.slane %v3349_v45, 3 }
 0x113   : > { %7917 = vmatmul.mubr.bf16.vlgmr.msra.gmra.mrb[0].mxu0 %v3317_v47  ;;  %v3352_v17 = vor.u32 %v3351_v44, %v3348_v62 }
 0x114   : > { %7953 = vmatpush3.bf16.msra.mxu0 %v9253_v43  ;;  %7920 = vmatprep.mubr.bf16.mxu0 %v3326_v42  ;;  %v3335_v43 = vsel %vm10758_vm3, %v3325_v31, %v3334_v26  ;;  %v3391_v31 = vshrl.u32 %v9364_v9, 16  ;;  %vm10774_vm3 = vmmov %vm10767_vm0 }
 0x115   : > { %7954 = vmatprep.subr.bf16.mxu0 %v8435_v34  ;;  %v3353_v19 = vsel %vm10760_vm5, %v3343_v52, %v3352_v17  ;;  %v3362_v6 = vsel %vm10761_vm8, %v3352_v17, %v3361_v7  ;;  %v9382_v52 = vld [vmem:[#allocation2 + $0x78] sm:$0xff]  ;;  %vm10776_vm5 = vmmov %vm10775_vm14 }
 0x116   : > { %7713 = vmatmul.mubr.bf16.gmra.mrb[4].mxu1 %v9171_v16  ;;  %v3364_v16 = vshrl.u32 %v9213_v12, 16  ;;  %v3412_v41 = vshll.u32 %v9382_v52, 16  ;;  %vm10777_vm8 = vmmov %vm10776_vm5 }
 0x117   : > { %7716 = vmatprep.mubr.bf16.mxu1 %v9195_v24  ;;  %v3367_v24 = vshll.u32 %v9213_v12, 16 }
 0x118   : > { %7955 = vmatpush3.bf16.msra.mxu0 %v8435_v34  ;;  %v3366_v30 = vrot.slane %v3364_v16, 2  ;;  %v3393_v34 = vrot.slane %v3391_v31, 2  ;;  %v3414_v56 = vrot.slane %v3412_v41, 3  ;;  %v1817_v31 = vrot.slane %v9402_v46, 1 }
 0x119   : > { %7956 = vmatprep.subr.bf16.mxu0 %v8436_v8  ;;  %v3369_v0 = vrot.slane %v3367_v24, 3 }
 0x11a   : > { %v3397_v45 = vor.u32 %v3396_v57, %v3393_v34 }
 0x11b   : > { %7921 = vmatmul.mubr.bf16.gmra.mrb[4].mxu0 %v3335_v43  ;;  %v3370_v11 = vor.u32 %v3369_v0, %v3366_v30 }
 0x11c   : > { %7924 = vmatprep.mubr.bf16.mxu0 %v3344_v10  ;;  %7957 = vmatpush3.bf16.msra.mxu0 %v8436_v8  ;;  %v3409_v8 = vshrl.u32 %v9382_v52, 16 }
 0x11d   : > { %7958 = vmatprep.subr.bf16.mxu0 %v8437_v21  ;;  %v3371_v47 = vsel %vm10762_vm10, %v3361_v7, %v3370_v11  ;;  %v3380_v42 = vsel %vm10763_vm15, %v3370_v11, %v3379_v29  ;;  %v3448_v11 = vshll.u32 %v9286_v37, 16  ;;  %vm10778_vm10 = vmmov %vm10776_vm5 }
 0x11e   : > { %7717 = vmatmul.mubr.bf16.gmra.mrb[8].mxu1 %v9199_v51  ;;  %v9360_v51 = vld [vmem:[#allocation2 + $0x60] sm:$0xff]  ;;  %v3411_v10 = vrot.slane %v3409_v8, 2  ;;  %v3741_v8 = vld [vmem:[#allocation2 + $0x10] sm:$0xf8]  ;;  %vm10779_vm15 = vmmov %vm10776_vm5 }
 0x11f   : > { %7720 = vmatprep.mubr.bf16.mxu1 %v9222_v38  ;;  %v3382_v38 = vshrl.u32 %v9360_v51, 16  ;;  %v3385_v32 = vshll.u32 %v9360_v51, 16 }
 0x120   : > { %7959 = vmatpush3.bf16.msra.mxu0 %v8437_v21  ;;  %v9390_v21 = vld [vmem:[#allocation2 + $0x80] sm:$0xff]  ;;  %v3415_v16 = vor.u32 %v3414_v56, %v3411_v10  ;;  %v3766_v10 = vrot.slane %v9138_v63, 3  ;;  %v3774_v63 = vrot.slane %v9192_v2, 3 }
 0x121   : > { %7960 = vmatprep.subr.bf16.mxu0 %v8438_v4  ;;  %v3384_v54 = vrot.slane %v3382_v38, 2  ;;  %v3387_v14 = vrot.slane %v3385_v32, 3  ;;  %v3418_v17 = vshrl.u32 %v9390_v21, 16  ;;  %v3438_v32 = vrot.slane %v3436_v28, 2 }
 0x122   : > { %v3788_v28 = vrot.slane %v9390_v21, 3 }
 0x123   : > { %7925 = vmatmul.mubr.bf16.gmra.mrb[8].mxu0 %v3353_v19  ;;  %v3388_v26 = vor.u32 %v3387_v14, %v3384_v54  ;;  %v3420_v5 = vrot.slane %v3418_v17, 2  ;;  %v9413_v54 = vld [vmem:[#allocation2 + $0xa0] sm:$0x7]  ;;  %v3768_v17 = vrot.slane %v9155_v15, 3  ;;  %v3776_v15 = vrot.slane %v9213_v12, 3 }
 0x124   : > { %7928 = vmatprep.mubr.bf16.mxu0 %v3362_v6  ;;  %7961 = vmatpush3.bf16.msra.mxu0 %v8438_v4  ;;  %v3457_v34 = vshll.u32 %v9413_v54, 16 }
 0x125   : > { %7962 = vmatprep.subr.bf16.mxu0 %v8439_v61  ;;  %v3389_v33 = vsel %vm10764_vm1, %v3379_v29, %v3388_v26  ;;  %v3398_v44 = vsel %vm10765_vm13, %v3388_v26, %v3397_v45  ;;  %vm10780_vm1 = vmmov %vm10776_vm5 }
 0x126   : > { %7721 = vmatmul.mubr.bf16.gmra.mrb[12].mxu1 %v9226_v25  ;;  %v9378_v25 = vld [vmem:[#allocation2 + $0x70] sm:$0xff]  ;;  %vm10781_vm13 = vmmov %vm10780_vm1 }
 0x127   : > { %7724 = vmatprep.mubr.bf16.mxu1 %v9245_v55  ;;  %v3400_v55 = vshrl.u32 %v9378_v25, 16  ;;  %v3403_v23 = vshll.u32 %v9378_v25, 16 }
 0x128   : > { %7963 = vmatpush3.bf16.msra.mxu0 %v8439_v61  ;;  %v3439_v61 = vshll.u32 %v9402_v46, 16 }
 0x129   : > { %7964 = vmatprep.subr.bf16.mxu0 %v8440_v35  ;;  %v3402_v43 = vrot.slane %v3400_v55, 2  ;;  %v3405_v62 = vrot.slane %v3403_v23, 3  ;;  %v3459_v23 = vrot.slane %v3457_v34, 3 }
 0x12a   : > { %v3441_v29 = vrot.slane %v3439_v61, 3 }
 0x12b   : > { %7929 = vmatmul.mubr.bf16.gmra.mrb[12].mxu0 %v3371_v47  ;;  %v3406_v22 = vor.u32 %v3405_v62, %v3402_v43  ;;  %v3450_v47 = vrot.slane %v3448_v11, 3  ;;  %v3762_v43 = vrot.slane %v9120_v53, 3  ;;  %v3770_v53 = vrot.slane %v9163_v18, 3  ;;  %v8442_v18 = vld [vmem:[%s10576_s5] sm:$0xff]  }
 0x12c   : > { %7932 = vmatprep.mubr.bf16.mxu0 %v3380_v42  ;;  %7965 = vmatpush3.bf16.msra.mxu0 %v8440_v35  ;;  %v3442_v14 = vor.u32 %v3441_v29, %v3438_v32  ;;  %v1747_v42 = vld [vmem:[#allocation2 + $0x98] sm:$0x1]  ;;  %v3794_v11 = vrot.slane %v9286_v37, 3  ;;  %v8446_v32 = vld [vmem:[%s10576_s5 + $0x20] sm:$0xff]   ;;  %v8448_v29 = vld [vmem:[%s10576_s5 + $0x30] sm:$0xff]  }
 0x12d   : > { %7966 = vmatprep.subr.bf16.mxu0 %v8441_v48  ;;  %v3407_v60 = vsel %vm10766_vm12, %v3397_v45, %v3406_v22  ;;  %v3416_v19 = vsel %vm10767_vm0, %v3406_v22, %v3415_v16  ;;  %8004 = vmatprep.subr.bf16.mxu1 %v8442_v18  ;;  %vm10782_vm12 = vmmov %vm10780_vm1 }
 0x12e   : > { %7725 = vmatmul.mubr.bf16.gmra.mrb[16].mxu1 %v9248_v20  ;;  %v3421_v20 = vshll.u32 %v9390_v21, 16  ;;  %vm10783_vm0 = vmmov %vm10780_vm1 }
 0x12f   : > { %7728 = vmatprep.mubr.bf16.mxu1 %v9262_v58  ;;  %v9394_v58 = vld [vmem:[#allocation2 + $0x88] sm:$0xff]  ;;  %8005 = vmatpush3.bf16.msra.mxu1 %v8442_v18 }
 0x130   : > { %7967 = vmatpush3.bf16.msra.mxu0 %v8441_v48  ;;  %v3427_v24 = vshrl.u32 %v9394_v58, 16  ;;  %v3430_v7 = vshll.u32 %v9394_v58, 16  ;;  %v3423_v4 = vrot.slane %v3421_v20, 3  ;;  %v1819_v48 = vrot.slane %v1747_v42, 1 }
 0x131   : > { %v3769_v20 = vsel %vm10778_vm10, %v3766_v10, %v3768_v17  ;;  %v3790_v61 = vrot.slane %v9394_v58, 3 }
 0x132   : > { %v3429_v30 = vrot.slane %v3427_v24, 2  ;;  %v3432_v0 = vrot.slane %v3430_v7, 3  ;;  %v3424_v6 = vor.u32 %v3423_v4, %v3420_v5  ;;  %v3780_v5 = vrot.slane %v9360_v51, 3 }
 0x133   : > { %7933 = vmatmul.mubr.bf16.gmra.mrb[16].mxu0 %v3389_v33  ;;  %v3761_v33 = vrot.slane %v3741_v8, 3  ;;  %v3782_v4 = vrot.slane %v9364_v9, 3 }
 0x134   : > { %7936 = vmatprep.mubr.bf16.mxu0 %v3398_v44  ;;  %v3425_v38 = vsel %vm10768_vm2, %v3415_v16, %v3424_v6  ;;  %v3764_v44 = vrot.slane %v9136_v39, 3  ;;  %v3771_v16 = vsel %vm10779_vm15, %v3768_v17, %v3770_v53  ;;  %v3772_v39 = vrot.slane %v9184_v59, 3  ;;  %vm10784_vm2 = vmmov %vm10783_vm0 }
 0x135   : > { %v3763_v62 = vsel %vm10775_vm14, %v3761_v33, %v3762_v43  ;;  %v3777_v59 = vsel %vm10782_vm12, %v3774_v63, %v3776_v15  ;;  %vm10791_vm14 = vmmov %vm10783_vm0 }
 0x136   : > { %7729 = vmatmul.mubr.bf16.gmra.mrb[20].mxu1 %v9266_v40  ;;  %v3433_v40 = vor.u32 %v3432_v0, %v3429_v30  ;;  %v3765_v56 = vsel %vm10776_vm5, %v3762_v43, %v3764_v44  ;;  %v3767_v22 = vsel %vm10777_vm8, %v3764_v44, %v3766_v10  ;;  %v3773_v24 = vsel %vm10780_vm1, %v3770_v53, %v3772_v39  ;;  %vm10792_vm5 = vmmov %vm10783_vm0 }
 0x137   : > { %7732 = vmatprep.mubr.bf16.mxu1 %v9274_v27  ;;  %v3445_v27 = vshrl.u32 %v9286_v37, 16  ;;  %v3775_v7 = vsel %vm10781_vm13, %v3772_v39, %v3774_v63  ;;  %v3784_v30 = vrot.slane %v9378_v25, 3  ;;  %v3786_v0 = vrot.slane %v9382_v52, 3  ;;  %v8447_v37 = vld [vmem:[%s10576_s5 + $0x28] sm:$0xff]  }
 0x138   : > { %v3434_v36 = vsel %vm10769_vm11, %v3424_v6, %v3433_v40  ;;  %v3443_v26 = vsel %vm10771_vm7, %v3433_v40, %v3442_v14  ;;  %vm10785_vm11 = vmmov %vm10783_vm0  ;;  %v8444_v6 = vld [vmem:[%s10576_s5 + $0x10] sm:$0xff]   ;;  %v8445_v40 = vld [vmem:[%s10576_s5 + $0x18] sm:$0xff]  }
 0x139   : > { %v3447_v35 = vrot.slane %v3445_v27, 2  ;;  %vm10787_vm7 = vmmov %vm10783_vm0  ;;  %v3792_v27 = vrot.slane %v9402_v46, 3 }
 0x13a   : > { %v3787_v9 = vsel %vm10787_vm7, %v3784_v30, %v3786_v0 }
 0x13b   : > { %7937 = vmatmul.mubr.bf16.gmra.mrb[20].mxu0 %v3407_v60  ;;  %v3451_v57 = vor.u32 %v3450_v47, %v3447_v35  ;;  %v3778_v60 = vrot.slane %v9346_v1, 3  ;;  %v8443_v1 = vld [vmem:[%s10576_s5 + $0x8] sm:$0xff]   ;;  %v3795_v58 = vsel %vm10791_vm14, %v3792_v27, %v3794_v11 }
 0x13c   : > { %7940 = vmatprep.mubr.bf16.mxu0 %v3416_v19  ;;  %v3783_v19 = vsel %vm10785_vm11, %v3780_v5, %v3782_v4  ;;  %8006 = vmatprep.subr.bf16.mxu1 %v8443_v1 }
 0x13d   : > { %v3452_v45 = vsel %vm10772_vm9, %v3442_v14, %v3451_v57  ;;  %v3779_v2 = vsel %vm10783_vm0, %v3776_v15, %v3778_v60  ;;  %v3781_v12 = vsel %vm10784_vm2, %v3778_v60, %v3780_v5  ;;  %8007 = vmatpush3.bf16.msra.mxu1 %v8443_v1  ;;  %vm10788_vm9 = vmmov %vm10783_vm0 }
 0x13e   : > { %7733 = vmatmul.mubr.bf16.gmra.mrb[24].mxu1 %v9278_v13  ;;  %v1818_v13 = vsel %vm10770_vm4, %v9284_v3, %v1817_v31  ;;  %v1820_v3 = vsel %vm10773_vm6, %v1817_v31, %v1819_v48  ;;  %vm10786_vm4 = vmmov %vm10783_vm0  ;;  %8008 = vmatprep.subr.bf16.mxu1 %v8444_v6  ;;  %v3789_v25 = vsel %vm10788_vm9, %v3786_v0, %v3788_v28  ;;  %v8449_v31 = vld [vmem:[%s10576_s5 + $0x38] sm:$0xff]  }
 0x13f   : > { %7736 = vmatprep.mubr.bf16.mxu1 %v9290_v50  ;;  %v3454_v50 = vshrl.u32 %v9413_v54, 16  ;;  %v3785_v51 = vsel %vm10786_vm4, %v3782_v4, %v3784_v30  ;;  %vm10789_vm6 = vmmov %vm10783_vm0  ;;  %v9548_v4 = vld [vmem:[%s10575_s4] ss:$0 sm:$0xff] }
 0x140   : > { %v3791_v52 = vsel %vm10789_vm6, %v3788_v28, %v3790_v61 }
 0x141   : > { %v3456_v55 = vrot.slane %v3454_v50, 2  ;;  %8009 = vmatpush3.bf16.msra.mxu1 %v8444_v6 }
 0x142   : > { %8010 = vmatprep.subr.bf16.mxu1 %v8445_v40 }
 0x143   : > { %7941 = vmatmul.mubr.bf16.gmra.mrb[24].mxu0 %v3425_v38  ;;  %v3460_v41 = vor.u32 %v3459_v23, %v3456_v55  ;;  %v3796_v38 = vrot.slane %v9413_v54, 3 }
 0x144   : > { %7944 = vmatprep.mubr.bf16.mxu0 %v3434_v36 }
 0x145   : > { %8011 = vmatpush3.bf16.msra.mxu1 %v8445_v40  ;;  %v3797_v46 = vsel %vm10792_vm5, %v3794_v11, %v3796_v38 }
 0x146   : > { %7737 = vmatmul.mubr.bf16.gmra.mrb[28].mxu1 %v9295_v49  ;;  %v3461_v49 = vsel %vm10774_vm3, %v3451_v57, %v3460_v41  ;;  %vm10790_vm3 = vmmov %vm10783_vm0  ;;  %8012 = vmatprep.subr.bf16.mxu1 %v8446_v32 }
 0x147   : > { %7740 = vmatprep.mubr.bf16.mxu1 %v1818_v13  ;;  %v3793_v21 = vsel %vm10790_vm3, %v3790_v61, %v3792_v27 }
 0x149   : > { %8013 = vmatpush3.bf16.msra.mxu1 %v8446_v32 }
 0x14a   : > { %8014 = vmatprep.subr.bf16.mxu1 %v8447_v37 }
 0x14b   : > { %7945 = vmatmul.mubr.bf16.gmra.mrb[28].mxu0 %v3443_v26 }
 0x14c   : > { %7948 = vmatprep.mubr.bf16.mxu0 %v3452_v45 }
 0x14d   : > { %8015 = vmatpush3.bf16.msra.mxu1 %v8447_v37 }
 0x14e   : > { %7741 = vmatmul.mubr.bf16.gmra.mrb[32].mxu1 %v1820_v3  ;;  %8016 = vmatprep.subr.bf16.mxu1 %v8448_v29 }
 0x151   : > { %8017 = vmatpush3.bf16.msra.mxu1 %v8448_v29 }
 0x152   : > { %8018 = vmatprep.subr.bf16.mxu1 %v8449_v31 }
 0x153   : > { %7949 = vmatmul.mubr.bf16.gmra.mrb[32].mxu0 %v3461_v49 }
 0x154   : > { %7968 = vmatprep.mubr.bf16.mxu0 %v3763_v62 }
 0x155   : > { %8019 = vmatpush3.bf16.msra.mxu1 %v8449_v31 }
 0x15b   : > { %7969 = vmatmul.mubr.bf16.vlgmr.msra.gmra.mrb[0].mxu0 %v3765_v56 }
 0x15c   : > { %7972 = vmatprep.mubr.bf16.mxu0 %v3767_v22 }
 0x163   : > { %7973 = vmatmul.mubr.bf16.gmra.mrb[4].mxu0 %v3769_v20 }
 0x164   : > { %7976 = vmatprep.mubr.bf16.mxu0 %v3771_v16 }
 0x16b   : > { %7977 = vmatmul.mubr.bf16.gmra.mrb[8].mxu0 %v3773_v24 }
 0x16c   : > { %7980 = vmatprep.mubr.bf16.mxu0 %v3775_v7 }
 0x173   : > { %7981 = vmatmul.mubr.bf16.gmra.mrb[12].mxu0 %v3777_v59  ;;  %v9543_v59 = vld [vmem:[%s10574_s3] ss:$0 sm:$0xff] }
 0x174   : > { %7984 = vmatprep.mubr.bf16.mxu0 %v3779_v2 }
 0x17b   : > { %7985 = vmatmul.mubr.bf16.gmra.mrb[16].mxu0 %v3781_v12 }
 0x17c   : > { %7988 = vmatprep.mubr.bf16.mxu0 %v3783_v19 }
 0x183   : > { %7989 = vmatmul.mubr.bf16.gmra.mrb[20].mxu0 %v3785_v51 }
 0x184   : > { %7992 = vmatprep.mubr.bf16.mxu0 %v3787_v9 }
 0x18b   : > { %7993 = vmatmul.mubr.bf16.gmra.mrb[24].mxu0 %v3789_v25 }
 0x18c   : > { %7996 = vmatprep.mubr.bf16.mxu0 %v3791_v52 }
 0x193   : > { %7997 = vmatmul.mubr.bf16.gmra.mrb[28].mxu0 %v3793_v21 }
 0x194   : > { %8000 = vmatprep.mubr.bf16.mxu0 %v3795_v58 }
 0x19b   : > { %8001 = vmatmul.mubr.bf16.gmra.mrb[32].mxu0 %v3797_v46 }
 0x1e1   : > { %v7710_v36 = vpop.f32.mrb[0].mxu1 }
 0x1e2   : > { %v1921_v35 = vpop.f32.mrb[1].mxu1 }
 0x1e3   : > { %v7711_v47 = vpop.f32.mrb[2].mxu1 }
 0x1e4   : > { %v1924_v54 = vpop.f32.mrb[3].mxu1 }
 0x1e9   : > { %v7714_v14 = vpop.f32.mrb[4].mxu1 }
 0x1ea   : > { %v1937_v13 = vpop.f32.mrb[5].mxu1 }
 0x1eb   : > { %v7715_v42 = vpop.f32.mrb[6].mxu1 }
 0x1ec   : > { %v1940_v50 = vpop.f32.mrb[7].mxu1 }
 0x1f1   : > { %v9484_v34 = vpop.f32.mrb[8].mxu1 }
 0x1f2   : > { %v9486_v57 = vpop.f32.mrb[9].mxu1 }
 0x1f3   : > { %v9488_v48 = vpop.f32.mrb[10].mxu1 }
 0x1f4   : > { %v9490_v26 = vpop.f32.mrb[11].mxu1 }
 0x1f9   : > { %v9492_v55 = vpop.f32.mrb[12].mxu1 }
 0x1fa   : > { %v9494_v23 = vpop.f32.mrb[13].mxu1 }
 0x1fb   : > { %v9496_v45 = vpop.f32.mrb[14].mxu1 }
 0x1fc   : > { %v9498_v8 = vpop.f32.mrb[15].mxu1 }
 0x201   : > { %v9500_v3 = vpop.f32.mrb[16].mxu1 }
 0x202   : > { %v9502_v41 = vpop.f32.mrb[17].mxu1 }
 0x203   : > { %v9504_v33 = vpop.f32.mrb[18].mxu1 }
 0x204   : > { %v9506_v43 = vpop.f32.mrb[19].mxu1 }
 0x209   : > { %v9508_v49 = vpop.f32.mrb[20].mxu1 }
 0x20a   : > { %v9510_v62 = vpop.f32.mrb[21].mxu1 }
 0x20b   : > { %v9512_v44 = vpop.f32.mrb[22].mxu1 }
 0x20c   : > { %v9514_v10 = vpop.f32.mrb[23].mxu1 }
 0x211   : > { %v9516_v56 = vpop.f32.mrb[24].mxu1 }
 0x212   : > { %v9518_v22 = vpop.f32.mrb[25].mxu1 }
 0x213   : > { %v9520_v17 = vpop.f32.mrb[26].mxu1 }
 0x214   : > { %v9522_v53 = vpop.f32.mrb[27].mxu1 }
 0x219   : > { %v9524_v20 = vpop.f32.mrb[28].mxu1 }
 0x21a   : > { %v9526_v16 = vpop.f32.mrb[29].mxu1 }
 0x21b   : > { %v9528_v39 = vpop.f32.mrb[30].mxu1 }
 0x21c   : > { %v9530_v63 = vpop.f32.mrb[31].mxu1 }
 0x221   : > { %v9532_v24 = vpop.f32.mrb[32].mxu1 }
 0x222   : > { %v9534_v7 = vpop.f32.mrb[33].mxu1 }
 0x223   : > { %v9536_v15 = vpop.f32.mrb[34].mxu1 }
 0x224   : > { %v9538_v18 = vpop.f32.mrb[35].mxu1 }
 0x22e   : > { %v7970_v60 = vpop.f32.mrb[0].mxu0 }
 0x22f   : > { %v8056_v2 = vadd.f32 %v7970_v60, %v7710_v36  ;;  %v3898_v5 = vpop.f32.mrb[1].mxu0 }
 0x230   : > { %v8057_v12 = vadd.f32 %v3898_v5, %v1921_v35  ;;  %v7971_v19 = vpop.f32.mrb[2].mxu0 }
 0x231   : > { %v4086_v1 = vmul.f32 %v8056_v2, %v9543_v59  ;;  %v8058_v30 = vadd.f32 %v7971_v19, %v7711_v47  ;;  %v3901_v0 = vpop.f32.mrb[3].mxu0 }
 0x232   : > { %v4084_v51 = vmul.f32 %v8057_v12, %v9543_v59  ;;  %v8059_v9 = vadd.f32 %v3901_v0, %v1924_v54 }
 0x233   : > { %v4129_v6 = vadd.f32 %v9548_v4, %v4086_v1  ;;  %v4087_v28 = vmul.f32 %v8058_v30, %v9543_v59 }
 0x234   : > { %v4127_v61 = vadd.f32 %v9548_v4, %v4084_v51  ;;  %v4085_v25 = vmul.f32 %v8059_v9, %v9543_v59 }
 0x235   : > { %v4130_v52 = vadd.f32 %v9548_v4, %v4087_v28  ;;  %v4165_v11 = vmax.f32 %v4129_v6, 0.0 }
 0x236   : > { %v4128_v40 = vadd.f32 %v9548_v4, %v4085_v25  ;;  %v7974_v27 = vpop.f32.mrb[4].mxu0  ;;  %v4163_v32 = vmax.f32 %v4127_v61, 0.0 }
 0x237   : > { %v4166_v21 = vmax.f32 %v4130_v52, 0.0  ;;  %v8060_v58 = vadd.f32 %v7974_v27, %v7714_v14  ;;  %v3914_v38 = vpop.f32.mrb[5].mxu0 }
 0x238   : > { %v4164_v46 = vmax.f32 %v4128_v40, 0.0  ;;  %v8061_v37 = vadd.f32 %v3914_v38, %v1937_v13  ;;  %v7975_v29 = vpop.f32.mrb[6].mxu0 }
 0x239   : > { %v4200_v31 = vpack.c.bf16 %v4166_v21, %v4165_v11  ;;  %v4090_v36 = vmul.f32 %v8060_v58, %v9543_v59  ;;  %v8062_v35 = vadd.f32 %v7975_v29, %v7715_v42  ;;  %v3917_v47 = vpop.f32.mrb[7].mxu0 }
 0x23a   : > { %v4088_v54 = vmul.f32 %v8061_v37, %v9543_v59  ;;  %v8063_v60 = vadd.f32 %v3917_v47, %v1940_v50  ;;  %v4199_v2 = vpack.c.bf16 %v4164_v46, %v4163_v32 }
 0x23b   : > { %v4133_v5 = vadd.f32 %v9548_v4, %v4090_v36  ;;  %v4091_v12 = vmul.f32 %v8062_v35, %v9543_v59 }
 0x23c   : > { %v4131_v14 = vadd.f32 %v9548_v4, %v4088_v54  ;;  %v4089_v19 = vmul.f32 %v8063_v60, %v9543_v59  ;;  %8020 = vmatprep.mubr.bf16.mxu1 %v4199_v2 }
 0x23d   : > { %v4134_v13 = vadd.f32 %v9548_v4, %v4091_v12  ;;  %8021 = vmatmul.mubr.bf16.vlgmr.msra.gmra.mrb[36].mxu1 %v4200_v31  ;;  %v4169_v30 = vmax.f32 %v4133_v5, 0.0 }
 0x23e   : > { %v4132_v1 = vadd.f32 %v9548_v4, %v4089_v19  ;;  %v7978_v42 = vpop.f32.mrb[8].mxu0  ;;  %v4167_v9 = vmax.f32 %v4131_v14, 0.0 }
 0x23f   : > { %v4170_v0 = vmax.f32 %v4134_v13, 0.0  ;;  %v8064_v50 = vadd.f32 %v7978_v42, %v9484_v34  ;;  %v3930_v51 = vpop.f32.mrb[9].mxu0 }
 0x240   : > { %v4168_v6 = vmax.f32 %v4132_v1, 0.0  ;;  %v8065_v28 = vadd.f32 %v3930_v51, %v9486_v57  ;;  %v7979_v61 = vpop.f32.mrb[10].mxu0 }
 0x241   : > { %v4094_v25 = vmul.f32 %v8064_v50, %v9543_v59  ;;  %v8066_v52 = vadd.f32 %v7979_v61, %v9488_v48  ;;  %v3933_v40 = vpop.f32.mrb[11].mxu0  ;;  %v4202_v27 = vpack.c.bf16 %v4170_v0, %v4169_v30 }
 0x242   : > { %v4092_v11 = vmul.f32 %v8065_v28, %v9543_v59  ;;  %v8067_v21 = vadd.f32 %v3933_v40, %v9490_v26  ;;  %v4201_v58 = vpack.c.bf16 %v4168_v6, %v4167_v9 }
 0x243   : > { %v4137_v38 = vadd.f32 %v9548_v4, %v4094_v25  ;;  %v4095_v34 = vmul.f32 %v8066_v52, %v9543_v59 }
 0x244   : > { %v4135_v32 = vadd.f32 %v9548_v4, %v4092_v11  ;;  %v4093_v57 = vmul.f32 %v8067_v21, %v9543_v59  ;;  %8024 = vmatprep.mubr.bf16.mxu1 %v4201_v58 }
 0x245   : > { %v4138_v46 = vadd.f32 %v9548_v4, %v4095_v34  ;;  %8025 = vmatmul.mubr.bf16.gmra.mrb[40].mxu1 %v4202_v27  ;;  %v4173_v29 = vmax.f32 %v4137_v38, 0.0 }
 0x246   : > { %v4136_v48 = vadd.f32 %v9548_v4, %v4093_v57  ;;  %v7982_v37 = vpop.f32.mrb[12].mxu0  ;;  %v4171_v35 = vmax.f32 %v4135_v32, 0.0 }
 0x247   : > { %v4174_v31 = vmax.f32 %v4138_v46, 0.0  ;;  %v8068_v26 = vadd.f32 %v7982_v37, %v9492_v55  ;;  %v3946_v36 = vpop.f32.mrb[13].mxu0 }
 0x248   : > { %v4172_v47 = vmax.f32 %v4136_v48, 0.0  ;;  %v8069_v54 = vadd.f32 %v3946_v36, %v9494_v23  ;;  %v7983_v60 = vpop.f32.mrb[14].mxu0 }
 0x249   : > { %v4098_v2 = vmul.f32 %v8068_v26, %v9543_v59  ;;  %v8070_v5 = vadd.f32 %v7983_v60, %v9496_v45  ;;  %v3949_v12 = vpop.f32.mrb[15].mxu0  ;;  %v4204_v14 = vpack.c.bf16 %v4174_v31, %v4173_v29 }
 0x24a   : > { %v4096_v19 = vmul.f32 %v8069_v54, %v9543_v59  ;;  %v8071_v13 = vadd.f32 %v3949_v12, %v9498_v8  ;;  %v4203_v1 = vpack.c.bf16 %v4172_v47, %v4171_v35 }
 0x24b   : > { %v4141_v42 = vadd.f32 %v9548_v4, %v4098_v2  ;;  %v4099_v55 = vmul.f32 %v8070_v5, %v9543_v59 }
 0x24c   : > { %v4139_v30 = vadd.f32 %v9548_v4, %v4096_v19  ;;  %v4097_v23 = vmul.f32 %v8071_v13, %v9543_v59  ;;  %8028 = vmatprep.mubr.bf16.mxu1 %v4203_v1 }
 0x24d   : > { %v4142_v0 = vadd.f32 %v9548_v4, %v4099_v55  ;;  %8029 = vmatmul.mubr.bf16.gmra.mrb[44].mxu1 %v4204_v14  ;;  %v4177_v51 = vmax.f32 %v4141_v42, 0.0 }
 0x24e   : > { %v4140_v45 = vadd.f32 %v9548_v4, %v4097_v23  ;;  %v7986_v50 = vpop.f32.mrb[16].mxu0  ;;  %v4175_v28 = vmax.f32 %v4139_v30, 0.0 }
 0x24f   : > { %v4178_v9 = vmax.f32 %v4142_v0, 0.0  ;;  %v8072_v8 = vadd.f32 %v7986_v50, %v9500_v3  ;;  %v3962_v6 = vpop.f32.mrb[17].mxu0 }
 0x250   : > { %v4176_v61 = vmax.f32 %v4140_v45, 0.0  ;;  %v8073_v25 = vadd.f32 %v3962_v6, %v9502_v41  ;;  %v7987_v52 = vpop.f32.mrb[18].mxu0 }
 0x251   : > { %v4102_v40 = vmul.f32 %v8072_v8, %v9543_v59  ;;  %v8074_v27 = vadd.f32 %v7987_v52, %v9504_v33  ;;  %v3965_v11 = vpop.f32.mrb[19].mxu0  ;;  %v4206_v21 = vpack.c.bf16 %v4178_v9, %v4177_v51 }
 0x252   : > { %v4100_v58 = vmul.f32 %v8073_v25, %v9543_v59  ;;  %v8075_v38 = vadd.f32 %v3965_v11, %v9506_v43  ;;  %v4205_v34 = vpack.c.bf16 %v4176_v61, %v4175_v28 }
 0x253   : > { %v4145_v32 = vadd.f32 %v9548_v4, %v4102_v40  ;;  %v4103_v3 = vmul.f32 %v8074_v27, %v9543_v59 }
 0x254   : > { %v4143_v57 = vadd.f32 %v9548_v4, %v4100_v58  ;;  %v4101_v41 = vmul.f32 %v8075_v38, %v9543_v59  ;;  %8032 = vmatprep.mubr.bf16.mxu1 %v4205_v34 }
 0x255   : > { %v4146_v46 = vadd.f32 %v9548_v4, %v4103_v3  ;;  %8033 = vmatmul.mubr.bf16.gmra.mrb[48].mxu1 %v4206_v21  ;;  %v4181_v37 = vmax.f32 %v4145_v32, 0.0 }
 0x256   : > { %v4144_v33 = vadd.f32 %v9548_v4, %v4101_v41  ;;  %v7990_v48 = vpop.f32.mrb[20].mxu0  ;;  %v4179_v26 = vmax.f32 %v4143_v57, 0.0 }
 0x257   : > { %v4182_v29 = vmax.f32 %v4146_v46, 0.0  ;;  %v8076_v43 = vadd.f32 %v7990_v48, %v9508_v49  ;;  %v3978_v31 = vpop.f32.mrb[21].mxu0 }
 0x258   : > { %v4180_v36 = vmax.f32 %v4144_v33, 0.0  ;;  %v8077_v35 = vadd.f32 %v3978_v31, %v9510_v62  ;;  %v7991_v47 = vpop.f32.mrb[22].mxu0 }
 0x259   : > { %v4106_v54 = vmul.f32 %v8076_v43, %v9543_v59  ;;  %v8078_v60 = vadd.f32 %v7991_v47, %v9512_v44  ;;  %v3981_v2 = vpop.f32.mrb[23].mxu0  ;;  %v4208_v5 = vpack.c.bf16 %v4182_v29, %v4181_v37 }
 0x25a   : > { %v4104_v12 = vmul.f32 %v8077_v35, %v9543_v59  ;;  %v8079_v14 = vadd.f32 %v3981_v2, %v9514_v10  ;;  %v4207_v19 = vpack.c.bf16 %v4180_v36, %v4179_v26 }
 0x25b   : > { %v4149_v13 = vadd.f32 %v9548_v4, %v4106_v54  ;;  %v4107_v49 = vmul.f32 %v8078_v60, %v9543_v59 }
 0x25c   : > { %v4147_v1 = vadd.f32 %v9548_v4, %v4104_v12  ;;  %v4105_v62 = vmul.f32 %v8079_v14, %v9543_v59  ;;  %8036 = vmatprep.mubr.bf16.mxu1 %v4207_v19 }
 0x25d   : > { %v4150_v42 = vadd.f32 %v9548_v4, %v4107_v49  ;;  %8037 = vmatmul.mubr.bf16.gmra.mrb[52].mxu1 %v4208_v5  ;;  %v4185_v30 = vmax.f32 %v4149_v13, 0.0 }
 0x25e   : > { %v4148_v44 = vadd.f32 %v9548_v4, %v4105_v62  ;;  %v7994_v55 = vpop.f32.mrb[24].mxu0  ;;  %v4183_v45 = vmax.f32 %v4147_v1, 0.0 }
 0x25f   : > { %v4186_v23 = vmax.f32 %v4150_v42, 0.0  ;;  %v8080_v10 = vadd.f32 %v7994_v55, %v9516_v56  ;;  %v3994_v0 = vpop.f32.mrb[25].mxu0 }
 0x260   : > { %v4184_v50 = vmax.f32 %v4148_v44, 0.0  ;;  %v8081_v51 = vadd.f32 %v3994_v0, %v9518_v22  ;;  %v7995_v9 = vpop.f32.mrb[26].mxu0 }
 0x261   : > { %v4110_v8 = vmul.f32 %v8080_v10, %v9543_v59  ;;  %v8082_v6 = vadd.f32 %v7995_v9, %v9520_v17  ;;  %v3997_v28 = vpop.f32.mrb[27].mxu0  ;;  %v4210_v61 = vpack.c.bf16 %v4186_v23, %v4185_v30 }
 0x262   : > { %v4108_v25 = vmul.f32 %v8081_v51, %v9543_v59  ;;  %v8083_v52 = vadd.f32 %v3997_v28, %v9522_v53  ;;  %v4209_v40 = vpack.c.bf16 %v4184_v50, %v4183_v45  ;;  %v7261_v28 = vld [vmem:[%s9655_s27 + $0x8] sm:$0xff]  }
 0x263   : > { %v4153_v27 = vadd.f32 %v9548_v4, %v4110_v8  ;;  %v4111_v56 = vmul.f32 %v8082_v6, %v9543_v59  ;;  %v4498_v6 = vlaneseq }
 0x264   : > { %v4151_v11 = vadd.f32 %v9548_v4, %v4108_v25  ;;  %v4109_v22 = vmul.f32 %v8083_v52, %v9543_v59  ;;  %8040 = vmatprep.mubr.bf16.mxu1 %v4209_v40  ;;  %v7198_v52 = vld [vmem:[%s9655_s27] sm:$0xff]   ;;  %v7203_v40 = vunpack.c.l.bf16 %v7261_v28 }
 0x265   : > { %v4154_v21 = vadd.f32 %v9548_v4, %v4111_v56  ;;  %8041 = vmatmul.mubr.bf16.gmra.mrb[56].mxu1 %v4210_v61  ;;  %v4189_v38 = vmax.f32 %v4153_v27, 0.0  ;;  %v4499_v25 = vshrl.u32 %v4498_v6, 7  ;;  %v7199_v27 = vunpack.c.l.bf16 %v7198_v52 }
 0x266   : > { %v4152_v17 = vadd.f32 %v9548_v4, %v4109_v22  ;;  %v7998_v58 = vpop.f32.mrb[28].mxu0  ;;  %v4187_v3 = vmax.f32 %v4151_v11, 0.0  ;;  %v7262_v11 = vld [vmem:[%s9655_s27 + $0x10] sm:$0xff]   ;;  %v7200_v22 = vunpack.c.h.bf16 %v7198_v52 }
 0x267   : > { %v4190_v34 = vmax.f32 %v4154_v21, 0.0  ;;  %v8084_v53 = vadd.f32 %v7998_v58, %v9524_v20  ;;  %v4010_v32 = vpop.f32.mrb[29].mxu0  ;;  %v5356_v21 = vcombine.high %v7203_v40, %v7203_v40  ;;  %v5322_v58 = vcombine.high %v7199_v27, %v7199_v27 }
 0x268   : > { %v4188_v57 = vmax.f32 %v4152_v17, 0.0  ;;  %v8085_v41 = vadd.f32 %v4010_v32, %v9526_v16  ;;  %v7999_v46 = vpop.f32.mrb[30].mxu0  ;;  %v7263_v17 = vld [vmem:[%s9655_s27 + $0x18] sm:$0xff]  }
 0x269   : > { %v4114_v33 = vmul.f32 %v8084_v53, %v9543_v59  ;;  %v8086_v48 = vadd.f32 %v7999_v46, %v9528_v39  ;;  %v4013_v37 = vpop.f32.mrb[31].mxu0  ;;  %v4212_v29 = vpack.c.bf16 %v4190_v34, %v4189_v38  ;;  %v7208_v38 = vunpack.c.h.bf16 %v7262_v11 }
 0x26a   : > { %v4112_v43 = vmul.f32 %v8085_v41, %v9543_v59  ;;  %v8087_v31 = vadd.f32 %v4013_v37, %v9530_v63  ;;  %v4211_v26 = vpack.c.bf16 %v4188_v57, %v4187_v3  ;;  %v7204_v53 = vunpack.c.h.bf16 %v7261_v28 }
 0x26b   : > { %v4157_v36 = vadd.f32 %v9548_v4, %v4114_v33  ;;  %v4115_v20 = vmul.f32 %v8086_v48, %v9543_v59  ;;  %v5339_v3 = vcombine.high %v7200_v22, %v7200_v22  ;;  %v7211_v57 = vunpack.c.l.bf16 %v7263_v17 }
 0x26c   : > { %v4155_v35 = vadd.f32 %v9548_v4, %v4112_v43  ;;  %v4113_v16 = vmul.f32 %v8087_v31, %v9543_v59  ;;  %8044 = vmatprep.mubr.bf16.mxu1 %v4211_v26  ;;  %v7207_v41 = vunpack.c.l.bf16 %v7262_v11  ;;  %v5373_v33 = vcombine.high %v7204_v53, %v7204_v53 }
 0x26d   : > { %v4158_v47 = vadd.f32 %v9548_v4, %v4115_v20  ;;  %8045 = vmatmul.mubr.bf16.gmra.mrb[60].mxu1 %v4212_v29  ;;  %v4193_v60 = vmax.f32 %v4157_v36, 0.0  ;;  %v5407_v37 = vcombine.high %v7208_v38, %v7208_v38  ;;  %v7264_v29 = vld [vmem:[%s9655_s27 + $0x20] sm:$0xff]  }
 0x26e   : > { %v4156_v39 = vadd.f32 %v9548_v4, %v4113_v16  ;;  %v8002_v54 = vpop.f32.mrb[32].mxu0  ;;  %v4191_v12 = vmax.f32 %v4155_v35, 0.0  ;;  %v5424_v35 = vcombine.high %v7211_v57, %v7211_v57  ;;  %v5390_v16 = vcombine.high %v7207_v41, %v7207_v41 }
 0x26f   : > { %v4194_v2 = vmax.f32 %v4158_v47, 0.0  ;;  %v8088_v63 = vadd.f32 %v8002_v54, %v9532_v24  ;;  %v4026_v5 = vpop.f32.mrb[33].mxu0  ;;  %v7266_v47 = vld [vmem:[%s9655_s27 + $0x30] sm:$0xff]  }
 0x270   : > { %v4192_v14 = vmax.f32 %v4156_v39, 0.0  ;;  %v8089_v19 = vadd.f32 %v4026_v5, %v9534_v7  ;;  %v8003_v13 = vpop.f32.mrb[34].mxu0 }
 0x271   : > { %v4118_v49 = vmul.f32 %v8088_v63, %v9543_v59  ;;  %v8090_v1 = vadd.f32 %v8003_v13, %v9536_v15  ;;  %v4029_v62 = vpop.f32.mrb[35].mxu0  ;;  %v4214_v42 = vpack.c.bf16 %v4194_v2, %v4193_v60  ;;  %v7216_v60 = vunpack.c.h.bf16 %v7264_v29 }
 0x272   : > { %v4116_v44 = vmul.f32 %v8089_v19, %v9543_v59  ;;  %v8091_v55 = vadd.f32 %v4029_v62, %v9538_v18  ;;  %v4213_v30 = vpack.c.bf16 %v4192_v14, %v4191_v12  ;;  %v7212_v2 = vunpack.c.h.bf16 %v7263_v17  ;;  %v7265_v14 = vld [vmem:[%s9655_s27 + $0x28] sm:$0xff]  }
 0x273   : > { %v4161_v23 = vadd.f32 %v9548_v4, %v4118_v49  ;;  %v4119_v24 = vmul.f32 %v8090_v1, %v9543_v59  ;;  %v7215_v19 = vunpack.c.l.bf16 %v7264_v29  ;;  %v7223_v62 = vunpack.c.l.bf16 %v7266_v47 }
 0x274   : > { %v4159_v10 = vadd.f32 %v9548_v4, %v4116_v44  ;;  %v4117_v7 = vmul.f32 %v8091_v55, %v9543_v59  ;;  %8048 = vmatprep.mubr.bf16.mxu1 %v4213_v30  ;;  %v8478_v59 = vmov 1983009808   ;;  %v7220_v11 = vunpack.c.h.bf16 %v7265_v14 }
 0x275   : > { %v4162_v0 = vadd.f32 %v9548_v4, %v4119_v24  ;;  %8049 = vmatmul.mubr.bf16.gmra.mrb[64].mxu1 %v4214_v42  ;;  %v4197_v45 = vmax.f32 %v4161_v23, 0.0  ;;  %v5475_v24 = vcombine.high %v7216_v60, %v7216_v60 }
 0x276   : > { %v4160_v15 = vadd.f32 %v9548_v4, %v4117_v7  ;;  %v4195_v51 = vmax.f32 %v4159_v10, 0.0  ;;  %v4496_v4 = vunpack.c.l.s4 %v8478_v59  ;;  %v5441_v10 = vcombine.high %v7212_v2, %v7212_v2  ;;  %v7267_v59 = vld [vmem:[%s9655_s27 + $0x38] sm:$0xff]  }
 0x277   : > { %v4198_v50 = vmax.f32 %v4162_v0, 0.0  ;;  %v7219_v7 = vunpack.c.l.bf16 %v7265_v14  ;;  %v7228_v29 = vunpack.c.h.bf16 %v7267_v59  ;;  %v7275_v0 = vld [vmem:[%s9655_s27 + $0x78] sm:$0xff]  }
 0x278   : > { %v4196_v18 = vmax.f32 %v4160_v15, 0.0  ;;  %v4497_v61 = vunpack.c.0.s8 %v4496_v4  ;;  %v7272_v4 = vld [vmem:[%s9655_s27 + $0x60] sm:$0xff]  }
 0x279   : > { %v4216_v9 = vpack.c.bf16 %v4198_v50, %v4197_v45  ;;  %v5458_v50 = vcombine.high %v7215_v19, %v7215_v19  ;;  %v5577_v14 = vcombine.high %v7228_v29, %v7228_v29 }
 0x27a   : > { %v4215_v8 = vpack.c.bf16 %v4196_v18, %v4195_v51  ;;  %v9659_v56 = vsub.s32 %v4497_v61, %v4499_v25  ;;  %v7224_v61 = vunpack.c.h.bf16 %v7266_v47  ;;  %v7268_v25 = vld [vmem:[%s9655_s27 + $0x40] sm:$0xff]   ;;  %v7271_v47 = vld [vmem:[%s9655_s27 + $0x58] sm:$0xff]  }
 0x27c   : > { %8052 = vmatprep.mubr.bf16.mxu1 %v4215_v8  ;;  %v9664_v34 = vrot.slane %v7203_v40, %v9659_v56  ;;  %v9667_v32 = vrot.slane %v7199_v27, %v9659_v56  ;;  %v9670_v46 = vrot.slane %v5356_v21, %v9659_v56  ;;  %v9673_v48 = vrot.slane %v5322_v58, %v9659_v56 }
 0x27d   : > { %8053 = vmatmul.mubr.bf16.gmra.mrb[68].mxu1 %v4216_v9  ;;  %v9679_v31 = vrot.slane %v7204_v53, %v9659_v56  ;;  %v9682_v26 = vrot.slane %v7200_v22, %v9659_v56  ;;  %v9687_v20 = vrot.slane %v5339_v3, %v9659_v56  ;;  %v9693_v54 = vrot.slane %v5373_v33, %v9659_v56  ;;  %v7273_v22 = vld [vmem:[%s9655_s27 + $0x68] sm:$0xff]  }
 0x27e   : > { %v9698_v5 = vrot.slane %v5407_v37, %v9659_v56  ;;  %v9701_v12 = vrot.slane %v7211_v57, %v9659_v56  ;;  %v9709_v1 = vrot.slane %v7207_v41, %v9659_v56  ;;  %v9714_v44 = vrot.slane %v5424_v35, %v9659_v56  ;;  %v7269_v35 = vld [vmem:[%s9655_s27 + $0x48] sm:$0xff]  }
 0x27f   : > { %v9717_v55 = vrot.slane %v5390_v16, %v9659_v56  ;;  %v9720_v30 = vrot.slane %v7208_v38, %v9659_v56  ;;  %v9729_v45 = vrot.slane %v7212_v2, %v9659_v56  ;;  %v9734_v18 = vrot.slane %v7216_v60, %v9659_v56 }
 0x280   : > { %v5526_v9 = vcombine.high %v7223_v62, %v7223_v62  ;;  %v5492_v8 = vcombine.high %v7219_v7, %v7219_v7  ;;  %v9745_v52 = vrot.slane %v5475_v24, %v9659_v56  ;;  %v9748_v40 = vrot.slane %v5441_v10, %v9659_v56 }
 0x281   : > { %v9751_v27 = vrot.slane %v7219_v7, %v9659_v56  ;;  %v9756_v21 = vrot.slane %v7215_v19, %v9659_v56  ;;  %v9759_v17 = vrot.slane %v5458_v50, %v9659_v56  ;;  %v7227_v58 = vunpack.c.l.bf16 %v7267_v59  ;;  %v7270_v7 = vld [vmem:[%s9655_s27 + $0x50] sm:$0xff]  }
 0x282   : > { %v9764_v53 = vrot.slane %v5526_v9, %v9659_v56  ;;  %v9767_v3 = vrot.slane %v5492_v8, %v9659_v56  ;;  %v7231_v57 = vunpack.c.l.bf16 %v7268_v25  ;;  %v9770_v41 = vrot.slane %v7220_v11, %v9659_v56 }
 0x283   : > { %v5543_v33 = vcombine.high %v7224_v61, %v7224_v61  ;;  %v7232_v37 = vunpack.c.h.bf16 %v7268_v25  ;;  %v5509_v2 = vcombine.high %v7220_v11, %v7220_v11  ;;  %v9784_v24 = vrot.slane %v7224_v61, %v9659_v56 }
 0x284   : > { %v5560_v10 = vcombine.high %v7227_v58, %v7227_v58  ;;  %v5594_v8 = vcombine.high %v7231_v57, %v7231_v57  ;;  %v7236_v59 = vunpack.c.h.bf16 %v7269_v35  ;;  %v9797_v61 = vrot.slane %v7227_v58, %v9659_v56 }
 0x285   : > { %v9794_v11 = vrot.slane %v5543_v33, %v9659_v56  ;;  %v5611_v19 = vcombine.high %v7232_v37, %v7232_v37  ;;  %v9800_v60 = vrot.slane %v5509_v2, %v9659_v56  ;;  %v9803_v50 = vrot.slane %v7223_v62, %v9659_v56 }
 0x286   : > { %v7239_v9 = vunpack.c.l.bf16 %v7270_v7  ;;  %v9809_v25 = vrot.slane %v7231_v57, %v9659_v56  ;;  %v9812_v33 = vrot.slane %v5560_v10, %v9659_v56  ;;  %v7235_v16 = vunpack.c.l.bf16 %v7269_v35 }
 0x287   : > { %v9815_v58 = vrot.slane %v5594_v8, %v9659_v56  ;;  %v9818_v2 = vrot.slane %v7232_v37, %v9659_v56  ;;  %v9821_v62 = vrot.slane %v7228_v29, %v9659_v56  ;;  %v5645_v38 = vcombine.high %v7236_v59, %v7236_v59 }
 0x288   : > { %v9826_v57 = vrot.slane %v5611_v19, %v9659_v56  ;;  %v9829_v35 = vrot.slane %v5577_v14, %v9659_v56  ;;  %v7244_v10 = vunpack.c.h.bf16 %v7271_v47  ;;  %v5662_v28 = vcombine.high %v7239_v9, %v7239_v9 }
 0x289   : > { %v7240_v6 = vunpack.c.h.bf16 %v7270_v7  ;;  %v5628_v14 = vcombine.high %v7235_v16, %v7235_v16  ;;  %v9849_v15 = vrot.slane %v5645_v38, %v9659_v56  ;;  %v9857_v51 = vrot.slane %v7235_v16, %v9659_v56 }
 0x28a   : > { %v5713_v8 = vcombine.high %v7244_v10, %v7244_v10  ;;  %v9860_v23 = vrot.slane %v7239_v9, %v9659_v56  ;;  %v9863_v29 = vrot.slane %v5662_v28, %v9659_v56  ;;  %v7247_v37 = vunpack.c.l.bf16 %v7272_v4 }
 0x28b   : > { %10793 = vst [vmem:[#allocation3_spill] sm:$0xff] %v9849_v15  ;;  %10794 = vst [vmem:[#allocation4_spill] sm:$0xff] %v9857_v51  ;;  %v5679_v38 = vcombine.high %v7240_v6, %v7240_v6  ;;  %v9867_v42 = vrot.slane %v7240_v6, %v9659_v56  ;;  %v9870_v19 = vrot.slane %v5628_v14, %v9659_v56  ;;  %v7243_v7 = vunpack.c.l.bf16 %v7271_v47  ;;  %v7274_v14 = vld [vmem:[%s9655_s27 + $0x70] sm:$0xff]  }
 0x28c   : > { %10795 = vst [vmem:[#allocation5_spill] sm:$0xff] %v9863_v29  ;;  %v7251_v16 = vunpack.c.l.bf16 %v7273_v22  ;;  %v9875_v9 = vrot.slane %v7236_v59, %v9659_v56  ;;  %v7252_v13 = vunpack.c.h.bf16 %v7273_v22  ;;  %v7248_v28 = vunpack.c.h.bf16 %v7272_v4 }
 0x28d   : > { %10796 = vst [vmem:[#allocation6_spill] sm:$0xff] %v9867_v42  ;;  %10797 = vst [vmem:[#allocation7_spill] sm:$0xff] %v9870_v19  ;;  %v9880_v39 = vrot.slane %v7244_v10, %v9659_v56  ;;  %v9883_v6 = vrot.slane %v5713_v8, %v9659_v56  ;;  %v7259_v47 = vunpack.c.l.bf16 %v7275_v0  ;;  %v9891_v22 = vrot.slane %v5679_v38, %v9659_v56 }
 0x28e   : > { %10798 = vst [vmem:[#allocation8_spill] sm:$0xff] %v9875_v9  ;;  %v5730_v4 = vcombine.high %v7247_v37, %v7247_v37  ;;  %v5696_v8 = vcombine.high %v7243_v7, %v7243_v7  ;;  %v5764_v63 = vcombine.high %v7251_v16, %v7251_v16  ;;  %v5747_v15 = vcombine.high %v7248_v28, %v7248_v28 }
 0x28f   : > { %10799 = vst [vmem:[#allocation9_spill] sm:$0xff] %v9880_v39  ;;  %v7255_v36 = vunpack.c.l.bf16 %v7274_v14  ;;  %v5781_v51 = vcombine.high %v7252_v13, %v7252_v13  ;;  %v9904_v29 = vrot.slane %v7247_v37, %v9659_v56  ;;  %v5832_v49 = vcombine.high %v7259_v47, %v7259_v47 }
 0x290   : > { %v9909_v19 = vrot.slane %v7243_v7, %v9659_v56  ;;  %v9912_v43 = vrot.slane %v5730_v4, %v9659_v56  ;;  %v7260_v9 = vunpack.c.h.bf16 %v7275_v0  ;;  %v9915_v42 = vrot.slane %v5696_v8, %v9659_v56 }
 0x291   : > { %10800 = vst [vmem:[#allocation10_spill] sm:$0xff] %v9904_v29  ;;  %v9918_v59 = vrot.slane %v5764_v63, %v9659_v56  ;;  %v9921_v37 = vrot.slane %v7252_v13, %v9659_v56  ;;  %v5798_v38 = vcombine.high %v7255_v36, %v7255_v36  ;;  %v9924_v39 = vrot.slane %v7248_v28, %v9659_v56 }
 0x292   : > { %10801 = vst [vmem:[#allocation11_spill] sm:$0xff] %v9909_v19  ;;  %10802 = vst [vmem:[#allocation12_spill] sm:$0xff] %v9912_v43  ;;  %v9927_v7 = vrot.slane %v5747_v15, %v9659_v56  ;;  %v9930_v4 = vrot.slane %v5781_v51, %v9659_v56  ;;  %v9933_v0 = vrot.slane %v7255_v36, %v9659_v56  ;;  %v9976_v15 = vunpack.c.h.bf16 %v7274_v14 }
 0x293   : > { %10803 = vst [vmem:[#allocation13_spill] sm:$0xff] %v9915_v42  ;;  %10804 = vst [vmem:[#allocation14_spill] sm:$0xff] %v9918_v59  ;;  %v9938_v8 = vrot.slane %v7251_v16, %v9659_v56  ;;  %v9941_v13 = vrot.slane %v7259_v47, %v9659_v56  ;;  %v9944_v28 = vrot.slane %v5832_v49, %v9659_v56 }
 0x294   : > { %10805 = vst [vmem:[#allocation15_spill] sm:$0xff] %v9921_v37  ;;  %10806 = vst [vmem:[#allocation16_spill] sm:$0xff] %v9924_v39  ;;  %v5849_v36 = vcombine.high %v7260_v9, %v7260_v9  ;;  %v9951_v10 = vrot.slane %v7260_v9, %v9659_v56  ;;  %v9960_v63 = vrot.slane %v5798_v38, %v9659_v56 }
 0x295   : > { %10807 = vst [vmem:[#allocation17_spill] sm:$0xff] %v9927_v7  ;;  %10808 = vst [vmem:[#allocation18_spill] sm:$0xff] %v9930_v4  ;;  %v9989_v14 = vrot.slane %v9976_v15, %v9659_v56 }
 0x296   : > { %10809 = vst [vmem:[#allocation19_spill] sm:$0xff] %v9933_v0  ;;  %10810 = vst [vmem:[#allocation20_spill] sm:$0xff] %v9938_v8  ;;  %v9980_v9 = vrot.slane %v5849_v36, %v9659_v56 }
 0x297   : > { %10811 = vst [vmem:[#allocation21_spill] sm:$0xff] %v9941_v13  ;;  %10812 = vst [vmem:[#allocation22_spill] sm:$0xff] %v9944_v28 }
 0x298   : > { %10813 = vst [vmem:[#allocation23_spill] sm:$0xff] %v9951_v10  ;;  %10814 = vst [vmem:[#allocation24_spill] sm:$0xff] %v9960_v63  ;;  %v10817_v63 = vcombine.high %v9664_v34, %v9664_v34 }
 0x299   : > { %10815 = vst [vmem:[#allocation25_spill] sm:$0xff] %v9980_v9  ;;  %10816 = vst [vmem:[#allocation26_spill] sm:$0xff] %v9989_v14 }
 0x310   : > { %v8022_v42 = vpop.f32.mrb[36].mxu1 }
 0x311   : > { %v4528_v59 = vcombine.high %v8022_v42, %v8022_v42  ;;  %v4535_v51 = vrot.slane %v8022_v42, %v9659_v56  ;;  %v4315_v7 = vpop.f32.mrb[37].mxu1 }
 0x312   : > { %v4494_v0 = vcombine.high %v4315_v7, %v4315_v7  ;;  %v4501_v47 = vrot.slane %v4315_v7, %v9659_v56  ;;  %v8023_v8 = vpop.f32.mrb[38].mxu1 }
 0x313   : > { %v4542_v42 = vrot.slane %v4528_v59, %v9659_v56  ;;  %v4543_v49 = vcombine.high %v4535_v51, %v4535_v51  ;;  %v4545_v13 = vcombine.high %v8023_v8, %v8023_v8  ;;  %v4552_v36 = vrot.slane %v8023_v8, %v9659_v56  ;;  %v4318_v28 = vpop.f32.mrb[39].mxu1 }
 0x314   : > { %v4508_v16 = vrot.slane %v4494_v0, %v9659_v56  ;;  %v4509_v10 = vcombine.high %v4501_v47, %v4501_v47  ;;  %v5994_v7 = vadd.f32 %v9667_v32, %v4501_v47  ;;  %v4511_v4 = vcombine.high %v4318_v28, %v4318_v28 }
 0x315   : > { %v4544_v39 = vcombine.high %v4542_v42, %v4542_v42  ;;  %v6002_v38 = vadd.f32 %v9664_v34, %v4543_v49  ;;  %v6003_v14 = vadd.f32 %v10817_v63, %v4542_v42  ;;  %v4559_v59 = vrot.slane %v4545_v13, %v9659_v56 }
 0x316   : > { %v4510_v51 = vcombine.high %v4508_v16, %v4508_v16  ;;  %v10818_v8 = vcombine.high %v9667_v32, %v9667_v32  ;;  %v5996_v0 = vadd.f32 %v9673_v48, %v4508_v16  ;;  %v4560_v37 = vcombine.high %v4552_v36, %v4552_v36 }
 0x317   : > { %v6284_v47 = vcombine.low %v6002_v38, %v6003_v14  ;;  %v4561_v43 = vcombine.high %v4559_v59, %v4559_v59  ;;  %v6004_v29 = vadd.f32 %v9670_v46, %v4544_v39  ;;  %v10819_v49 = vcombine.high %v9670_v46, %v9670_v46 }
 0x318   : > { %v5995_v9 = vadd.f32 %v10818_v8, %v4509_v10  ;;  %v10820_v63 = vcombine.high %v9673_v48, %v9673_v48  ;;  %v6006_v19 = vadd.f32 %v9679_v31, %v4560_v37  ;;  %v10821_v32 = vcombine.high %v9679_v31, %v9679_v31  ;;  %v8026_v16 = vpop.f32.mrb[40].mxu1 }
 0x319   : > { %v6005_v34 = vadd.f32 %v10819_v49, %v4552_v36  ;;  %v6292_v38 = vrot.slane %v6284_v47, %v9659_v56  ;;  %v4518_v14 = vrot.slane %v4318_v28, %v9659_v56  ;;  %v4525_v46 = vrot.slane %v4511_v4, %v9659_v56  ;;  %v4331_v36 = vpop.f32.mrb[41].mxu1 }
 0x31a   : > { %v5997_v13 = vadd.f32 %v10820_v63, %v4510_v51  ;;  %v6250_v42 = vcombine.low %v5994_v7, %v5995_v9  ;;  %v6007_v10 = vadd.f32 %v10821_v32, %v4559_v59  ;;  %v4595_v7 = vcombine.high %v8026_v16, %v8026_v16  ;;  %v8027_v37 = vpop.f32.mrb[42].mxu1 }
 0x31b   : > { %v6285_v39 = vcombine.low %v6004_v29, %v6005_v34  ;;  %v4526_v31 = vcombine.high %v4518_v14, %v4518_v14  ;;  %v4527_v59 = vcombine.high %v4525_v46, %v4525_v46  ;;  %v5998_v49 = vadd.f32 %v9682_v26, %v4518_v14  ;;  %v4334_v47 = vpop.f32.mrb[43].mxu1 }
 0x31c   : > { %v6251_v8 = vcombine.low %v5996_v0, %v5997_v13  ;;  %v6258_v48 = vrot.slane %v6250_v42, %v9659_v56  ;;  %v6301_v9 = vcombine.low %v6006_v19, %v6007_v10  ;;  %v6000_v19 = vadd.f32 %v9687_v20, %v4525_v46 }
 0x31d   : > { %v6299_v51 = vrot.slane %v6285_v39, %v9659_v56  ;;  %v4602_v28 = vrot.slane %v8026_v16, %v9659_v56  ;;  %v10822_v34 = vcombine.high %v9682_v26, %v9682_v26  ;;  %v10823_v13 = vcombine.high %v9687_v20, %v9687_v20 }
 0x31e   : > { %v6265_v29 = vrot.slane %v6251_v8, %v9659_v56  ;;  %v6309_v4 = vrot.slane %v6301_v9, %v9659_v56  ;;  %v4609_v32 = vrot.slane %v4595_v7, %v9659_v56  ;;  %v4562_v8 = vcombine.high %v4331_v36, %v4331_v36 }
 0x31f   : > { %v6300_v0 = vcombine.low %v6292_v38, %v6299_v51  ;;  %v5999_v63 = vadd.f32 %v10822_v34, %v4526_v31  ;;  %v6001_v42 = vadd.f32 %v10823_v13, %v4527_v59  ;;  %v4610_v39 = vcombine.high %v4602_v28, %v4602_v28 }
 0x320   : > { %v6266_v10 = vcombine.low %v6258_v48, %v6265_v29  ;;  %v6016_v14 = vadd.f32 %v9698_v5, %v4602_v28  ;;  %v4611_v16 = vcombine.high %v4609_v32, %v4609_v32  ;;  %v4569_v38 = vrot.slane %v4331_v36, %v9659_v56  ;;  %v8030_v31 = vpop.f32.mrb[44].mxu1 }
 0x321   : > { %6828 = vst [vmem:[%s10025_s29 + $0x10] sm:$0xff] %v6300_v0  ;;  %v6267_v46 = vcombine.low %v5998_v49, %v5999_v63  ;;  %v6268_v9 = vcombine.low %v6000_v19, %v6001_v42  ;;  %v10824_v26 = vcombine.high %v9698_v5, %v9698_v5  ;;  %v4576_v20 = vrot.slane %v4562_v8, %v9659_v56  ;;  %v4347_v28 = vpop.f32.mrb[45].mxu1 }
 0x322   : > { %6826 = vst [vmem:[%s10025_s29] sm:$0xff] %v6266_v10  ;;  %v6008_v7 = vadd.f32 %v9693_v54, %v4561_v43  ;;  %v4612_v48 = vcombine.high %v8027_v37, %v8027_v37  ;;  %v6018_v49 = vadd.f32 %v9701_v12, %v4611_v16  ;;  %v10825_v36 = vcombine.high %v9693_v54, %v9693_v54  ;;  %v10055_v63 = vpop.f32.mrb[46].mxu1 }
 0x323   : > { %v6017_v51 = vadd.f32 %v10824_v26, %v4610_v39  ;;  %v6275_v59 = vrot.slane %v6267_v46, %v9659_v56  ;;  %v6282_v29 = vrot.slane %v6268_v9, %v9659_v56  ;;  %v4577_v0 = vcombine.high %v4576_v20, %v4576_v20  ;;  %v10058_v39 = vpop.f32.mrb[47].mxu1 }
 0x324   : > { %v6009_v19 = vadd.f32 %v10825_v36, %v4569_v38  ;;  %v6010_v34 = vadd.f32 %v9709_v1, %v4576_v20  ;;  %v4619_v43 = vrot.slane %v8027_v37, %v9659_v56  ;;  %v4626_v32 = vrot.slane %v4612_v48, %v9659_v56 }
 0x325   : > { %v6336_v5 = vcombine.low %v6016_v14, %v6017_v51  ;;  %v6283_v13 = vcombine.low %v6275_v59, %v6282_v29  ;;  %v4578_v10 = vcombine.high %v4334_v47, %v4334_v47  ;;  %v10826_v14 = vcombine.high %v9709_v1, %v9709_v1 }
 0x326   : > { %v6302_v42 = vcombine.low %v6008_v7, %v6009_v19  ;;  %v4627_v46 = vcombine.high %v4619_v43, %v4619_v43  ;;  %v10827_v37 = vcombine.high %v9701_v12, %v9701_v12  ;;  %v4628_v38 = vcombine.high %v4626_v32, %v4626_v32 }
 0x327   : > { %v10061_v54 = vrot.slane %v6336_v5, %v9659_v56  ;;  %v6011_v8 = vadd.f32 %v10826_v14, %v4577_v0  ;;  %6827 = vst [vmem:[%s10025_s29 + $0x8] sm:$0xff] %v6283_v13  ;;  %v10828_v26 = vcombine.high %v9714_v44, %v9714_v44  ;;  %v4585_v20 = vrot.slane %v4334_v47, %v9659_v56 }
 0x328   : > { %v6019_v9 = vadd.f32 %v10827_v37, %v4619_v43  ;;  %v6316_v16 = vrot.slane %v6302_v42, %v9659_v56  ;;  %v6020_v1 = vadd.f32 %v9714_v44, %v4627_v46  ;;  %v4592_v59 = vrot.slane %v4578_v10, %v9659_v56  ;;  %v10080_v42 = vpop.f32.mrb[48].mxu1 }
 0x329   : > { %v6021_v51 = vadd.f32 %v10828_v26, %v4626_v32  ;;  %v6318_v7 = vcombine.low %v6010_v34, %v6011_v8  ;;  %v4593_v12 = vcombine.high %v4585_v20, %v4585_v20  ;;  %v6012_v36 = vadd.f32 %v9717_v55, %v4585_v20  ;;  %v10089_v32 = vpop.f32.mrb[49].mxu1 }
 0x32a   : > { %v6352_v48 = vcombine.low %v6018_v49, %v6019_v9  ;;  %v6317_v29 = vcombine.low %v6309_v4, %v6316_v16  ;;  %v4662_v19 = vcombine.high %v8030_v31, %v8030_v31  ;;  %v4594_v13 = vcombine.high %v4592_v59, %v4592_v59 }
 0x32b   : > { %v6326_v5 = vrot.slane %v6318_v7, %v9659_v56  ;;  %v6353_v0 = vcombine.low %v6020_v1, %v6021_v51  ;;  %v10829_v44 = vcombine.high %v9717_v55, %v9717_v55  ;;  %v6014_v49 = vadd.f32 %v9720_v30, %v4592_v59  ;;  %v10096_v55 = vpop.f32.mrb[50].mxu1 }
 0x32c   : > { %v6360_v43 = vrot.slane %v6352_v48, %v9659_v56  ;;  %6829 = vst [vmem:[%s10025_s29 + $0x18] sm:$0xff] %v6317_v29  ;;  %v4669_v4 = vrot.slane %v8030_v31, %v9659_v56  ;;  %v4676_v34 = vrot.slane %v4662_v19, %v9659_v56  ;;  %v10830_v14 = vcombine.high %v9720_v30, %v9720_v30  ;;  %v10099_v51 = vpop.f32.mrb[51].mxu1 }
 0x32d   : > { %v6013_v47 = vadd.f32 %v10829_v44, %v4593_v12  ;;  %v6367_v10 = vrot.slane %v6353_v0, %v9659_v56  ;;  %v4629_v46 = vcombine.high %v4347_v28, %v4347_v28  ;;  %v4636_v37 = vrot.slane %v4347_v28, %v9659_v56 }
 0x32e   : > { %v6015_v8 = vadd.f32 %v10830_v14, %v4594_v13  ;;  %v4677_v16 = vcombine.high %v4669_v4, %v4669_v4  ;;  %v4678_v26 = vcombine.high %v4676_v34, %v4676_v34  ;;  %v6030_v31 = vadd.f32 %v9734_v18, %v4669_v4 }
 0x32f   : > { %v6319_v9 = vcombine.low %v6012_v36, %v6013_v47  ;;  %v6368_v20 = vcombine.low %v6360_v43, %v6367_v10  ;;  %v6032_v1 = vadd.f32 %v9745_v52, %v4676_v34  ;;  %v4643_v30 = vrot.slane %v4629_v46, %v9659_v56 }
 0x330   : > { %v6335_v7 = vcombine.low %v6014_v49, %v6015_v8  ;;  %v10831_v28 = vcombine.high %v9734_v18, %v9734_v18  ;;  %v10832_v29 = vcombine.high %v9745_v52, %v9745_v52  ;;  %v4644_v36 = vcombine.high %v4636_v37, %v4636_v37  ;;  %v10125_v14 = vpop.f32.mrb[52].mxu1 }
 0x331   : > { %v6333_v48 = vrot.slane %v6319_v9, %v9659_v56  ;;  %6832 = vst [vmem:[%s10025_s29 + $0x30] sm:$0xff] %v6368_v20  ;;  %v6022_v0 = vadd.f32 %v9729_v45, %v4628_v38  ;;  %v10833_v43 = vcombine.high %v9729_v45, %v9729_v45  ;;  %v10834_v44 = vcombine.high %v9748_v40, %v9748_v40 }
 0x332   : > { %v6031_v59 = vadd.f32 %v10831_v28, %v4677_v16  ;;  %v6033_v12 = vadd.f32 %v10832_v29, %v4678_v26  ;;  %v6343_v19 = vrot.slane %v6335_v7, %v9659_v56  ;;  %v6024_v4 = vadd.f32 %v9748_v40, %v4644_v36 }
 0x333   : > { %v6023_v13 = vadd.f32 %v10833_v43, %v4636_v37  ;;  %v6025_v18 = vadd.f32 %v10834_v44, %v4643_v30  ;;  %v6334_v47 = vcombine.low %v6326_v5, %v6333_v48  ;;  %v4679_v38 = vcombine.high %v10055_v63, %v10055_v63  ;;  %v10132_v37 = vpop.f32.mrb[53].mxu1 }
 0x334   : > { %v6403_v49 = vcombine.low %v6030_v31, %v6031_v59  ;;  %v6404_v52 = vcombine.low %v6032_v1, %v6033_v12  ;;  %v6351_v34 = vcombine.low %v6343_v19, %v10061_v54  ;;  %v4686_v45 = vrot.slane %v10055_v63, %v9659_v56  ;;  %v10139_v26 = vpop.f32.mrb[54].mxu1 }
 0x335   : > { %v6369_v10 = vcombine.low %v6022_v0, %v6023_v13  ;;  %6830 = vst [vmem:[%s10025_s29 + $0x20] sm:$0xff] %v6334_v47  ;;  %v6370_v46 = vcombine.low %v6024_v4, %v6025_v18  ;;  %v4645_v40 = vcombine.high %v10058_v39, %v10058_v39  ;;  %v4693_v9 = vrot.slane %v4679_v38, %v9659_v56  ;;  %v10145_v30 = vpop.f32.mrb[55].mxu1 }
 0x336   : > { %v6411_v8 = vrot.slane %v6403_v49, %v9659_v56  ;;  %v6418_v5 = vrot.slane %v6404_v52, %v9659_v56  ;;  %6831 = vst [vmem:[%s10025_s29 + $0x28] sm:$0xff] %v6351_v34  ;;  %v4694_v63 = vcombine.high %v4686_v45, %v4686_v45  ;;  %v4652_v16 = vrot.slane %v10058_v39, %v9659_v56 }
 0x337   : > { %v6377_v54 = vrot.slane %v6369_v10, %v9659_v56  ;;  %v6384_v20 = vrot.slane %v6370_v46, %v9659_v56  ;;  %v4659_v7 = vrot.slane %v4645_v40, %v9659_v56  ;;  %v4729_v1 = vcombine.high %v10080_v42, %v10080_v42 }
 0x338   : > { %v6419_v31 = vcombine.low %v6411_v8, %v6418_v5  ;;  %v4695_v48 = vcombine.high %v4693_v9, %v4693_v9  ;;  %v6034_v28 = vadd.f32 %v9751_v27, %v4694_v63  ;;  %v10835_v59 = vcombine.high %v9751_v27, %v9751_v27  ;;  %v10170_v45 = vpop.f32.mrb[56].mxu1 }
 0x339   : > { %v4660_v29 = vcombine.high %v4652_v16, %v4652_v16  ;;  %v6385_v12 = vcombine.low %v6377_v54, %v6384_v20  ;;  %v4661_v36 = vcombine.high %v4659_v7, %v4659_v7  ;;  %v6026_v19 = vadd.f32 %v9756_v21, %v4652_v16  ;;  %v10175_v40 = vpop.f32.mrb[57].mxu1 }
 0x33a   : > { %v6035_v39 = vadd.f32 %v10835_v59, %v4693_v9  ;;  %6835 = vst [vmem:[%s10025_s29 + $0x48] sm:$0xff] %v6419_v31  ;;  %v6028_v0 = vadd.f32 %v9759_v17, %v4659_v7  ;;  %v10836_v13 = vcombine.high %v9756_v21, %v9756_v21  ;;  %v4736_v18 = vrot.slane %v10080_v42, %v9659_v56  ;;  %v10184_v20 = vpop.f32.mrb[58].mxu1 }
 0x33b   : > { %v4743_v47 = vrot.slane %v4729_v1, %v9659_v56  ;;  %6833 = vst [vmem:[%s10025_s29 + $0x38] sm:$0xff] %v6385_v12  ;;  %v10837_v27 = vcombine.high %v9759_v17, %v9759_v17  ;;  %v4696_v52 = vcombine.high %v10089_v32, %v10089_v32  ;;  %v4703_v4 = vrot.slane %v10089_v32, %v9659_v56 }
 0x33c   : > { %v6420_v43 = vcombine.low %v6034_v28, %v6035_v39  ;;  %v6027_v44 = vadd.f32 %v10836_v13, %v4660_v29  ;;  %v6036_v34 = vadd.f32 %v9767_v3, %v4695_v48  ;;  %v4744_v38 = vcombine.high %v4736_v18, %v4736_v18  ;;  %v10193_v39 = vpop.f32.mrb[59].mxu1 }
 0x33d   : > { %v6029_v49 = vadd.f32 %v10837_v27, %v4661_v36  ;;  %v4745_v42 = vcombine.high %v4743_v47, %v4743_v47  ;;  %v6044_v5 = vadd.f32 %v9764_v53, %v4736_v18  ;;  %v6046_v17 = vadd.f32 %v9784_v24, %v4743_v47 }
 0x33e   : > { %v6428_v21 = vrot.slane %v6420_v43, %v9659_v56  ;;  %v6386_v10 = vcombine.low %v6026_v19, %v6027_v44  ;;  %v4710_v46 = vrot.slane %v4696_v52, %v9659_v56  ;;  %v10838_v54 = vcombine.high %v9764_v53, %v9764_v53 }
 0x33f   : > { %v6387_v8 = vcombine.low %v6028_v0, %v6029_v49  ;;  %v10839_v63 = vcombine.high %v9784_v24, %v9784_v24  ;;  %v4711_v31 = vcombine.high %v4703_v4, %v4703_v4  ;;  %v10840_v48 = vcombine.high %v9767_v3, %v9767_v3 }
 0x340   : > { %v6394_v32 = vrot.slane %v6386_v10, %v9659_v56  ;;  %v6045_v9 = vadd.f32 %v10838_v54, %v4744_v38  ;;  %v4712_v1 = vcombine.high %v4710_v46, %v4710_v46  ;;  %v10841_v59 = vcombine.high %v9770_v41, %v9770_v41  ;;  %v10215_v38 = vpop.f32.mrb[60].mxu1 }
 0x341   : > { %v6047_v16 = vadd.f32 %v10839_v63, %v4745_v42  ;;  %v6401_v7 = vrot.slane %v6387_v8, %v9659_v56  ;;  %v6037_v28 = vadd.f32 %v10840_v48, %v4703_v4  ;;  %v6038_v12 = vadd.f32 %v9770_v41, %v4711_v31 }
 0x342   : > { %v6039_v53 = vadd.f32 %v10841_v59, %v4710_v46  ;;  %v6455_v29 = vcombine.low %v6044_v5, %v6045_v9  ;;  %v4746_v36 = vcombine.high %v10096_v55, %v10096_v55  ;;  %v4753_v3 = vrot.slane %v10096_v55, %v9659_v56 }
 0x343   : > { %v6471_v24 = vcombine.low %v6046_v17, %v6047_v16  ;;  %v6402_v19 = vcombine.low %v6394_v32, %v6401_v7  ;;  %v6421_v0 = vcombine.low %v6036_v34, %v6037_v28  ;;  %v4713_v43 = vcombine.high %v10099_v51, %v10099_v51  ;;  %v10225_v32 = vpop.f32.mrb[61].mxu1 }
 0x344   : > { %v10203_v13 = vrot.slane %v6455_v29, %v9659_v56  ;;  %v6437_v18 = vcombine.low %v6038_v12, %v6039_v53  ;;  %v4760_v47 = vrot.slane %v4746_v36, %v9659_v56  ;;  %v4761_v27 = vcombine.high %v4753_v3, %v4753_v3  ;;  %v10231_v16 = vpop.f32.mrb[62].mxu1 }
 0x345   : > { %v6479_v44 = vrot.slane %v6471_v24, %v9659_v56  ;;  %6834 = vst [vmem:[%s10025_s29 + $0x40] sm:$0xff] %v6402_v19  ;;  %v6435_v41 = vrot.slane %v6421_v0, %v9659_v56  ;;  %v6048_v49 = vadd.f32 %v9794_v11, %v4753_v3  ;;  %v4720_v55 = vrot.slane %v10099_v51, %v9659_v56 }
 0x346   : > { %v6445_v52 = vrot.slane %v6437_v18, %v9659_v56  ;;  %v4762_v4 = vcombine.high %v4760_v47, %v4760_v47  ;;  %v4727_v34 = vrot.slane %v4713_v43, %v9659_v56  ;;  %v6040_v10 = vadd.f32 %v9800_v60, %v4712_v1  ;;  %v10237_v1 = vpop.f32.mrb[63].mxu1 }
 0x347   : > { %v6436_v42 = vcombine.low %v6428_v21, %v6435_v41  ;;  %v10842_v8 = vcombine.high %v9794_v11, %v9794_v11  ;;  %v10843_v17 = vcombine.high %v9800_v60, %v9800_v60  ;;  %v4796_v51 = vcombine.high %v10125_v14, %v10125_v14 }
 0x348   : > { %v6050_v54 = vadd.f32 %v9797_v61, %v4762_v4  ;;  %v4728_v9 = vcombine.high %v4727_v34, %v4727_v34  ;;  %v6042_v63 = vadd.f32 %v9803_v50, %v4727_v34  ;;  %v4803_v21 = vrot.slane %v10125_v14, %v9659_v56 }
 0x349   : > { %v6049_v5 = vadd.f32 %v10842_v8, %v4761_v27  ;;  %v6041_v46 = vadd.f32 %v10843_v17, %v4720_v55  ;;  %6836 = vst [vmem:[%s10025_s29 + $0x50] sm:$0xff] %v6436_v42  ;;  %v4810_v60 = vrot.slane %v4796_v51, %v9659_v56  ;;  %v4763_v7 = vcombine.high %v10132_v37, %v10132_v37 }
 0x34a   : > { %v10844_v48 = vcombine.high %v9803_v50, %v9803_v50  ;;  %v4811_v59 = vcombine.high %v4803_v21, %v4803_v21  ;;  %v6058_v53 = vadd.f32 %v9809_v25, %v4803_v21  ;;  %v4770_v14 = vrot.slane %v10132_v37, %v9659_v56 }
 0x34b   : > { %v6472_v11 = vcombine.low %v6048_v49, %v6049_v5  ;;  %v6438_v31 = vcombine.low %v6040_v10, %v6041_v46  ;;  %v4812_v12 = vcombine.high %v4810_v60, %v4810_v60  ;;  %v6060_v36 = vadd.f32 %v9815_v58, %v4810_v60  ;;  %v10260_v10 = vpop.f32.mrb[64].mxu1 }
 0x34c   : > { %v6043_v28 = vadd.f32 %v10844_v48, %v4728_v9  ;;  %v10845_v50 = vcombine.high %v9809_v25, %v9809_v25  ;;  %v4777_v3 = vrot.slane %v4763_v7, %v9659_v56  ;;  %v4778_v43 = vcombine.high %v4770_v14, %v4770_v14  ;;  %v10269_v8 = vpop.f32.mrb[65].mxu1 }
 0x34d   : > { %v6486_v29 = vrot.slane %v6472_v11, %v9659_v56  ;;  %v6452_v24 = vrot.slane %v6438_v31, %v9659_v56  ;;  %v10846_v37 = vcombine.high %v9815_v58, %v9815_v58  ;;  %v10847_v27 = vcombine.high %v9797_v61, %v9797_v61  ;;  %v10277_v9 = vpop.f32.mrb[66].mxu1 }
 0x34e   : > { %v6454_v19 = vcombine.low %v6042_v63, %v6043_v28  ;;  %v6059_v0 = vadd.f32 %v10845_v50, %v4811_v59  ;;  %v4779_v34 = vcombine.high %v4777_v3, %v4777_v3  ;;  %v6052_v25 = vadd.f32 %v9812_v33, %v4778_v43  ;;  %v10282_v11 = vpop.f32.mrb[67].mxu1 }
 0x34f   : > { %v6487_v18 = vcombine.low %v6479_v44, %v6486_v29  ;;  %v6453_v47 = vcombine.low %v6445_v52, %v6452_v24  ;;  %v6061_v41 = vadd.f32 %v10846_v37, %v4812_v12  ;;  %v6051_v49 = vadd.f32 %v10847_v27, %v4770_v14 }
 0x350   : > { %v6462_v55 = vrot.slane %v6454_v19, %v9659_v56  ;;  %v6522_v4 = vcombine.low %v6058_v53, %v6059_v0  ;;  %v10848_v58 = vcombine.high %v9812_v33, %v9812_v33  ;;  %v4813_v61 = vcombine.high %v10139_v26, %v10139_v26  ;;  %v10308_v37 = vpop.f32.mrb[68].mxu1 }
 0x351   : > { %6839 = vst [vmem:[%s10025_s29 + $0x68] sm:$0xff] %v6487_v18  ;;  %6837 = vst [vmem:[%s10025_s29 + $0x58] sm:$0xff] %v6453_v47  ;;  %v6523_v44 = vcombine.low %v6060_v36, %v6061_v41  ;;  %v6488_v42 = vcombine.low %v6050_v54, %v6051_v49  ;;  %v4820_v46 = vrot.slane %v10139_v26, %v9659_v56 }
 0x352   : > { %v6053_v52 = vadd.f32 %v10848_v58, %v4777_v3  ;;  %v6470_v5 = vcombine.low %v6462_v55, %v10203_v13  ;;  %v6530_v17 = vrot.slane %v6522_v4, %v9659_v56  ;;  %v4780_v51 = vcombine.high %v10145_v30, %v10145_v30  ;;  %v10318_v55 = vpop.f32.mrb[69].mxu1 }
 0x353   : > { %v6537_v33 = vrot.slane %v6523_v44, %v9659_v56  ;;  %v6496_v63 = vrot.slane %v6488_v42, %v9659_v56  ;;  %v4827_v21 = vrot.slane %v4813_v61, %v9659_v56  ;;  %v4828_v13 = vcombine.high %v4820_v46, %v4820_v46  ;;  %v10324_v44 = vpop.f32.mrb[70].mxu1 }
 0x354   : > { %v6489_v54 = vcombine.low %v6052_v25, %v6053_v52  ;;  %6838 = vst [vmem:[%s10025_s29 + $0x60] sm:$0xff] %v6470_v5  ;;  %v6062_v31 = vadd.f32 %v9818_v2, %v4820_v46  ;;  %v4787_v26 = vrot.slane %v10145_v30, %v9659_v56  ;;  %v4794_v60 = vrot.slane %v4780_v51, %v9659_v56  ;;  %v10329_v61 = vpop.f32.mrb[71].mxu1 }
 0x355   : > { %v6538_v7 = vcombine.low %v6530_v17, %v6537_v33  ;;  %v4829_v28 = vcombine.high %v4827_v21, %v4827_v21  ;;  %v6064_v59 = vadd.f32 %v9826_v57, %v4827_v21  ;;  %v10849_v53 = vcombine.high %v9818_v2, %v9818_v2  ;;  %v10854_v21 = vld [vmem:[#allocation4_spill] sm:$0xff] }
 0x356   : > { %v6503_v48 = vrot.slane %v6489_v54, %v9659_v56  ;;  %v4795_v29 = vcombine.high %v4787_v26, %v4787_v26  ;;  %v6054_v24 = vadd.f32 %v9821_v62, %v4779_v34  ;;  %v10850_v12 = vcombine.high %v9821_v62, %v9821_v62 }
 0x357   : > { %v6063_v14 = vadd.f32 %v10849_v53, %v4828_v13  ;;  %6842 = vst [vmem:[%s10025_s29 + $0x80] sm:$0xff] %v6538_v7  ;;  %v10851_v19 = vcombine.high %v9826_v57, %v9826_v57  ;;  %v10852_v0 = vcombine.high %v9829_v35, %v9829_v35  ;;  %v4864_v2 = vcombine.high %v10170_v45, %v10170_v45 }
 0x358   : > { %v6055_v30 = vadd.f32 %v10850_v12, %v4787_v26  ;;  %v6504_v36 = vcombine.low %v6496_v63, %v6503_v48  ;;  %v6056_v18 = vadd.f32 %v9829_v35, %v4795_v29  ;;  %v5815_v62 = vcombine.high %v9976_v15, %v9976_v15  ;;  %v10858_v12 = vld [vmem:[#allocation5_spill] sm:$0xff] }
 0x359   : > { %v6065_v50 = vadd.f32 %v10851_v19, %v4829_v28  ;;  %v6057_v3 = vadd.f32 %v10852_v0, %v4794_v60  ;;  %v6539_v43 = vcombine.low %v6062_v31, %v6063_v14  ;;  %v4878_v57 = vrot.slane %v4864_v2, %v9659_v56  ;;  %v10856_v28 = vld [vmem:[#allocation3_spill] sm:$0xff] }
 0x35a   : > { %v6505_v47 = vcombine.low %v6054_v24, %v6055_v30  ;;  %6840 = vst [vmem:[%s10025_s29 + $0x70] sm:$0xff] %v6504_v36  ;;  %v4830_v27 = vcombine.high %v10175_v40, %v10175_v40  ;;  %v4837_v49 = vrot.slane %v10175_v40, %v9659_v56  ;;  %v4871_v25 = vrot.slane %v10170_v45, %v9659_v56 }
 0x35b   : > { %v6540_v41 = vcombine.low %v6064_v59, %v6065_v50  ;;  %v6547_v35 = vrot.slane %v6539_v43, %v9659_v56  ;;  %v6506_v4 = vcombine.low %v6056_v18, %v6057_v3  ;;  %v4879_v52 = vcombine.high %v4878_v57, %v4878_v57  ;;  %v10860_v50 = vld [vmem:[#allocation6_spill] sm:$0xff]  ;;  %v10861_v43 = vld [vmem:[#allocation7_spill] sm:$0xff] }
 0x35c   : > { %v6513_v34 = vrot.slane %v6505_v47, %v9659_v56  ;;  %v6074_v42 = vadd.f32 %v9860_v23, %v4878_v57  ;;  %v4844_v40 = vrot.slane %v4830_v27, %v9659_v56  ;;  %v4845_v17 = vcombine.high %v4837_v49, %v4837_v49 }
 0x35d   : > { %v6554_v58 = vrot.slane %v6540_v41, %v9659_v56  ;;  %v6520_v5 = vrot.slane %v6506_v4, %v9659_v56  ;;  %v4880_v46 = vcombine.high %v10184_v20, %v10184_v20  ;;  %v4887_v45 = vrot.slane %v10184_v20, %v9659_v56  ;;  %v10864_v4 = vld [vmem:[#allocation8_spill] sm:$0xff] }
 0x35e   : > { %v10853_v33 = vcombine.high %v9860_v23, %v9860_v23  ;;  %v4846_v63 = vcombine.high %v4844_v40, %v4844_v40  ;;  %v10855_v13 = vcombine.high %v10854_v21, %v10854_v21  ;;  %v6066_v60 = vadd.f32 %v10854_v21, %v4845_v17 }
 0x35f   : > { %v6555_v51 = vcombine.low %v6547_v35, %v6554_v58  ;;  %v6521_v26 = vcombine.low %v6513_v34, %v6520_v5  ;;  %v4894_v7 = vrot.slane %v4880_v46, %v9659_v56  ;;  %v4895_v48 = vcombine.high %v4887_v45, %v4887_v45 }
 0x360   : > { %v6075_v54 = vadd.f32 %v10853_v33, %v4879_v52  ;;  %v6067_v31 = vadd.f32 %v10855_v13, %v4844_v40  ;;  %v10857_v20 = vcombine.high %v10856_v28, %v10856_v28  ;;  %v4847_v23 = vcombine.high %v10193_v39, %v10193_v39 }
 0x361   : > { %6843 = vst [vmem:[%s10025_s29 + $0x88] sm:$0xff] %v6555_v51  ;;  %v4854_v14 = vrot.slane %v10193_v39, %v9659_v56  ;;  %6841 = vst [vmem:[%s10025_s29 + $0x78] sm:$0xff] %v6521_v26  ;;  %v4896_v24 = vcombine.high %v4894_v7, %v4894_v7  ;;  %v6076_v30 = vadd.f32 %v10858_v12, %v4887_v45 }
 0x362   : > { %v6073_v59 = vadd.f32 %v10857_v20, %v4871_v25  ;;  %v6590_v53 = vcombine.low %v6074_v42, %v6075_v54  ;;  %v6556_v29 = vcombine.low %v6066_v60, %v6067_v31  ;;  %v10859_v36 = vcombine.high %v10858_v12, %v10858_v12 }
 0x363   : > { %v6078_v0 = vadd.f32 %v10860_v50, %v4894_v7  ;;  %v4861_v3 = vrot.slane %v4847_v23, %v9659_v56  ;;  %v4862_v2 = vcombine.high %v4854_v14, %v4854_v14  ;;  %v6068_v18 = vadd.f32 %v10861_v43, %v4846_v63 }
 0x364   : > { %v6077_v19 = vadd.f32 %v10859_v36, %v4895_v48  ;;  %v6598_v47 = vrot.slane %v6590_v53, %v9659_v56  ;;  %v10862_v39 = vcombine.high %v10860_v50, %v10860_v50  ;;  %v10863_v27 = vcombine.high %v10861_v43, %v10861_v43  ;;  %v10870_v43 = vld [vmem:[#allocation11_spill] sm:$0xff] }
 0x365   : > { %v4863_v35 = vcombine.high %v4861_v3, %v4861_v3  ;;  %v6070_v34 = vadd.f32 %v10864_v4, %v4862_v2  ;;  %v10865_v25 = vcombine.high %v10864_v4, %v10864_v4  ;;  %v4931_v52 = vcombine.high %v10215_v38, %v10215_v38 }
 0x366   : > { %v6079_v41 = vadd.f32 %v10862_v39, %v4896_v24  ;;  %v6591_v57 = vcombine.low %v6076_v30, %v6077_v19  ;;  %v6069_v49 = vadd.f32 %v10863_v27, %v4854_v14  ;;  %v4938_v17 = vrot.slane %v10215_v38, %v9659_v56  ;;  %v10867_v24 = vld [vmem:[#allocation9_spill] sm:$0xff] }
 0x367   : > { %v6071_v58 = vadd.f32 %v10865_v25, %v4861_v3  ;;  %v6072_v46 = vadd.f32 %v10856_v28, %v4863_v35  ;;  %v4945_v51 = vrot.slane %v4931_v52, %v9659_v56  ;;  %v4897_v33 = vcombine.high %v10225_v32, %v10225_v32  ;;  %v10873_v35 = vld [vmem:[#allocation12_spill] sm:$0xff] }
 0x368   : > { %v6605_v42 = vrot.slane %v6591_v57, %v9659_v56  ;;  %v6607_v40 = vcombine.low %v6078_v0, %v6079_v41  ;;  %v6557_v5 = vcombine.low %v6068_v18, %v6069_v49  ;;  %v6564_v54 = vrot.slane %v6556_v29, %v9659_v56 }
 0x369   : > { %v6573_v45 = vcombine.low %v6070_v34, %v6071_v58  ;;  %v4946_v13 = vcombine.high %v4938_v17, %v4938_v17  ;;  %v6574_v26 = vcombine.low %v6072_v46, %v6073_v59  ;;  %v10866_v60 = vcombine.high %v9883_v6, %v9883_v6  ;;  %v10876_v46 = vld [vmem:[#allocation13_spill] sm:$0xff] }
 0x36a   : > { %v6606_v63 = vcombine.low %v6598_v47, %v6605_v42  ;;  %v6571_v21 = vrot.slane %v6557_v5, %v9659_v56  ;;  %v6615_v31 = vrot.slane %v6607_v40, %v9659_v56  ;;  %v4904_v20 = vrot.slane %v10225_v32, %v9659_v56  ;;  %v10871_v47 = vld [vmem:[#allocation10_spill] sm:$0xff] }
 0x36b   : > { %v6581_v38 = vrot.slane %v6573_v45, %v9659_v56  ;;  %v6089_v7 = vadd.f32 %v10866_v60, %v4945_v51  ;;  %v6088_v28 = vadd.f32 %v9883_v6, %v4946_v13  ;;  %v4911_v53 = vrot.slane %v4897_v33, %v9659_v56 }
 0x36c   : > { %6846 = vst [vmem:[%s10025_s29 + $0xa0] sm:$0xff] %v6606_v63  ;;  %v6572_v48 = vcombine.low %v6564_v54, %v6571_v21  ;;  %v6588_v23 = vrot.slane %v6574_v26, %v9659_v56  ;;  %v4947_v59 = vcombine.high %v10231_v16, %v10231_v16  ;;  %v4954_v14 = vrot.slane %v10231_v16, %v9659_v56 }
 0x36d   : > { %v4914_v29 = vcombine.high %v10237_v1, %v10237_v1  ;;  %v10868_v6 = vcombine.high %v10867_v24, %v10867_v24  ;;  %v6642_v32 = vcombine.low %v6088_v28, %v6089_v7  ;;  %v4912_v30 = vcombine.high %v4904_v20, %v4904_v20 }
 0x36e   : > { %6844 = vst [vmem:[%s10025_s29 + $0x90] sm:$0xff] %v6572_v48  ;;  %v4913_v36 = vcombine.high %v4911_v53, %v4911_v53  ;;  %v6589_v19 = vcombine.low %v6581_v38, %v6588_v23  ;;  %v6080_v50 = vadd.f32 %v9891_v22, %v4904_v20  ;;  %v4961_v0 = vrot.slane %v4947_v59, %v9659_v56 }
 0x36f   : > { %v6087_v12 = vadd.f32 %v10868_v6, %v4938_v17  ;;  %v4962_v3 = vcombine.high %v4954_v14, %v4954_v14  ;;  %v10869_v16 = vcombine.high %v9891_v22, %v9891_v22  ;;  %v6090_v39 = vadd.f32 %v10871_v47, %v4954_v14 }
 0x370   : > { %v6082_v18 = vadd.f32 %v10870_v43, %v4913_v36  ;;  %v4921_v41 = vrot.slane %v10237_v1, %v9659_v56  ;;  %6845 = vst [vmem:[%s10025_s29 + $0x98] sm:$0xff] %v6589_v19  ;;  %v4963_v57 = vcombine.high %v4961_v0, %v4961_v0  ;;  %v10872_v27 = vcombine.high %v10871_v47, %v10871_v47 }
 0x371   : > { %v6081_v2 = vadd.f32 %v10869_v16, %v4912_v30  ;;  %v6092_v4 = vadd.f32 %v10873_v35, %v4961_v0  ;;  %v4928_v34 = vrot.slane %v4914_v29, %v9659_v56  ;;  %v10874_v58 = vcombine.high %v10870_v43, %v10870_v43  ;;  %v10878_v29 = vld [vmem:[#allocation15_spill] sm:$0xff]  ;;  %v10880_v16 = vld [vmem:[#allocation25_spill] sm:$0xff] }
 0x372   : > { %v6091_v49 = vadd.f32 %v10872_v27, %v4962_v3  ;;  %v4929_v22 = vcombine.high %v4921_v41, %v4921_v41  ;;  %v4998_v42 = vcombine.high %v10260_v10, %v10260_v10  ;;  %v10875_v1 = vcombine.high %v10873_v35, %v10873_v35  ;;  %v10882_v27 = vld [vmem:[#allocation18_spill] sm:$0xff] }
 0x373   : > { %v6608_v25 = vcombine.low %v6080_v50, %v6081_v2  ;;  %v6083_v52 = vadd.f32 %v10874_v58, %v4921_v41  ;;  %v4930_v17 = vcombine.high %v4928_v34, %v4928_v34  ;;  %v10877_v45 = vcombine.high %v10876_v46, %v10876_v46  ;;  %v10881_v41 = vld [vmem:[#allocation16_spill] sm:$0xff] }
 0x374   : > { %v6093_v40 = vadd.f32 %v10875_v1, %v4963_v57  ;;  %v6658_v5 = vcombine.low %v6090_v39, %v6091_v49  ;;  %v6084_v54 = vadd.f32 %v10876_v46, %v4929_v22  ;;  %v10433_v21 = vrot.slane %v10260_v10, %v9659_v56  ;;  %v10887_v46 = vld [vmem:[#allocation19_spill] sm:$0xff] }
 0x375   : > { %v6085_v51 = vadd.f32 %v10877_v45, %v4928_v34  ;;  %v6622_v33 = vrot.slane %v6608_v25, %v9659_v56  ;;  %v6624_v63 = vcombine.low %v6082_v18, %v6083_v52  ;;  %v6656_v13 = vrot.slane %v6642_v32, %v9659_v56  ;;  %v10884_v34 = vld [vmem:[#allocation17_spill] sm:$0xff] }
 0x376   : > { %v6659_v26 = vcombine.low %v6092_v4, %v6093_v40  ;;  %v6086_v38 = vadd.f32 %v10867_v24, %v4930_v17  ;;  %v5012_v60 = vrot.slane %v4998_v42, %v9659_v56  ;;  %v5013_v20 = vcombine.high %v10433_v21, %v10433_v21 }
 0x377   : > { %v6623_v7 = vcombine.low %v6615_v31, %v6622_v33  ;;  %v6625_v48 = vcombine.low %v6084_v54, %v6085_v51  ;;  %v6632_v28 = vrot.slane %v6624_v63, %v9659_v56  ;;  %v6666_v53 = vrot.slane %v6658_v5, %v9659_v56 }
 0x378   : > { %v6673_v23 = vrot.slane %v6659_v26, %v9659_v56  ;;  %v6641_v10 = vcombine.low %v6086_v38, %v6087_v12  ;;  %v5014_v59 = vcombine.high %v5012_v60, %v5012_v60  ;;  %v6102_v24 = vadd.f32 %v10878_v29, %v5013_v20  ;;  %v10889_v20 = vld [vmem:[#allocation20_spill] sm:$0xff] }
 0x379   : > { %6847 = vst [vmem:[%s10025_s29 + $0xa8] sm:$0xff] %v6623_v7  ;;  %v6639_v14 = vrot.slane %v6625_v48, %v9659_v56  ;;  %v10879_v31 = vcombine.high %v10878_v29, %v10878_v29  ;;  %v4964_v32 = vcombine.high %v10269_v8, %v10269_v8  ;;  %v4971_v12 = vrot.slane %v10269_v8, %v9659_v56 }
 0x37a   : > { %v6674_v30 = vcombine.low %v6666_v53, %v6673_v23  ;;  %v6649_v36 = vrot.slane %v6641_v10, %v9659_v56  ;;  %v5015_v19 = vcombine.high %v10277_v9, %v10277_v9  ;;  %v5022_v3 = vrot.slane %v10277_v9, %v9659_v56 }
 0x37b   : > { %v6103_v6 = vadd.f32 %v10879_v31, %v5012_v60  ;;  %v6640_v50 = vcombine.low %v6632_v28, %v6639_v14  ;;  %v4978_v0 = vrot.slane %v4964_v32, %v9659_v56  ;;  %v5865_v2 = vcombine.high %v10880_v16, %v10880_v16 }
 0x37c   : > { %6850 = vst [vmem:[%s10025_s29 + $0xc0] sm:$0xff] %v6674_v30  ;;  %v6657_v43 = vcombine.low %v6649_v36, %v6656_v13  ;;  %v4979_v47 = vcombine.high %v4971_v12, %v4971_v12  ;;  %v5029_v39 = vrot.slane %v5015_v19, %v9659_v56  ;;  %v6094_v57 = vadd.f32 %v10881_v41, %v4971_v12 }
 0x37d   : > { %v6709_v18 = vcombine.low %v6102_v24, %v6103_v6  ;;  %6848 = vst [vmem:[%s10025_s29 + $0xb0] sm:$0xff] %v6640_v50  ;;  %v4980_v8 = vcombine.high %v4978_v0, %v4978_v0  ;;  %v6104_v49 = vadd.f32 %v10882_v27, %v5014_v59  ;;  %v10470_v9 = vrot.slane %v5815_v62, %v9659_v56  ;;  %v10891_v24 = vld [vmem:[#allocation26_spill] sm:$0xff] }
 0x37e   : > { %6849 = vst [vmem:[%s10025_s29 + $0xb8] sm:$0xff] %v6657_v43  ;;  %v10883_v35 = vcombine.high %v10881_v41, %v10881_v41  ;;  %v6096_v25 = vadd.f32 %v10884_v34, %v4978_v0  ;;  %v5030_v22 = vcombine.high %v5029_v39, %v5029_v39  ;;  %v10885_v58 = vcombine.high %v10882_v27, %v10882_v27  ;;  %v10892_v6 = vld [vmem:[#allocation14_spill] sm:$0xff] }
 0x37f   : > { %v10886_v42 = vcombine.high %v10884_v34, %v10884_v34  ;;  %v4981_v15 = vcombine.high %v10282_v11, %v10282_v11  ;;  %v4988_v62 = vrot.slane %v10282_v11, %v9659_v56  ;;  %v5065_v40 = vcombine.high %v10308_v37, %v10308_v37 }
 0x380   : > { %v6095_v4 = vadd.f32 %v10883_v35, %v4979_v47  ;;  %v6105_v52 = vadd.f32 %v10885_v58, %v5022_v3  ;;  %v6717_v5 = vrot.slane %v6709_v18, %v9659_v56  ;;  %v10888_v45 = vcombine.high %v10887_v46, %v10887_v46  ;;  %v10894_v47 = vld [vmem:[#allocation23_spill] sm:$0xff] }
 0x381   : > { %v6097_v1 = vadd.f32 %v10886_v42, %v4980_v8  ;;  %v4995_v63 = vrot.slane %v4981_v15, %v9659_v56  ;;  %v4996_v13 = vcombine.high %v4988_v62, %v4988_v62  ;;  %v5079_v26 = vrot.slane %v5065_v40, %v9659_v56 }
 0x382   : > { %v6675_v17 = vcombine.low %v6094_v57, %v6095_v4  ;;  %v6107_v51 = vadd.f32 %v10888_v45, %v5030_v22  ;;  %v6710_v33 = vcombine.low %v6104_v49, %v6105_v52  ;;  %v6106_v11 = vadd.f32 %v10887_v46, %v5029_v39 }
 0x383   : > { %v6676_v54 = vcombine.low %v6096_v25, %v6097_v1  ;;  %v5072_v7 = vrot.slane %v10308_v37, %v9659_v56  ;;  %v4997_v28 = vcombine.high %v4995_v63, %v4995_v63  ;;  %v6098_v53 = vadd.f32 %v10889_v20, %v4996_v13  ;;  %v10896_v25 = vld [vmem:[#allocation24_spill] sm:$0xff] }
 0x384   : > { %v6683_v38 = vrot.slane %v6675_v17, %v9659_v56  ;;  %v6724_v60 = vrot.slane %v6710_v33, %v9659_v56  ;;  %v10890_v23 = vcombine.high %v10889_v20, %v10889_v20  ;;  %v6726_v14 = vcombine.low %v6106_v11, %v6107_v51  ;;  %v10898_v51 = vld [vmem:[#allocation22_spill] sm:$0xff] }
 0x385   : > { %v6690_v48 = vrot.slane %v6676_v54, %v9659_v56  ;;  %v5081_v29 = vcombine.high %v5079_v26, %v5079_v26  ;;  %v5830_v31 = vcombine.high %v10891_v24, %v10891_v24  ;;  %v10893_v37 = vcombine.high %v10892_v6, %v10892_v6 }
 0x386   : > { %v6099_v10 = vadd.f32 %v10890_v23, %v4995_v63  ;;  %v6725_v59 = vcombine.low %v6717_v5, %v6724_v60  ;;  %v6100_v36 = vadd.f32 %v10892_v6, %v4997_v28  ;;  %v5031_v19 = vcombine.high %v10318_v55, %v10318_v55 }
 0x387   : > { %v6101_v32 = vadd.f32 %v10893_v37, %v10433_v21  ;;  %v6691_v30 = vcombine.low %v6683_v38, %v6690_v48  ;;  %v5038_v50 = vrot.slane %v10318_v55, %v9659_v56  ;;  %v5082_v0 = vcombine.high %v10324_v44, %v10324_v44 }
 0x388   : > { %v6692_v12 = vcombine.low %v6098_v53, %v6099_v10  ;;  %6853 = vst [vmem:[%s10025_s29 + $0xd8] sm:$0xff] %v6725_v59  ;;  %v5831_v3 = vcombine.high %v10470_v9, %v10470_v9  ;;  %v5080_v21 = vcombine.high %v5072_v7, %v5072_v7  ;;  %v5089_v18 = vrot.slane %v10324_v44, %v9659_v56 }
 0x389   : > { %6851 = vst [vmem:[%s10025_s29 + $0xc8] sm:$0xff] %v6691_v30  ;;  %v6693_v43 = vcombine.low %v6100_v36, %v6101_v32  ;;  %v6118_v39 = vadd.f32 %v10894_v47, %v5081_v29  ;;  %v6734_v8 = vrot.slane %v6726_v14, %v9659_v56  ;;  %v5045_v55 = vrot.slane %v5031_v19, %v9659_v56 }
 0x38a   : > { %v6700_v41 = vrot.slane %v6692_v12, %v9659_v56  ;;  %v5046_v57 = vcombine.high %v5038_v50, %v5038_v50  ;;  %v5096_v49 = vrot.slane %v5082_v0, %v9659_v56  ;;  %v5097_v35 = vcombine.high %v5089_v18, %v5089_v18 }
 0x38b   : > { %v6707_v27 = vrot.slane %v6693_v43, %v9659_v56  ;;  %v10895_v4 = vcombine.high %v10894_v47, %v10894_v47  ;;  %v5047_v44 = vcombine.high %v5045_v55, %v5045_v55  ;;  %v6108_v22 = vadd.f32 %v10896_v25, %v5038_v50 }
 0x38c   : > { %v10897_v58 = vcombine.high %v10896_v25, %v10896_v25  ;;  %v6110_v42 = vadd.f32 %v10891_v24, %v5045_v55  ;;  %v6120_v15 = vadd.f32 %v10880_v16, %v5097_v35  ;;  %v6121_v62 = vadd.f32 %v5865_v2, %v5096_v49 }
 0x38d   : > { %v6119_v34 = vadd.f32 %v10895_v4, %v5089_v18  ;;  %v6708_v1 = vcombine.low %v6700_v41, %v6707_v27  ;;  %v6111_v5 = vadd.f32 %v5830_v31, %v5047_v44  ;;  %v5048_v46 = vcombine.high %v10329_v61, %v10329_v61 }
 0x38e   : > { %v6109_v52 = vadd.f32 %v10897_v58, %v5046_v57  ;;  %v5055_v45 = vrot.slane %v10329_v61, %v9659_v56  ;;  %v6116_v33 = vadd.f32 %v10898_v51, %v5080_v21  ;;  %v10899_v54 = vcombine.high %v10898_v51, %v10898_v51 }
 0x38f   : > { %v6777_v40 = vcombine.low %v6118_v39, %v6119_v34  ;;  %6852 = vst [vmem:[%s10025_s29 + $0xd0] sm:$0xff] %v6708_v1  ;;  %v6778_v13 = vcombine.low %v6120_v15, %v6121_v62  ;;  %v6743_v38 = vcombine.low %v6110_v42, %v6111_v5  ;;  %v5062_v11 = vrot.slane %v5048_v46, %v9659_v56 }
 0x390   : > { %v6727_v17 = vcombine.low %v6108_v22, %v6109_v52  ;;  %v6117_v63 = vadd.f32 %v10899_v54, %v5079_v26  ;;  %v5063_v60 = vcombine.high %v5055_v45, %v5055_v45  ;;  %v6112_v20 = vadd.f32 %v10470_v9, %v5055_v45  ;;  %v10900_v26 = vld [vmem:[#allocation21_spill] sm:$0xff] }
 0x391   : > { %v6785_v16 = vrot.slane %v6777_v40, %v9659_v56  ;;  %v6792_v61 = vrot.slane %v6778_v13, %v9659_v56  ;;  %v5064_v28 = vcombine.high %v5062_v11, %v5062_v11  ;;  %v10901_v23 = vcombine.high %v10900_v26, %v10900_v26 }
 0x392   : > { %v6741_v2 = vrot.slane %v6727_v17, %v9659_v56  ;;  %v6113_v53 = vadd.f32 %v5831_v3, %v5063_v60  ;;  %v6761_v14 = vcombine.low %v6116_v33, %v6117_v63  ;;  %v6751_v29 = vrot.slane %v6743_v38, %v9659_v56 }
 0x393   : > { %v6115_v10 = vadd.f32 %v10901_v23, %v5072_v7  ;;  %v6793_v59 = vcombine.low %v6785_v16, %v6792_v61  ;;  %v6114_v24 = vadd.f32 %v10900_v26, %v5064_v28 }
 0x394   : > { %v6742_v48 = vcombine.low %v6734_v8, %v6741_v2  ;;  %v6744_v31 = vcombine.low %v6112_v20, %v6113_v53  ;;  %v6775_v9 = vrot.slane %v6761_v14, %v9659_v56 }
 0x395   : > { %6857 = vst [vmem:[%s10025_s29 + $0xf8] sm:$0xff] %v6793_v59  ;;  %v6760_v37 = vcombine.low %v6114_v24, %v6115_v10 }
 0x396   : > { %6854 = vst [vmem:[%s10025_s29 + $0xe0] sm:$0xff] %v6742_v48  ;;  %v6758_v6 = vrot.slane %v6744_v31, %v9659_v56 }
 0x397   : > { %v6768_v30 = vrot.slane %v6760_v37, %v9659_v56 }
 0x398   : > { %v6759_v32 = vcombine.low %v6751_v29, %v6758_v6 }
 0x399   : > { %v6776_v36 = vcombine.low %v6768_v30, %v6775_v9 }
 0x39a   : > { %6855 = vst [vmem:[%s10025_s29 + $0xe8] sm:$0xff] %v6759_v32 }
 0x39b   : > { %6856 = vst [vmem:[%s10025_s29 + $0xf0] sm:$0xff] %v6776_v36 }
 0x39c PF: > { %s16_s21 = sadd.s32 1, %s8475_s21  }
 0x39d   : > { %p13_p4 = scmp.ge.s32.totalorder %s16_s21, 4  }
 0x39f   :  { %15 = sbr.rel (!%p13_p4) target bundleno = 1 (0x1), region = 100 }

</bundles_post_ra>
